<compile_context>
chip_gen: v5e
topology: v5e:2x2
jax: 0.10.0
libtpu: 0.0.40
codegen_flags: <defaults>
</compile_context>

<pallas_src>
import functools
import math

import jax
import jax.numpy as jnp
from jax import lax
from jax.experimental import pallas as pl
from jax.experimental.pallas import tpu as pltpu


def _round_up(x, m):
    return ((x + m - 1) // m) * m


# ----------------------------------------------------------------------------
# Pallas GRU kernel: one grid step per time-chunk.  Per chunk:
#   - one large fused input projection into VMEM scratch,
#   - a bounded-unroll fori_loop over timesteps (h @ W_hh on the critical path),
#   - hidden state carried across grid steps in VMEM scratch.
# ----------------------------------------------------------------------------
def _gru_kernel(x_ref, wih_ref, gxb_ref, whh_ref, bhhn_ref,
                out_ref, hid_ref, gx_ref, h_ref, *, matmul_dtype, unroll):
    # x_ref   : (t_chunk, Bp, In_p) raw inputs for this time chunk
    # wih_ref : (In_p, 3*Hp)        input->gate weights (padded, pre-transposed)
    # gxb_ref : (1, 3*Hp)           folded projection bias (b_ih + b_hh for r/z)
    # whh_ref : (Hp, 3*Hp)          recurrent weights (padded, pre-transposed)
    # bhhn_ref: (1, Hp)             hidden bias of the n gate (inside r*(...))
    # out_ref : (t_chunk, Bp, Hp)   per-timestep hidden states
    # hid_ref : (1, Bp, Hp)         final hidden state (nn.GRU's `hidden`)
    # gx_ref  : (t_chunk*Bp, 3*Hp)  VMEM scratch: fused input projection
    # h_ref   : (Bp, Hp)            VMEM scratch: hidden carried across chunks
    c = pl.program_id(0)

    @pl.when(c == 0)
    def _():
        h_ref[...] = jnp.zeros_like(h_ref)

    t_chunk, Bp, In = x_ref.shape
    Hp = h_ref.shape[-1]

    # Fused input projection for the whole chunk: one (t_chunk*Bp, In)x(In, 3Hp)
    # MXU matmul (biases for r/z already include b_hh).  Collapsing (t, Bp)
    # with Bp a multiple of 8 is layout-preserving (no relayout).
    x2d = x_ref[...].reshape(t_chunk * Bp, In)
    gx_ref[...] = (
        jnp.dot(x2d.astype(matmul_dtype), wih_ref[...].astype(matmul_dtype),
                preferred_element_type=jnp.float32)
        + gxb_ref[...])

    whh = whh_ref[...].astype(matmul_dtype)   # hoisted cast, reused every step
    bhhn = bhhn_ref[...]                      # (1, Hp), f32

    def step(t, h):
        row = pl.multiple_of(t * Bp, Bp)
        gx = gx_ref[pl.ds(row, Bp), :]                          # (Bp, 3*Hp)
        gh = jnp.dot(h.astype(matmul_dtype), whh,
                     preferred_element_type=jnp.float32)        # (Bp, 3*Hp)
        # PyTorch gate order r, z, n — slices are lane-aligned (Hp % 128 == 0).
        r = jax.nn.sigmoid(gx[:, 0:Hp] + gh[:, 0:Hp])
        z = jax.nn.sigmoid(gx[:, Hp:2 * Hp] + gh[:, Hp:2 * Hp])
        n = jnp.tanh(gx[:, 2 * Hp:3 * Hp] + r * (gh[:, 2 * Hp:3 * Hp] + bhhn))
        h_new = n + z * (h - n)               # == (1-z)*n + z*h, one fewer VPU op
        out_ref[t] = h_new.astype(out_ref.dtype)
        return h_new

    h_final = lax.fori_loop(0, t_chunk, step, h_ref[...], unroll=unroll)
    h_ref[...] = h_final

    @pl.when(c == pl.num_programs(0) - 1)
    def _():
        hid_ref[0] = h_final.astype(hid_ref.dtype)


# ----------------------------------------------------------------------------
# Parameter packing: torch-layout raw params -> padded, pre-transposed kernel
# params with r/z hidden biases folded into the projection bias.
# ----------------------------------------------------------------------------
def pack_gru_params(raw, hidden_size):
    H = hidden_size
    Hp = _round_up(H, 128)
    w_ih, w_hh, b_ih, b_hh = raw["w_ih"], raw["w_hh"], raw["b_ih"], raw["b_hh"]
    in_dim = w_ih.shape[1]
    in_p = _round_up(in_dim, 8)

    w_ih_t = jnp.zeros((in_p, 3 * Hp), jnp.float32)
    w_hh_t = jnp.zeros((Hp, 3 * Hp), jnp.float32)
    for g in range(3):
        w_ih_t = w_ih_t.at[:in_dim, g * Hp:g * Hp + H].set(w_ih[g * H:(g + 1) * H, :].T)
        w_hh_t = w_hh_t.at[:H, g * Hp:g * Hp + H].set(w_hh[g * H:(g + 1) * H, :].T)

    gx_bias = jnp.zeros((1, 3 * Hp), jnp.float32)
    gx_bias = gx_bias.at[0, 0:H].set(b_ih[0:H] + b_hh[0:H])                  # r (folded)
    gx_bias = gx_bias.at[0, Hp:Hp + H].set(b_ih[H:2 * H] + b_hh[H:2 * H])    # z (folded)
    gx_bias = gx_bias.at[0, 2 * Hp:2 * Hp + H].set(b_ih[2 * H:3 * H])        # n (b_ih only)

    b_hh_n = jnp.zeros((1, Hp), jnp.float32).at[0, :H].set(b_hh[2 * H:3 * H])

    return dict(w_ih_t=w_ih_t, w_hh_t=w_hh_t, gx_bias=gx_bias, b_hh_n=b_hh_n)


# ----------------------------------------------------------------------------
# VMEM budgeting for the time-chunk size.
# ----------------------------------------------------------------------------
def _pick_t_chunk(T, Bp, In_p, Hp, budget_bytes):
    b = 4  # streams stay f32 in HBM/VMEM; bf16 cast happens in-register
    # per time row: x (double-buffered) + gx scratch + out (double-buffered)
    per_row = (2 * Bp * In_p + Bp * 3 * Hp + 2 * Bp * Hp) * b
    # fixed: weight/bias blocks (double-buffered by default) + h scratch
    fixed = (2 * ((In_p + Hp) * 3 * Hp + 3 * Hp + Hp) + Bp * Hp) * b
    t = int(max(1, min(T, (budget_bytes - fixed) // per_row)))
    while T % t:
        t -= 1
    return t


# ----------------------------------------------------------------------------
# Single-layer unidirectional GRU, zero initial hidden state.
# ----------------------------------------------------------------------------
def gru_forward(x, packed, hidden_size, *, matmul_dtype=jnp.float32,
                t_chunk=None, vmem_budget_bytes=24 * 1024 * 1024):
    """x: (T, B, In) float32.  Returns (output (T,B,H), hidden (1,B,H))."""
    T, B, In = x.shape
    H = hidden_size
    Hp = packed["w_hh_t"].shape[0]
    In_p = packed["w_ih_t"].shape[0]
    Bp = _round_up(B, 8)                      # fill a full sublane group

    if Bp != B or In_p != In:
        x = jnp.pad(x, ((0, 0), (0, Bp - B), (0, In_p - In)))

    if t_chunk is None:
        t_chunk = _pick_t_chunk(T, Bp, In_p, Hp, vmem_budget_bytes)
    assert T % t_chunk == 0

    # bounded unroll: <= 8 and a divisor of t_chunk (keeps scheduler visibility
    # without exploding code size / vreg pressure at realistic chunk sizes)
    unroll = min(8, t_chunk)
    while t_chunk % unroll:
        unroll -= 1

    kernel = functools.partial(_gru_kernel, matmul_dtype=matmul_dtype,
                               unroll=unroll)

    out, hid = pl.pallas_call(
        kernel,
        out_shape=(
            jax.ShapeDtypeStruct((T, Bp, Hp), jnp.float32),
            jax.ShapeDtypeStruct((1, Bp, Hp), jnp.float32),
        ),
        grid_spec=pltpu.PrefetchScalarGridSpec(
            num_scalar_prefetch=0,
            grid=(T // t_chunk,),
            in_specs=[
                pl.BlockSpec((t_chunk, Bp, In_p), lambda c: (c, 0, 0)),
                # TODO(synk): single-buffer these grid-invariant weight blocks
                # (pl.Buffered(1) / VMEM-resident spec) once grid > 1 on the
                # 64 MiB-VMEM v7x; here they are fetched once regardless and
                # the spare buffer is accounted for in _pick_t_chunk.
                pl.BlockSpec((In_p, 3 * Hp), lambda c: (0, 0)),
                pl.BlockSpec((1, 3 * Hp), lambda c: (0, 0)),
                pl.BlockSpec((Hp, 3 * Hp), lambda c: (0, 0)),
                pl.BlockSpec((1, Hp), lambda c: (0, 0)),
            ],
            out_specs=[
                pl.BlockSpec((t_chunk, Bp, Hp), lambda c: (c, 0, 0)),
                pl.BlockSpec((1, Bp, Hp), lambda c: (0, 0, 0)),
            ],
            scratch_shapes=[
                pltpu.VMEM((t_chunk * Bp, 3 * Hp), jnp.float32),  # fused gx
                pltpu.VMEM((Bp, Hp), jnp.float32),                # carried h
            ],
        ),
        compiler_params=pltpu.CompilerParams(
            dimension_semantics=("arbitrary",),   # sequential recurrence
            vmem_limit_bytes=32 * 1024 * 1024,
        ),
    )(x, packed["w_ih_t"], packed["gx_bias"], packed["w_hh_t"], packed["b_hh_n"])

    # Strip batch/lane padding.  The padding cannot be kept across layers: the
    # torch-style flat .view in the pyramid reshape mixes batch rows, so it
    # must see the exact (T, B, H) tensor.
    return out[:, :B, :H], hid[:, :B, :H]


# ----------------------------------------------------------------------------
# pGRULayer / EncoderRNN forward glue (pure layout ops stay in JAX)
# ----------------------------------------------------------------------------
def pgru_layer_forward(x, packed, hidden_size, *, matmul_dtype=jnp.float32):
    """x: (T, B, F).  Halves time, doubles features via flat reshape (== torch
    .view on a contiguous tensor), then runs the GRU kernel."""
    T, B, F = x.shape
    if T % 2 != 0:
        T = T - 1
        x = x[:T]
    x = jnp.reshape(x, (T // 2, B, F * 2))
    return gru_forward(x, packed, hidden_size, matmul_dtype=matmul_dtype)


def encoder_rnn_forward(input_seq, input_lengths, params, hidden_size,
                        reduce_dim=1, matmul_dtype=jnp.float32):
    """input_seq: (T, B, D) time-major.  Returns (output, hidden)."""
    if reduce_dim:
        T = input_seq.shape[0]
        n_pairs = len(range(0, T - 1, 2))
        # per-timestep-pair concat along the feature axis (dim=1 of (B, D))
        even = input_seq[0:2 * n_pairs:2]
        odd = input_seq[1:2 * n_pairs:2]
        input_seq = jnp.concatenate([even, odd], axis=-1)   # (T//2, B, 2D)
        input_lengths = input_lengths // 2                  # .div_(2) (unused)

    output, hidden = pgru_layer_forward(input_seq, params["gru1"], hidden_size,
                                        matmul_dtype=matmul_dtype)
    output, hidden = pgru_layer_forward(output, params["gru2"], hidden_size,
                                        matmul_dtype=matmul_dtype)
    output, hidden = pgru_layer_forward(output, params["gru3"], hidden_size,
                                        matmul_dtype=matmul_dtype)
    return output, hidden


# ----------------------------------------------------------------------------
# Deterministic parameter init (PyTorch nn.GRU default: U(-1/sqrt(H), 1/sqrt(H)))
# ----------------------------------------------------------------------------
def init_gru_params(key, in_dim, hidden):
    k = 1.0 / math.sqrt(hidden)
    k1, k2, k3, k4 = jax.random.split(key, 4)
    return dict(
        w_ih=jax.random.uniform(k1, (3 * hidden, in_dim), jnp.float32, -k, k),
        w_hh=jax.random.uniform(k2, (3 * hidden, hidden), jnp.float32, -k, k),
        b_ih=jax.random.uniform(k3, (3 * hidden,), jnp.float32, -k, k),
        b_hh=jax.random.uniform(k4, (3 * hidden,), jnp.float32, -k, k),
    )


def init_encoder_params(key, input_size, hidden_size):
    k1, k2, k3 = jax.random.split(key, 3)
    return dict(
        # pGRU_layer1: GRU(input_size * 2, hidden)
        gru1=init_gru_params(k1, input_size * 2, hidden_size),
        # pGRU_layer2/3: data-consistent input size = hidden * 2 (see TODO above)
        gru2=init_gru_params(k2, hidden_size * 2, hidden_size),
        gru3=init_gru_params(k3, hidden_size * 2, hidden_size),
    )


# ----------------------------------------------------------------------------
# Pure-JAX reference (lax.scan GRU, raw torch-layout weights) for correctness
# ----------------------------------------------------------------------------
def _gru_ref(x, params):
    w_ih, w_hh, b_ih, b_hh = (params["w_ih"], params["w_hh"],
                              params["b_ih"], params["b_hh"])
    H = w_hh.shape[1]
    B = x.shape[1]

    def step(h, xt):
        gx = xt @ w_ih.T + b_ih
        gh = h @ w_hh.T + b_hh
        r = jax.nn.sigmoid(gx[:, :H] + gh[:, :H])
        z = jax.nn.sigmoid(gx[:, H:2 * H] + gh[:, H:2 * H])
        n = jnp.tanh(gx[:, 2 * H:] + r * gh[:, 2 * H:])
        h = (1.0 - z) * n + z * h
        return h, h

    h0 = jnp.zeros((B, H), jnp.float32)
    _, ys = jax.lax.scan(step, h0, x)
    return ys, ys[-1:]


def encoder_rnn_ref(input_seq, input_lengths, params, reduce_dim=1):
    if reduce_dim:
        T = input_seq.shape[0]
        n_pairs = len(range(0, T - 1, 2))
        input_seq = jnp.concatenate(
            [input_seq[0:2 * n_pairs:2], input_seq[1:2 * n_pairs:2]], axis=-1)

    def pgru(x, p):
        T, B, F = x.shape
        if T % 2 != 0:
            x = x[:T - 1]
            T = T - 1
        return _gru_ref(jnp.reshape(x, (T // 2, B, F * 2)), p)

    out, hid = pgru(input_seq, params["gru1"])
    out, hid = pgru(out, params["gru2"])
    out, hid = pgru(out, params["gru3"])
    return out, hid


# ----------------------------------------------------------------------------
if __name__ == "__main__":
    # raw feature dim D, module input_size = 2*D (required by the reduce_dim +
    # pGRU reshape pipeline), hidden_size H
    T, B, D = 32, 2, 8
    input_size = 2 * D
    hidden_size = 32

    key = jax.random.PRNGKey(0)
    k_params, k_x = jax.random.split(key)

    raw_params = init_encoder_params(k_params, input_size, hidden_size)
    packed_params = {name: pack_gru_params(raw_params[name], hidden_size)
                     for name in ("gru1", "gru2", "gru3")}

    input_seq = jax.random.normal(k_x, (T, B, D), dtype=jnp.float32)
    input_lengths = jnp.full((B,), T, dtype=jnp.int32)

    # ---- f32 path (default): tight check against the lax.scan reference ----
    fwd = jax.jit(functools.partial(encoder_rnn_forward,
                                    hidden_size=hidden_size, reduce_dim=1))
    output, hidden = fwd(input_seq, input_lengths, packed_params)
    output = jax.block_until_ready(output)
    hidden = jax.block_until_ready(hidden)

    # shape chain: T=32 --reduce_dim--> 16 --L1--> 8 --L2--> 4 --L3--> 2
    assert output.shape == (T // 16, B, hidden_size), output.shape
    assert hidden.shape == (1, B, hidden_size), hidden.shape

    ref_out, ref_hid = encoder_rnn_ref(input_seq, input_lengths, raw_params)
    assert ref_out.shape == output.shape, (ref_out.shape, output.shape)
    assert jnp.allclose(output, ref_out, atol=5e-5, rtol=5e-5)
    assert jnp.allclose(hidden, ref_hid, atol=5e-5, rtol=5e-5)

    # ---- bf16 matmul-operand path (v6e/v7x MXU rate): loose check ----
    fwd_bf16 = jax.jit(functools.partial(encoder_rnn_forward,
                                         hidden_size=hidden_size, reduce_dim=1,
                                         matmul_dtype=jnp.bfloat16))
    out_bf16, hid_bf16 = fwd_bf16(input_seq, input_lengths, packed_params)
    out_bf16 = jax.block_until_ready(out_bf16)
    hid_bf16 = jax.block_until_ready(hid_bf16)
    assert jnp.allclose(out_bf16, ref_out, atol=5e-2, rtol=5e-2)
    assert jnp.allclose(hid_bf16, ref_hid, atol=5e-2, rtol=5e-2)

    print("KERNEL_OK")
</pallas_src>

<mosaic_0001>
module attributes {stable_mosaic.version = 11 : i64} {
  func.func @_gru_kernel(%arg0: i32, %arg1: memref<8x8x32xf32, #tpu.memory_space<vmem>>, %arg2: memref<32x384xf32, #tpu.memory_space<vmem>>, %arg3: memref<1x384xf32, #tpu.memory_space<vmem>>, %arg4: memref<128x384xf32, #tpu.memory_space<vmem>>, %arg5: memref<1x128xf32, #tpu.memory_space<vmem>>, %arg6: memref<8x8x128xf32, #tpu.memory_space<vmem>>, %arg7: memref<1x8x128xf32, #tpu.memory_space<vmem>>, %arg8: memref<64x384xf32, #tpu.memory_space<vmem>>, %arg9: memref<8x128xf32, #tpu.memory_space<vmem>>) attributes {dimension_semantics = [#tpu.dimension_semantics<arbitrary>], iteration_bounds = array<i64: 1>, scalar_prefetch = 0 : i64, scratch_operands = 2 : i64, tpu.core_type = #tpu.core_type<tc>, window_params = [{transform_indices = @transform_0, window_bounds = array<i64: 8, 8, 32>}, {pipeline_mode = #tpu.pipeline_mode<synchronous>, transform_indices = @transform_1, window_bounds = array<i64: 32, 384>}, {pipeline_mode = #tpu.pipeline_mode<synchronous>, transform_indices = @transform_2, window_bounds = array<i64: 1, 384>}, {pipeline_mode = #tpu.pipeline_mode<synchronous>, transform_indices = @transform_3, window_bounds = array<i64: 128, 384>}, {pipeline_mode = #tpu.pipeline_mode<synchronous>, transform_indices = @transform_4, window_bounds = array<i64: 1, 128>}, {transform_indices = @transform_5, window_bounds = array<i64: 8, 8, 128>}, {pipeline_mode = #tpu.pipeline_mode<synchronous>, transform_indices = @transform_6, window_bounds = array<i64: 1, 8, 128>}]} {
    %c0_i32 = arith.constant 0 : i32
    %0 = arith.cmpi eq, %arg0, %c0_i32 : i32
    %1 = arith.extui %0 : i1 to i32
    %c0_i32_0 = arith.constant 0 : i32
    %2 = arith.cmpi ne, %1, %c0_i32_0 : i32
    scf.if %2 {
      %cst_76 = arith.constant 0.000000e+00 : f32
      %298 = vector.broadcast %cst_76 : f32 to vector<8x128xf32>
      %c0_77 = arith.constant 0 : index
      %c0_78 = arith.constant 0 : index
      %299 = vector.load %arg9[%c0_77, %c0_78] : memref<8x128xf32, #tpu.memory_space<vmem>>, vector<8x128xf32>
      tpu.vector_store %arg9[%c0_77, %c0_78], %298 {strides = array<i32>} : memref<8x128xf32, #tpu.memory_space<vmem>>, vector<8x128xf32>,
    } else {
    }
    %c0 = arith.constant 0 : index
    %c0_1 = arith.constant 0 : index
    %c0_2 = arith.constant 0 : index
    %3 = vector.load %arg1[%c0, %c0_1, %c0_2] : memref<8x8x32xf32, #tpu.memory_space<vmem>>, vector<8x8x32xf32>
    %4 = vector.shape_cast %3 : vector<8x8x32xf32> to vector<64x32xf32>
    %c0_3 = arith.constant 0 : index
    %c0_4 = arith.constant 0 : index
    %5 = vector.load %arg2[%c0_3, %c0_4] : memref<32x384xf32, #tpu.memory_space<vmem>>, vector<32x384xf32>
    %cst = arith.constant dense<0.000000e+00> : vector<64x384xf32>
    %6 = tpu.matmul %4, %5, %cst {dimension_numbers = #tpu.dot_dimension_numbers<[1], [0], [0], [1], [0, 0, 1, 1], [], []>} : vector<64x32xf32>, vector<32x384xf32>, vector<64x384xf32> -> vector<64x384xf32>
    %c0_5 = arith.constant 0 : index
    %c0_6 = arith.constant 0 : index
    %7 = vector.load %arg3[%c0_5, %c0_6] : memref<1x384xf32, #tpu.memory_space<vmem>>, vector<1x384xf32>
    %8 = vector.broadcast %7 : vector<1x384xf32> to vector<64x384xf32>
    %9 = arith.addf %6, %8 : vector<64x384xf32>
    %c0_7 = arith.constant 0 : index
    %c0_8 = arith.constant 0 : index
    %10 = vector.load %arg8[%c0_7, %c0_8] : memref<64x384xf32, #tpu.memory_space<vmem>>, vector<64x384xf32>
    tpu.vector_store %arg8[%c0_7, %c0_8], %9 {strides = array<i32>} : memref<64x384xf32, #tpu.memory_space<vmem>>, vector<64x384xf32>,
    %c0_9 = arith.constant 0 : index
    %c0_10 = arith.constant 0 : index
    %11 = vector.load %arg4[%c0_9, %c0_10] : memref<128x384xf32, #tpu.memory_space<vmem>>, vector<128x384xf32>
    %c0_11 = arith.constant 0 : index
    %c0_12 = arith.constant 0 : index
    %12 = vector.load %arg5[%c0_11, %c0_12] : memref<1x128xf32, #tpu.memory_space<vmem>>, vector<1x128xf32>
    %c0_13 = arith.constant 0 : index
    %c0_14 = arith.constant 0 : index
    %13 = vector.load %arg9[%c0_13, %c0_14] : memref<8x128xf32, #tpu.memory_space<vmem>>, vector<8x128xf32>
    %c0_i32_15 = arith.constant 0 : i32
    %c8_i32 = arith.constant 8 : i32
    %14 = arith.muli %c0_i32_15, %c8_i32 : i32
    %15 = tpu.assume_multiple %14, 8 : i32
    %16 = arith.index_cast %15 : i32 to index
    %c0_16 = arith.constant 0 : index
    %17 = vector.load %arg8[%16, %c0_16] : memref<64x384xf32, #tpu.memory_space<vmem>>, vector<8x384xf32>
    %cst_17 = arith.constant dense<0.000000e+00> : vector<8x384xf32>
    %18 = tpu.matmul %13, %11, %cst_17 {dimension_numbers = #tpu.dot_dimension_numbers<[1], [0], [0], [1], [0, 0, 1, 1], [], []>} : vector<8x128xf32>, vector<128x384xf32>, vector<8x384xf32> -> vector<8x384xf32>
    %19 = vector.extract_strided_slice %17 {offsets = [0, 0], sizes = [8, 128], strides = [1, 1]} : vector<8x384xf32> to vector<8x128xf32>
    %20 = vector.extract_strided_slice %18 {offsets = [0, 0], sizes = [8, 128], strides = [1, 1]} : vector<8x384xf32> to vector<8x128xf32>
    %21 = arith.addf %19, %20 : vector<8x128xf32>
    %22 = arith.negf %21 : vector<8x128xf32>
    %23 = math.exp %22 : vector<8x128xf32>
    %cst_18 = arith.constant 1.000000e+00 : f32
    %24 = vector.broadcast %cst_18 : f32 to vector<8x128xf32>
    %25 = arith.addf %24, %23 : vector<8x128xf32>
    %26 = arith.divf %24, %25 : vector<8x128xf32>
    %27 = vector.extract_strided_slice %17 {offsets = [0, 128], sizes = [8, 128], strides = [1, 1]} : vector<8x384xf32> to vector<8x128xf32>
    %28 = vector.extract_strided_slice %18 {offsets = [0, 128], sizes = [8, 128], strides = [1, 1]} : vector<8x384xf32> to vector<8x128xf32>
    %29 = arith.addf %27, %28 : vector<8x128xf32>
    %30 = arith.negf %29 : vector<8x128xf32>
    %31 = math.exp %30 : vector<8x128xf32>
    %cst_19 = arith.constant 1.000000e+00 : f32
    %32 = vector.broadcast %cst_19 : f32 to vector<8x128xf32>
    %33 = arith.addf %32, %31 : vector<8x128xf32>
    %34 = arith.divf %32, %33 : vector<8x128xf32>
    %35 = vector.extract_strided_slice %17 {offsets = [0, 256], sizes = [8, 128], strides = [1, 1]} : vector<8x384xf32> to vector<8x128xf32>
    %36 = vector.extract_strided_slice %18 {offsets = [0, 256], sizes = [8, 128], strides = [1, 1]} : vector<8x384xf32> to vector<8x128xf32>
    %37 = vector.broadcast %12 : vector<1x128xf32> to vector<8x128xf32>
    %38 = arith.addf %36, %37 : vector<8x128xf32>
    %39 = arith.mulf %26, %38 : vector<8x128xf32>
    %40 = arith.addf %35, %39 : vector<8x128xf32>
    %41 = math.tanh %40 : vector<8x128xf32>
    %42 = arith.subf %13, %41 : vector<8x128xf32>
    %43 = arith.mulf %34, %42 : vector<8x128xf32>
    %44 = arith.addf %41, %43 : vector<8x128xf32>
    %45 = arith.index_cast %c0_i32_15 : i32 to index
    %c0_20 = arith.constant 0 : index
    %c0_21 = arith.constant 0 : index
    %46 = vector.load %arg6[%45, %c0_20, %c0_21] : memref<8x8x128xf32, #tpu.memory_space<vmem>>, vector<1x8x128xf32>
    %47 = vector.shape_cast %46 : vector<1x8x128xf32> to vector<8x128xf32>
    %48 = vector.shape_cast %44 : vector<8x128xf32> to vector<1x8x128xf32>
    tpu.vector_store %arg6[%45, %c0_20, %c0_21], %48 {strides = array<i32>} : memref<8x8x128xf32, #tpu.memory_space<vmem>>, vector<1x8x128xf32>,
    %c1_i32 = arith.constant 1 : i32
    %c8_i32_22 = arith.constant 8 : i32
    %49 = arith.muli %c1_i32, %c8_i32_22 : i32
    %50 = tpu.assume_multiple %49, 8 : i32
    %51 = arith.index_cast %50 : i32 to index
    %c0_23 = arith.constant 0 : index
    %52 = vector.load %arg8[%51, %c0_23] : memref<64x384xf32, #tpu.memory_space<vmem>>, vector<8x384xf32>
    %cst_24 = arith.constant dense<0.000000e+00> : vector<8x384xf32>
    %53 = tpu.matmul %44, %11, %cst_24 {dimension_numbers = #tpu.dot_dimension_numbers<[1], [0], [0], [1], [0, 0, 1, 1], [], []>} : vector<8x128xf32>, vector<128x384xf32>, vector<8x384xf32> -> vector<8x384xf32>
    %54 = vector.extract_strided_slice %52 {offsets = [0, 0], sizes = [8, 128], strides = [1, 1]} : vector<8x384xf32> to vector<8x128xf32>
    %55 = vector.extract_strided_slice %53 {offsets = [0, 0], sizes = [8, 128], strides = [1, 1]} : vector<8x384xf32> to vector<8x128xf32>
    %56 = arith.addf %54, %55 : vector<8x128xf32>
    %57 = arith.negf %56 : vector<8x128xf32>
    %58 = math.exp %57 : vector<8x128xf32>
    %cst_25 = arith.constant 1.000000e+00 : f32
    %59 = vector.broadcast %cst_25 : f32 to vector<8x128xf32>
    %60 = arith.addf %59, %58 : vector<8x128xf32>
    %61 = arith.divf %59, %60 : vector<8x128xf32>
    %62 = vector.extract_strided_slice %52 {offsets = [0, 128], sizes = [8, 128], strides = [1, 1]} : vector<8x384xf32> to vector<8x128xf32>
    %63 = vector.extract_strided_slice %53 {offsets = [0, 128], sizes = [8, 128], strides = [1, 1]} : vector<8x384xf32> to vector<8x128xf32>
    %64 = arith.addf %62, %63 : vector<8x128xf32>
    %65 = arith.negf %64 : vector<8x128xf32>
    %66 = math.exp %65 : vector<8x128xf32>
    %cst_26 = arith.constant 1.000000e+00 : f32
    %67 = vector.broadcast %cst_26 : f32 to vector<8x128xf32>
    %68 = arith.addf %67, %66 : vector<8x128xf32>
    %69 = arith.divf %67, %68 : vector<8x128xf32>
    %70 = vector.extract_strided_slice %52 {offsets = [0, 256], sizes = [8, 128], strides = [1, 1]} : vector<8x384xf32> to vector<8x128xf32>
    %71 = vector.extract_strided_slice %53 {offsets = [0, 256], sizes = [8, 128], strides = [1, 1]} : vector<8x384xf32> to vector<8x128xf32>
    %72 = vector.broadcast %12 : vector<1x128xf32> to vector<8x128xf32>
    %73 = arith.addf %71, %72 : vector<8x128xf32>
    %74 = arith.mulf %61, %73 : vector<8x128xf32>
    %75 = arith.addf %70, %74 : vector<8x128xf32>
    %76 = math.tanh %75 : vector<8x128xf32>
    %77 = arith.subf %44, %76 : vector<8x128xf32>
    %78 = arith.mulf %69, %77 : vector<8x128xf32>
    %79 = arith.addf %76, %78 : vector<8x128xf32>
    %80 = arith.index_cast %c1_i32 : i32 to index
    %c0_27 = arith.constant 0 : index
    %c0_28 = arith.constant 0 : index
    %81 = vector.load %arg6[%80, %c0_27, %c0_28] : memref<8x8x128xf32, #tpu.memory_space<vmem>>, vector<1x8x128xf32>
    %82 = vector.shape_cast %81 : vector<1x8x128xf32> to vector<8x128xf32>
    %83 = vector.shape_cast %79 : vector<8x128xf32> to vector<1x8x128xf32>
    tpu.vector_store %arg6[%80, %c0_27, %c0_28], %83 {strides = array<i32>} : memref<8x8x128xf32, #tpu.memory_space<vmem>>, vector<1x8x128xf32>,
    %c2_i32 = arith.constant 2 : i32
    %c8_i32_29 = arith.constant 8 : i32
    %84 = arith.muli %c2_i32, %c8_i32_29 : i32
    %85 = tpu.assume_multiple %84, 8 : i32
    %86 = arith.index_cast %85 : i32 to index
    %c0_30 = arith.constant 0 : index
    %87 = vector.load %arg8[%86, %c0_30] : memref<64x384xf32, #tpu.memory_space<vmem>>, vector<8x384xf32>
    %cst_31 = arith.constant dense<0.000000e+00> : vector<8x384xf32>
    %88 = tpu.matmul %79, %11, %cst_31 {dimension_numbers = #tpu.dot_dimension_numbers<[1], [0], [0], [1], [0, 0, 1, 1], [], []>} : vector<8x128xf32>, vector<128x384xf32>, vector<8x384xf32> -> vector<8x384xf32>
    %89 = vector.extract_strided_slice %87 {offsets = [0, 0], sizes = [8, 128], strides = [1, 1]} : vector<8x384xf32> to vector<8x128xf32>
    %90 = vector.extract_strided_slice %88 {offsets = [0, 0], sizes = [8, 128], strides = [1, 1]} : vector<8x384xf32> to vector<8x128xf32>
    %91 = arith.addf %89, %90 : vector<8x128xf32>
    %92 = arith.negf %91 : vector<8x128xf32>
    %93 = math.exp %92 : vector<8x128xf32>
    %cst_32 = arith.constant 1.000000e+00 : f32
    %94 = vector.broadcast %cst_32 : f32 to vector<8x128xf32>
    %95 = arith.addf %94, %93 : vector<8x128xf32>
    %96 = arith.divf %94, %95 : vector<8x128xf32>
    %97 = vector.extract_strided_slice %87 {offsets = [0, 128], sizes = [8, 128], strides = [1, 1]} : vector<8x384xf32> to vector<8x128xf32>
    %98 = vector.extract_strided_slice %88 {offsets = [0, 128], sizes = [8, 128], strides = [1, 1]} : vector<8x384xf32> to vector<8x128xf32>
    %99 = arith.addf %97, %98 : vector<8x128xf32>
    %100 = arith.negf %99 : vector<8x128xf32>
    %101 = math.exp %100 : vector<8x128xf32>
    %cst_33 = arith.constant 1.000000e+00 : f32
    %102 = vector.broadcast %cst_33 : f32 to vector<8x128xf32>
    %103 = arith.addf %102, %101 : vector<8x128xf32>
    %104 = arith.divf %102, %103 : vector<8x128xf32>
    %105 = vector.extract_strided_slice %87 {offsets = [0, 256], sizes = [8, 128], strides = [1, 1]} : vector<8x384xf32> to vector<8x128xf32>
    %106 = vector.extract_strided_slice %88 {offsets = [0, 256], sizes = [8, 128], strides = [1, 1]} : vector<8x384xf32> to vector<8x128xf32>
    %107 = vector.broadcast %12 : vector<1x128xf32> to vector<8x128xf32>
    %108 = arith.addf %106, %107 : vector<8x128xf32>
    %109 = arith.mulf %96, %108 : vector<8x128xf32>
    %110 = arith.addf %105, %109 : vector<8x128xf32>
    %111 = math.tanh %110 : vector<8x128xf32>
    %112 = arith.subf %79, %111 : vector<8x128xf32>
    %113 = arith.mulf %104, %112 : vector<8x128xf32>
    %114 = arith.addf %111, %113 : vector<8x128xf32>
    %115 = arith.index_cast %c2_i32 : i32 to index
    %c0_34 = arith.constant 0 : index
    %c0_35 = arith.constant 0 : index
    %116 = vector.load %arg6[%115, %c0_34, %c0_35] : memref<8x8x128xf32, #tpu.memory_space<vmem>>, vector<1x8x128xf32>
    %117 = vector.shape_cast %116 : vector<1x8x128xf32> to vector<8x128xf32>
    %118 = vector.shape_cast %114 : vector<8x128xf32> to vector<1x8x128xf32>
    tpu.vector_store %arg6[%115, %c0_34, %c0_35], %118 {strides = array<i32>} : memref<8x8x128xf32, #tpu.memory_space<vmem>>, vector<1x8x128xf32>,
    %c3_i32 = arith.constant 3 : i32
    %c8_i32_36 = arith.constant 8 : i32
    %119 = arith.muli %c3_i32, %c8_i32_36 : i32
    %120 = tpu.assume_multiple %119, 8 : i32
    %121 = arith.index_cast %120 : i32 to index
    %c0_37 = arith.constant 0 : index
    %122 = vector.load %arg8[%121, %c0_37] : memref<64x384xf32, #tpu.memory_space<vmem>>, vector<8x384xf32>
    %cst_38 = arith.constant dense<0.000000e+00> : vector<8x384xf32>
    %123 = tpu.matmul %114, %11, %cst_38 {dimension_numbers = #tpu.dot_dimension_numbers<[1], [0], [0], [1], [0, 0, 1, 1], [], []>} : vector<8x128xf32>, vector<128x384xf32>, vector<8x384xf32> -> vector<8x384xf32>
    %124 = vector.extract_strided_slice %122 {offsets = [0, 0], sizes = [8, 128], strides = [1, 1]} : vector<8x384xf32> to vector<8x128xf32>
    %125 = vector.extract_strided_slice %123 {offsets = [0, 0], sizes = [8, 128], strides = [1, 1]} : vector<8x384xf32> to vector<8x128xf32>
    %126 = arith.addf %124, %125 : vector<8x128xf32>
    %127 = arith.negf %126 : vector<8x128xf32>
    %128 = math.exp %127 : vector<8x128xf32>
    %cst_39 = arith.constant 1.000000e+00 : f32
    %129 = vector.broadcast %cst_39 : f32 to vector<8x128xf32>
    %130 = arith.addf %129, %128 : vector<8x128xf32>
    %131 = arith.divf %129, %130 : vector<8x128xf32>
    %132 = vector.extract_strided_slice %122 {offsets = [0, 128], sizes = [8, 128], strides = [1, 1]} : vector<8x384xf32> to vector<8x128xf32>
    %133 = vector.extract_strided_slice %123 {offsets = [0, 128], sizes = [8, 128], strides = [1, 1]} : vector<8x384xf32> to vector<8x128xf32>
    %134 = arith.addf %132, %133 : vector<8x128xf32>
    %135 = arith.negf %134 : vector<8x128xf32>
    %136 = math.exp %135 : vector<8x128xf32>
    %cst_40 = arith.constant 1.000000e+00 : f32
    %137 = vector.broadcast %cst_40 : f32 to vector<8x128xf32>
    %138 = arith.addf %137, %136 : vector<8x128xf32>
    %139 = arith.divf %137, %138 : vector<8x128xf32>
    %140 = vector.extract_strided_slice %122 {offsets = [0, 256], sizes = [8, 128], strides = [1, 1]} : vector<8x384xf32> to vector<8x128xf32>
    %141 = vector.extract_strided_slice %123 {offsets = [0, 256], sizes = [8, 128], strides = [1, 1]} : vector<8x384xf32> to vector<8x128xf32>
    %142 = vector.broadcast %12 : vector<1x128xf32> to vector<8x128xf32>
    %143 = arith.addf %141, %142 : vector<8x128xf32>
    %144 = arith.mulf %131, %143 : vector<8x128xf32>
    %145 = arith.addf %140, %144 : vector<8x128xf32>
    %146 = math.tanh %145 : vector<8x128xf32>
    %147 = arith.subf %114, %146 : vector<8x128xf32>
    %148 = arith.mulf %139, %147 : vector<8x128xf32>
    %149 = arith.addf %146, %148 : vector<8x128xf32>
    %150 = arith.index_cast %c3_i32 : i32 to index
    %c0_41 = arith.constant 0 : index
    %c0_42 = arith.constant 0 : index
    %151 = vector.load %arg6[%150, %c0_41, %c0_42] : memref<8x8x128xf32, #tpu.memory_space<vmem>>, vector<1x8x128xf32>
    %152 = vector.shape_cast %151 : vector<1x8x128xf32> to vector<8x128xf32>
    %153 = vector.shape_cast %149 : vector<8x128xf32> to vector<1x8x128xf32>
    tpu.vector_store %arg6[%150, %c0_41, %c0_42], %153 {strides = array<i32>} : memref<8x8x128xf32, #tpu.memory_space<vmem>>, vector<1x8x128xf32>,
    %c4_i32 = arith.constant 4 : i32
    %c8_i32_43 = arith.constant 8 : i32
    %154 = arith.muli %c4_i32, %c8_i32_43 : i32
    %155 = tpu.assume_multiple %154, 8 : i32
    %156 = arith.index_cast %155 : i32 to index
    %c0_44 = arith.constant 0 : index
    %157 = vector.load %arg8[%156, %c0_44] : memref<64x384xf32, #tpu.memory_space<vmem>>, vector<8x384xf32>
    %cst_45 = arith.constant dense<0.000000e+00> : vector<8x384xf32>
    %158 = tpu.matmul %149, %11, %cst_45 {dimension_numbers = #tpu.dot_dimension_numbers<[1], [0], [0], [1], [0, 0, 1, 1], [], []>} : vector<8x128xf32>, vector<128x384xf32>, vector<8x384xf32> -> vector<8x384xf32>
    %159 = vector.extract_strided_slice %157 {offsets = [0, 0], sizes = [8, 128], strides = [1, 1]} : vector<8x384xf32> to vector<8x128xf32>
    %160 = vector.extract_strided_slice %158 {offsets = [0, 0], sizes = [8, 128], strides = [1, 1]} : vector<8x384xf32> to vector<8x128xf32>
    %161 = arith.addf %159, %160 : vector<8x128xf32>
    %162 = arith.negf %161 : vector<8x128xf32>
    %163 = math.exp %162 : vector<8x128xf32>
    %cst_46 = arith.constant 1.000000e+00 : f32
    %164 = vector.broadcast %cst_46 : f32 to vector<8x128xf32>
    %165 = arith.addf %164, %163 : vector<8x128xf32>
    %166 = arith.divf %164, %165 : vector<8x128xf32>
    %167 = vector.extract_strided_slice %157 {offsets = [0, 128], sizes = [8, 128], strides = [1, 1]} : vector<8x384xf32> to vector<8x128xf32>
    %168 = vector.extract_strided_slice %158 {offsets = [0, 128], sizes = [8, 128], strides = [1, 1]} : vector<8x384xf32> to vector<8x128xf32>
    %169 = arith.addf %167, %168 : vector<8x128xf32>
    %170 = arith.negf %169 : vector<8x128xf32>
    %171 = math.exp %170 : vector<8x128xf32>
    %cst_47 = arith.constant 1.000000e+00 : f32
    %172 = vector.broadcast %cst_47 : f32 to vector<8x128xf32>
    %173 = arith.addf %172, %171 : vector<8x128xf32>
    %174 = arith.divf %172, %173 : vector<8x128xf32>
    %175 = vector.extract_strided_slice %157 {offsets = [0, 256], sizes = [8, 128], strides = [1, 1]} : vector<8x384xf32> to vector<8x128xf32>
    %176 = vector.extract_strided_slice %158 {offsets = [0, 256], sizes = [8, 128], strides = [1, 1]} : vector<8x384xf32> to vector<8x128xf32>
    %177 = vector.broadcast %12 : vector<1x128xf32> to vector<8x128xf32>
    %178 = arith.addf %176, %177 : vector<8x128xf32>
    %179 = arith.mulf %166, %178 : vector<8x128xf32>
    %180 = arith.addf %175, %179 : vector<8x128xf32>
    %181 = math.tanh %180 : vector<8x128xf32>
    %182 = arith.subf %149, %181 : vector<8x128xf32>
    %183 = arith.mulf %174, %182 : vector<8x128xf32>
    %184 = arith.addf %181, %183 : vector<8x128xf32>
    %185 = arith.index_cast %c4_i32 : i32 to index
    %c0_48 = arith.constant 0 : index
    %c0_49 = arith.constant 0 : index
    %186 = vector.load %arg6[%185, %c0_48, %c0_49] : memref<8x8x128xf32, #tpu.memory_space<vmem>>, vector<1x8x128xf32>
    %187 = vector.shape_cast %186 : vector<1x8x128xf32> to vector<8x128xf32>
    %188 = vector.shape_cast %184 : vector<8x128xf32> to vector<1x8x128xf32>
    tpu.vector_store %arg6[%185, %c0_48, %c0_49], %188 {strides = array<i32>} : memref<8x8x128xf32, #tpu.memory_space<vmem>>, vector<1x8x128xf32>,
    %c5_i32 = arith.constant 5 : i32
    %c8_i32_50 = arith.constant 8 : i32
    %189 = arith.muli %c5_i32, %c8_i32_50 : i32
    %190 = tpu.assume_multiple %189, 8 : i32
    %191 = arith.index_cast %190 : i32 to index
    %c0_51 = arith.constant 0 : index
    %192 = vector.load %arg8[%191, %c0_51] : memref<64x384xf32, #tpu.memory_space<vmem>>, vector<8x384xf32>
    %cst_52 = arith.constant dense<0.000000e+00> : vector<8x384xf32>
    %193 = tpu.matmul %184, %11, %cst_52 {dimension_numbers = #tpu.dot_dimension_numbers<[1], [0], [0], [1], [0, 0, 1, 1], [], []>} : vector<8x128xf32>, vector<128x384xf32>, vector<8x384xf32> -> vector<8x384xf32>
    %194 = vector.extract_strided_slice %192 {offsets = [0, 0], sizes = [8, 128], strides = [1, 1]} : vector<8x384xf32> to vector<8x128xf32>
    %195 = vector.extract_strided_slice %193 {offsets = [0, 0], sizes = [8, 128], strides = [1, 1]} : vector<8x384xf32> to vector<8x128xf32>
    %196 = arith.addf %194, %195 : vector<8x128xf32>
    %197 = arith.negf %196 : vector<8x128xf32>
    %198 = math.exp %197 : vector<8x128xf32>
    %cst_53 = arith.constant 1.000000e+00 : f32
    %199 = vector.broadcast %cst_53 : f32 to vector<8x128xf32>
    %200 = arith.addf %199, %198 : vector<8x128xf32>
    %201 = arith.divf %199, %200 : vector<8x128xf32>
    %202 = vector.extract_strided_slice %192 {offsets = [0, 128], sizes = [8, 128], strides = [1, 1]} : vector<8x384xf32> to vector<8x128xf32>
    %203 = vector.extract_strided_slice %193 {offsets = [0, 128], sizes = [8, 128], strides = [1, 1]} : vector<8x384xf32> to vector<8x128xf32>
    %204 = arith.addf %202, %203 : vector<8x128xf32>
    %205 = arith.negf %204 : vector<8x128xf32>
    %206 = math.exp %205 : vector<8x128xf32>
    %cst_54 = arith.constant 1.000000e+00 : f32
    %207 = vector.broadcast %cst_54 : f32 to vector<8x128xf32>
    %208 = arith.addf %207, %206 : vector<8x128xf32>
    %209 = arith.divf %207, %208 : vector<8x128xf32>
    %210 = vector.extract_strided_slice %192 {offsets = [0, 256], sizes = [8, 128], strides = [1, 1]} : vector<8x384xf32> to vector<8x128xf32>
    %211 = vector.extract_strided_slice %193 {offsets = [0, 256], sizes = [8, 128], strides = [1, 1]} : vector<8x384xf32> to vector<8x128xf32>
    %212 = vector.broadcast %12 : vector<1x128xf32> to vector<8x128xf32>
    %213 = arith.addf %211, %212 : vector<8x128xf32>
    %214 = arith.mulf %201, %213 : vector<8x128xf32>
    %215 = arith.addf %210, %214 : vector<8x128xf32>
    %216 = math.tanh %215 : vector<8x128xf32>
    %217 = arith.subf %184, %216 : vector<8x128xf32>
    %218 = arith.mulf %209, %217 : vector<8x128xf32>
    %219 = arith.addf %216, %218 : vector<8x128xf32>
    %220 = arith.index_cast %c5_i32 : i32 to index
    %c0_55 = arith.constant 0 : index
    %c0_56 = arith.constant 0 : index
    %221 = vector.load %arg6[%220, %c0_55, %c0_56] : memref<8x8x128xf32, #tpu.memory_space<vmem>>, vector<1x8x128xf32>
    %222 = vector.shape_cast %221 : vector<1x8x128xf32> to vector<8x128xf32>
    %223 = vector.shape_cast %219 : vector<8x128xf32> to vector<1x8x128xf32>
    tpu.vector_store %arg6[%220, %c0_55, %c0_56], %223 {strides = array<i32>} : memref<8x8x128xf32, #tpu.memory_space<vmem>>, vector<1x8x128xf32>,
    %c6_i32 = arith.constant 6 : i32
    %c8_i32_57 = arith.constant 8 : i32
    %224 = arith.muli %c6_i32, %c8_i32_57 : i32
    %225 = tpu.assume_multiple %224, 8 : i32
    %226 = arith.index_cast %225 : i32 to index
    %c0_58 = arith.constant 0 : index
    %227 = vector.load %arg8[%226, %c0_58] : memref<64x384xf32, #tpu.memory_space<vmem>>, vector<8x384xf32>
    %cst_59 = arith.constant dense<0.000000e+00> : vector<8x384xf32>
    %228 = tpu.matmul %219, %11, %cst_59 {dimension_numbers = #tpu.dot_dimension_numbers<[1], [0], [0], [1], [0, 0, 1, 1], [], []>} : vector<8x128xf32>, vector<128x384xf32>, vector<8x384xf32> -> vector<8x384xf32>
    %229 = vector.extract_strided_slice %227 {offsets = [0, 0], sizes = [8, 128], strides = [1, 1]} : vector<8x384xf32> to vector<8x128xf32>
    %230 = vector.extract_strided_slice %228 {offsets = [0, 0], sizes = [8, 128], strides = [1, 1]} : vector<8x384xf32> to vector<8x128xf32>
    %231 = arith.addf %229, %230 : vector<8x128xf32>
    %232 = arith.negf %231 : vector<8x128xf32>
    %233 = math.exp %232 : vector<8x128xf32>
    %cst_60 = arith.constant 1.000000e+00 : f32
    %234 = vector.broadcast %cst_60 : f32 to vector<8x128xf32>
    %235 = arith.addf %234, %233 : vector<8x128xf32>
    %236 = arith.divf %234, %235 : vector<8x128xf32>
    %237 = vector.extract_strided_slice %227 {offsets = [0, 128], sizes = [8, 128], strides = [1, 1]} : vector<8x384xf32> to vector<8x128xf32>
    %238 = vector.extract_strided_slice %228 {offsets = [0, 128], sizes = [8, 128], strides = [1, 1]} : vector<8x384xf32> to vector<8x128xf32>
    %239 = arith.addf %237, %238 : vector<8x128xf32>
    %240 = arith.negf %239 : vector<8x128xf32>
    %241 = math.exp %240 : vector<8x128xf32>
    %cst_61 = arith.constant 1.000000e+00 : f32
    %242 = vector.broadcast %cst_61 : f32 to vector<8x128xf32>
    %243 = arith.addf %242, %241 : vector<8x128xf32>
    %244 = arith.divf %242, %243 : vector<8x128xf32>
    %245 = vector.extract_strided_slice %227 {offsets = [0, 256], sizes = [8, 128], strides = [1, 1]} : vector<8x384xf32> to vector<8x128xf32>
    %246 = vector.extract_strided_slice %228 {offsets = [0, 256], sizes = [8, 128], strides = [1, 1]} : vector<8x384xf32> to vector<8x128xf32>
    %247 = vector.broadcast %12 : vector<1x128xf32> to vector<8x128xf32>
    %248 = arith.addf %246, %247 : vector<8x128xf32>
    %249 = arith.mulf %236, %248 : vector<8x128xf32>
    %250 = arith.addf %245, %249 : vector<8x128xf32>
    %251 = math.tanh %250 : vector<8x128xf32>
    %252 = arith.subf %219, %251 : vector<8x128xf32>
    %253 = arith.mulf %244, %252 : vector<8x128xf32>
    %254 = arith.addf %251, %253 : vector<8x128xf32>
    %255 = arith.index_cast %c6_i32 : i32 to index
    %c0_62 = arith.constant 0 : index
    %c0_63 = arith.constant 0 : index
    %256 = vector.load %arg6[%255, %c0_62, %c0_63] : memref<8x8x128xf32, #tpu.memory_space<vmem>>, vector<1x8x128xf32>
    %257 = vector.shape_cast %256 : vector<1x8x128xf32> to vector<8x128xf32>
    %258 = vector.shape_cast %254 : vector<8x128xf32> to vector<1x8x128xf32>
    tpu.vector_store %arg6[%255, %c0_62, %c0_63], %258 {strides = array<i32>} : memref<8x8x128xf32, #tpu.memory_space<vmem>>, vector<1x8x128xf32>,
    %c7_i32 = arith.constant 7 : i32
    %c8_i32_64 = arith.constant 8 : i32
    %259 = arith.muli %c7_i32, %c8_i32_64 : i32
    %260 = tpu.assume_multiple %259, 8 : i32
    %261 = arith.index_cast %260 : i32 to index
    %c0_65 = arith.constant 0 : index
    %262 = vector.load %arg8[%261, %c0_65] : memref<64x384xf32, #tpu.memory_space<vmem>>, vector<8x384xf32>
    %cst_66 = arith.constant dense<0.000000e+00> : vector<8x384xf32>
    %263 = tpu.matmul %254, %11, %cst_66 {dimension_numbers = #tpu.dot_dimension_numbers<[1], [0], [0], [1], [0, 0, 1, 1], [], []>} : vector<8x128xf32>, vector<128x384xf32>, vector<8x384xf32> -> vector<8x384xf32>
    %264 = vector.extract_strided_slice %262 {offsets = [0, 0], sizes = [8, 128], strides = [1, 1]} : vector<8x384xf32> to vector<8x128xf32>
    %265 = vector.extract_strided_slice %263 {offsets = [0, 0], sizes = [8, 128], strides = [1, 1]} : vector<8x384xf32> to vector<8x128xf32>
    %266 = arith.addf %264, %265 : vector<8x128xf32>
    %267 = arith.negf %266 : vector<8x128xf32>
    %268 = math.exp %267 : vector<8x128xf32>
    %cst_67 = arith.constant 1.000000e+00 : f32
    %269 = vector.broadcast %cst_67 : f32 to vector<8x128xf32>
    %270 = arith.addf %269, %268 : vector<8x128xf32>
    %271 = arith.divf %269, %270 : vector<8x128xf32>
    %272 = vector.extract_strided_slice %262 {offsets = [0, 128], sizes = [8, 128], strides = [1, 1]} : vector<8x384xf32> to vector<8x128xf32>
    %273 = vector.extract_strided_slice %263 {offsets = [0, 128], sizes = [8, 128], strides = [1, 1]} : vector<8x384xf32> to vector<8x128xf32>
    %274 = arith.addf %272, %273 : vector<8x128xf32>
    %275 = arith.negf %274 : vector<8x128xf32>
    %276 = math.exp %275 : vector<8x128xf32>
    %cst_68 = arith.constant 1.000000e+00 : f32
    %277 = vector.broadcast %cst_68 : f32 to vector<8x128xf32>
    %278 = arith.addf %277, %276 : vector<8x128xf32>
    %279 = arith.divf %277, %278 : vector<8x128xf32>
    %280 = vector.extract_strided_slice %262 {offsets = [0, 256], sizes = [8, 128], strides = [1, 1]} : vector<8x384xf32> to vector<8x128xf32>
    %281 = vector.extract_strided_slice %263 {offsets = [0, 256], sizes = [8, 128], strides = [1, 1]} : vector<8x384xf32> to vector<8x128xf32>
    %282 = vector.broadcast %12 : vector<1x128xf32> to vector<8x128xf32>
    %283 = arith.addf %281, %282 : vector<8x128xf32>
    %284 = arith.mulf %271, %283 : vector<8x128xf32>
    %285 = arith.addf %280, %284 : vector<8x128xf32>
    %286 = math.tanh %285 : vector<8x128xf32>
    %287 = arith.subf %254, %286 : vector<8x128xf32>
    %288 = arith.mulf %279, %287 : vector<8x128xf32>
    %289 = arith.addf %286, %288 : vector<8x128xf32>
    %290 = arith.index_cast %c7_i32 : i32 to index
    %c0_69 = arith.constant 0 : index
    %c0_70 = arith.constant 0 : index
    %291 = vector.load %arg6[%290, %c0_69, %c0_70] : memref<8x8x128xf32, #tpu.memory_space<vmem>>, vector<1x8x128xf32>
    %292 = vector.shape_cast %291 : vector<1x8x128xf32> to vector<8x128xf32>
    %293 = vector.shape_cast %289 : vector<8x128xf32> to vector<1x8x128xf32>
    tpu.vector_store %arg6[%290, %c0_69, %c0_70], %293 {strides = array<i32>} : memref<8x8x128xf32, #tpu.memory_space<vmem>>, vector<1x8x128xf32>,
    %c8_i32_71 = arith.constant 8 : i32
    %c0_72 = arith.constant 0 : index
    %c0_73 = arith.constant 0 : index
    %294 = vector.load %arg9[%c0_72, %c0_73] : memref<8x128xf32, #tpu.memory_space<vmem>>, vector<8x128xf32>
    tpu.vector_store %arg9[%c0_72, %c0_73], %289 {strides = array<i32>} : memref<8x128xf32, #tpu.memory_space<vmem>>, vector<8x128xf32>,
    %c0_i32_74 = arith.constant 0 : i32
    %295 = arith.cmpi eq, %arg0, %c0_i32_74 : i32
    %296 = arith.extui %295 : i1 to i32
    %c0_i32_75 = arith.constant 0 : i32
    %297 = arith.cmpi ne, %296, %c0_i32_75 : i32
    scf.if %297 {
      %c0_76 = arith.constant 0 : index
      %c0_77 = arith.constant 0 : index
      %c0_78 = arith.constant 0 : index
      %298 = vector.load %arg7[%c0_76, %c0_77, %c0_78] : memref<1x8x128xf32, #tpu.memory_space<vmem>>, vector<1x8x128xf32>
      %299 = vector.shape_cast %298 : vector<1x8x128xf32> to vector<8x128xf32>
      %300 = vector.shape_cast %289 : vector<8x128xf32> to vector<1x8x128xf32>
      tpu.vector_store %arg7[%c0_76, %c0_77, %c0_78], %300 {strides = array<i32>} : memref<1x8x128xf32, #tpu.memory_space<vmem>>, vector<1x8x128xf32>,
    } else {
    }
    return
  }
  func.func @transform_0(%arg0: i32) -> (i32, i32, i32) {
    %c0_i32 = arith.constant 0 : i32
    %c0_i32_0 = arith.constant 0 : i32
    %c0_i32_1 = arith.constant 0 : i32
    return %arg0, %c0_i32, %c0_i32_0 : i32, i32, i32
  }
  func.func @transform_1(%arg0: i32) -> (i32, i32) {
    %c0_i32 = arith.constant 0 : i32
    %c0_i32_0 = arith.constant 0 : i32
    %c0_i32_1 = arith.constant 0 : i32
    return %c0_i32, %c0_i32_0 : i32, i32
  }
  func.func @transform_2(%arg0: i32) -> (i32, i32) {
    %c0_i32 = arith.constant 0 : i32
    %c0_i32_0 = arith.constant 0 : i32
    %c0_i32_1 = arith.constant 0 : i32
    return %c0_i32, %c0_i32_0 : i32, i32
  }
  func.func @transform_3(%arg0: i32) -> (i32, i32) {
    %c0_i32 = arith.constant 0 : i32
    %c0_i32_0 = arith.constant 0 : i32
    %c0_i32_1 = arith.constant 0 : i32
    return %c0_i32, %c0_i32_0 : i32, i32
  }
  func.func @transform_4(%arg0: i32) -> (i32, i32) {
    %c0_i32 = arith.constant 0 : i32
    %c0_i32_0 = arith.constant 0 : i32
    %c0_i32_1 = arith.constant 0 : i32
    return %c0_i32, %c0_i32_0 : i32, i32
  }
  func.func @transform_5(%arg0: i32) -> (i32, i32, i32) {
    %c0_i32 = arith.constant 0 : i32
    %c0_i32_0 = arith.constant 0 : i32
    %c0_i32_1 = arith.constant 0 : i32
    return %arg0, %c0_i32, %c0_i32_0 : i32, i32, i32
  }
  func.func @transform_6(%arg0: i32) -> (i32, i32, i32) {
    %c0_i32 = arith.constant 0 : i32
    %c0_i32_0 = arith.constant 0 : i32
    %c0_i32_1 = arith.constant 0 : i32
    %c0_i32_2 = arith.constant 0 : i32
    return %c0_i32, %c0_i32_0, %c0_i32_1 : i32, i32, i32
  }
}

module attributes {stable_mosaic.version = 11 : i64} {
  func.func @_gru_kernel(%arg0: i32, %arg1: memref<4x8x64xf32, #tpu.memory_space<vmem>>, %arg2: memref<64x384xf32, #tpu.memory_space<vmem>>, %arg3: memref<1x384xf32, #tpu.memory_space<vmem>>, %arg4: memref<128x384xf32, #tpu.memory_space<vmem>>, %arg5: memref<1x128xf32, #tpu.memory_space<vmem>>, %arg6: memref<4x8x128xf32, #tpu.memory_space<vmem>>, %arg7: memref<1x8x128xf32, #tpu.memory_space<vmem>>, %arg8: memref<32x384xf32, #tpu.memory_space<vmem>>, %arg9: memref<8x128xf32, #tpu.memory_space<vmem>>) attributes {dimension_semantics = [#tpu.dimension_semantics<arbitrary>], iteration_bounds = array<i64: 1>, scalar_prefetch = 0 : i64, scratch_operands = 2 : i64, tpu.core_type = #tpu.core_type<tc>, window_params = [{transform_indices = @transform_0, window_bounds = array<i64: 4, 8, 64>}, {pipeline_mode = #tpu.pipeline_mode<synchronous>, transform_indices = @transform_1, window_bounds = array<i64: 64, 384>}, {pipeline_mode = #tpu.pipeline_mode<synchronous>, transform_indices = @transform_2, window_bounds = array<i64: 1, 384>}, {pipeline_mode = #tpu.pipeline_mode<synchronous>, transform_indices = @transform_3, window_bounds = array<i64: 128, 384>}, {pipeline_mode = #tpu.pipeline_mode<synchronous>, transform_indices = @transform_4, window_bounds = array<i64: 1, 128>}, {transform_indices = @transform_5, window_bounds = array<i64: 4, 8, 128>}, {pipeline_mode = #tpu.pipeline_mode<synchronous>, transform_indices = @transform_6, window_bounds = array<i64: 1, 8, 128>}]} {
    %c0_i32 = arith.constant 0 : i32
    %0 = arith.cmpi eq, %arg0, %c0_i32 : i32
    %1 = arith.extui %0 : i1 to i32
    %c0_i32_0 = arith.constant 0 : i32
    %2 = arith.cmpi ne, %1, %c0_i32_0 : i32
    scf.if %2 {
      %cst_47 = arith.constant 0.000000e+00 : f32
      %158 = vector.broadcast %cst_47 : f32 to vector<8x128xf32>
      %c0_48 = arith.constant 0 : index
      %c0_49 = arith.constant 0 : index
      %159 = vector.load %arg9[%c0_48, %c0_49] : memref<8x128xf32, #tpu.memory_space<vmem>>, vector<8x128xf32>
      tpu.vector_store %arg9[%c0_48, %c0_49], %158 {strides = array<i32>} : memref<8x128xf32, #tpu.memory_space<vmem>>, vector<8x128xf32>,
    } else {
    }
    %c0 = arith.constant 0 : index
    %c0_1 = arith.constant 0 : index
    %c0_2 = arith.constant 0 : index
    %3 = vector.load %arg1[%c0, %c0_1, %c0_2] : memref<4x8x64xf32, #tpu.memory_space<vmem>>, vector<4x8x64xf32>
    %4 = vector.shape_cast %3 : vector<4x8x64xf32> to vector<32x64xf32>
    %c0_3 = arith.constant 0 : index
    %c0_4 = arith.constant 0 : index
    %5 = vector.load %arg2[%c0_3, %c0_4] : memref<64x384xf32, #tpu.memory_space<vmem>>, vector<64x384xf32>
    %cst = arith.constant dense<0.000000e+00> : vector<32x384xf32>
    %6 = tpu.matmul %4, %5, %cst {dimension_numbers = #tpu.dot_dimension_numbers<[1], [0], [0], [1], [0, 0, 1, 1], [], []>} : vector<32x64xf32>, vector<64x384xf32>, vector<32x384xf32> -> vector<32x384xf32>
    %c0_5 = arith.constant 0 : index
    %c0_6 = arith.constant 0 : index
    %7 = vector.load %arg3[%c0_5, %c0_6] : memref<1x384xf32, #tpu.memory_space<vmem>>, vector<1x384xf32>
    %8 = vector.broadcast %7 : vector<1x384xf32> to vector<32x384xf32>
    %9 = arith.addf %6, %8 : vector<32x384xf32>
    %c0_7 = arith.constant 0 : index
    %c0_8 = arith.constant 0 : index
    %10 = vector.load %arg8[%c0_7, %c0_8] : memref<32x384xf32, #tpu.memory_space<vmem>>, vector<32x384xf32>
    tpu.vector_store %arg8[%c0_7, %c0_8], %9 {strides = array<i32>} : memref<32x384xf32, #tpu.memory_space<vmem>>, vector<32x384xf32>,
    %c0_9 = arith.constant 0 : index
    %c0_10 = arith.constant 0 : index
    %11 = vector.load %arg4[%c0_9, %c0_10] : memref<128x384xf32, #tpu.memory_space<vmem>>, vector<128x384xf32>
    %c0_11 = arith.constant 0 : index
    %c0_12 = arith.constant 0 : index
    %12 = vector.load %arg5[%c0_11, %c0_12] : memref<1x128xf32, #tpu.memory_space<vmem>>, vector<1x128xf32>
    %c0_13 = arith.constant 0 : index
    %c0_14 = arith.constant 0 : index
    %13 = vector.load %arg9[%c0_13, %c0_14] : memref<8x128xf32, #tpu.memory_space<vmem>>, vector<8x128xf32>
    %c0_i32_15 = arith.constant 0 : i32
    %c8_i32 = arith.constant 8 : i32
    %14 = arith.muli %c0_i32_15, %c8_i32 : i32
    %15 = tpu.assume_multiple %14, 8 : i32
    %16 = arith.index_cast %15 : i32 to index
    %c0_16 = arith.constant 0 : index
    %17 = vector.load %arg8[%16, %c0_16] : memref<32x384xf32, #tpu.memory_space<vmem>>, vector<8x384xf32>
    %cst_17 = arith.constant dense<0.000000e+00> : vector<8x384xf32>
    %18 = tpu.matmul %13, %11, %cst_17 {dimension_numbers = #tpu.dot_dimension_numbers<[1], [0], [0], [1], [0, 0, 1, 1], [], []>} : vector<8x128xf32>, vector<128x384xf32>, vector<8x384xf32> -> vector<8x384xf32>
    %19 = vector.extract_strided_slice %17 {offsets = [0, 0], sizes = [8, 128], strides = [1, 1]} : vector<8x384xf32> to vector<8x128xf32>
    %20 = vector.extract_strided_slice %18 {offsets = [0, 0], sizes = [8, 128], strides = [1, 1]} : vector<8x384xf32> to vector<8x128xf32>
    %21 = arith.addf %19, %20 : vector<8x128xf32>
    %22 = arith.negf %21 : vector<8x128xf32>
    %23 = math.exp %22 : vector<8x128xf32>
    %cst_18 = arith.constant 1.000000e+00 : f32
    %24 = vector.broadcast %cst_18 : f32 to vector<8x128xf32>
    %25 = arith.addf %24, %23 : vector<8x128xf32>
    %26 = arith.divf %24, %25 : vector<8x128xf32>
    %27 = vector.extract_strided_slice %17 {offsets = [0, 128], sizes = [8, 128], strides = [1, 1]} : vector<8x384xf32> to vector<8x128xf32>
    %28 = vector.extract_strided_slice %18 {offsets = [0, 128], sizes = [8, 128], strides = [1, 1]} : vector<8x384xf32> to vector<8x128xf32>
    %29 = arith.addf %27, %28 : vector<8x128xf32>
    %30 = arith.negf %29 : vector<8x128xf32>
    %31 = math.exp %30 : vector<8x128xf32>
    %cst_19 = arith.constant 1.000000e+00 : f32
    %32 = vector.broadcast %cst_19 : f32 to vector<8x128xf32>
    %33 = arith.addf %32, %31 : vector<8x128xf32>
    %34 = arith.divf %32, %33 : vector<8x128xf32>
    %35 = vector.extract_strided_slice %17 {offsets = [0, 256], sizes = [8, 128], strides = [1, 1]} : vector<8x384xf32> to vector<8x128xf32>
    %36 = vector.extract_strided_slice %18 {offsets = [0, 256], sizes = [8, 128], strides = [1, 1]} : vector<8x384xf32> to vector<8x128xf32>
    %37 = vector.broadcast %12 : vector<1x128xf32> to vector<8x128xf32>
    %38 = arith.addf %36, %37 : vector<8x128xf32>
    %39 = arith.mulf %26, %38 : vector<8x128xf32>
    %40 = arith.addf %35, %39 : vector<8x128xf32>
    %41 = math.tanh %40 : vector<8x128xf32>
    %42 = arith.subf %13, %41 : vector<8x128xf32>
    %43 = arith.mulf %34, %42 : vector<8x128xf32>
    %44 = arith.addf %41, %43 : vector<8x128xf32>
    %45 = arith.index_cast %c0_i32_15 : i32 to index
    %c0_20 = arith.constant 0 : index
    %c0_21 = arith.constant 0 : index
    %46 = vector.load %arg6[%45, %c0_20, %c0_21] : memref<4x8x128xf32, #tpu.memory_space<vmem>>, vector<1x8x128xf32>
    %47 = vector.shape_cast %46 : vector<1x8x128xf32> to vector<8x128xf32>
    %48 = vector.shape_cast %44 : vector<8x128xf32> to vector<1x8x128xf32>
    tpu.vector_store %arg6[%45, %c0_20, %c0_21], %48 {strides = array<i32>} : memref<4x8x128xf32, #tpu.memory_space<vmem>>, vector<1x8x128xf32>,
    %c1_i32 = arith.constant 1 : i32
    %c8_i32_22 = arith.constant 8 : i32
    %49 = arith.muli %c1_i32, %c8_i32_22 : i32
    %50 = tpu.assume_multiple %49, 8 : i32
    %51 = arith.index_cast %50 : i32 to index
    %c0_23 = arith.constant 0 : index
    %52 = vector.load %arg8[%51, %c0_23] : memref<32x384xf32, #tpu.memory_space<vmem>>, vector<8x384xf32>
    %cst_24 = arith.constant dense<0.000000e+00> : vector<8x384xf32>
    %53 = tpu.matmul %44, %11, %cst_24 {dimension_numbers = #tpu.dot_dimension_numbers<[1], [0], [0], [1], [0, 0, 1, 1], [], []>} : vector<8x128xf32>, vector<128x384xf32>, vector<8x384xf32> -> vector<8x384xf32>
    %54 = vector.extract_strided_slice %52 {offsets = [0, 0], sizes = [8, 128], strides = [1, 1]} : vector<8x384xf32> to vector<8x128xf32>
    %55 = vector.extract_strided_slice %53 {offsets = [0, 0], sizes = [8, 128], strides = [1, 1]} : vector<8x384xf32> to vector<8x128xf32>
    %56 = arith.addf %54, %55 : vector<8x128xf32>
    %57 = arith.negf %56 : vector<8x128xf32>
    %58 = math.exp %57 : vector<8x128xf32>
    %cst_25 = arith.constant 1.000000e+00 : f32
    %59 = vector.broadcast %cst_25 : f32 to vector<8x128xf32>
    %60 = arith.addf %59, %58 : vector<8x128xf32>
    %61 = arith.divf %59, %60 : vector<8x128xf32>
    %62 = vector.extract_strided_slice %52 {offsets = [0, 128], sizes = [8, 128], strides = [1, 1]} : vector<8x384xf32> to vector<8x128xf32>
    %63 = vector.extract_strided_slice %53 {offsets = [0, 128], sizes = [8, 128], strides = [1, 1]} : vector<8x384xf32> to vector<8x128xf32>
    %64 = arith.addf %62, %63 : vector<8x128xf32>
    %65 = arith.negf %64 : vector<8x128xf32>
    %66 = math.exp %65 : vector<8x128xf32>
    %cst_26 = arith.constant 1.000000e+00 : f32
    %67 = vector.broadcast %cst_26 : f32 to vector<8x128xf32>
    %68 = arith.addf %67, %66 : vector<8x128xf32>
    %69 = arith.divf %67, %68 : vector<8x128xf32>
    %70 = vector.extract_strided_slice %52 {offsets = [0, 256], sizes = [8, 128], strides = [1, 1]} : vector<8x384xf32> to vector<8x128xf32>
    %71 = vector.extract_strided_slice %53 {offsets = [0, 256], sizes = [8, 128], strides = [1, 1]} : vector<8x384xf32> to vector<8x128xf32>
    %72 = vector.broadcast %12 : vector<1x128xf32> to vector<8x128xf32>
    %73 = arith.addf %71, %72 : vector<8x128xf32>
    %74 = arith.mulf %61, %73 : vector<8x128xf32>
    %75 = arith.addf %70, %74 : vector<8x128xf32>
    %76 = math.tanh %75 : vector<8x128xf32>
    %77 = arith.subf %44, %76 : vector<8x128xf32>
    %78 = arith.mulf %69, %77 : vector<8x128xf32>
    %79 = arith.addf %76, %78 : vector<8x128xf32>
    %80 = arith.index_cast %c1_i32 : i32 to index
    %c0_27 = arith.constant 0 : index
    %c0_28 = arith.constant 0 : index
    %81 = vector.load %arg6[%80, %c0_27, %c0_28] : memref<4x8x128xf32, #tpu.memory_space<vmem>>, vector<1x8x128xf32>
    %82 = vector.shape_cast %81 : vector<1x8x128xf32> to vector<8x128xf32>
    %83 = vector.shape_cast %79 : vector<8x128xf32> to vector<1x8x128xf32>
    tpu.vector_store %arg6[%80, %c0_27, %c0_28], %83 {strides = array<i32>} : memref<4x8x128xf32, #tpu.memory_space<vmem>>, vector<1x8x128xf32>,
    %c2_i32 = arith.constant 2 : i32
    %c8_i32_29 = arith.constant 8 : i32
    %84 = arith.muli %c2_i32, %c8_i32_29 : i32
    %85 = tpu.assume_multiple %84, 8 : i32
    %86 = arith.index_cast %85 : i32 to index
    %c0_30 = arith.constant 0 : index
    %87 = vector.load %arg8[%86, %c0_30] : memref<32x384xf32, #tpu.memory_space<vmem>>, vector<8x384xf32>
    %cst_31 = arith.constant dense<0.000000e+00> : vector<8x384xf32>
    %88 = tpu.matmul %79, %11, %cst_31 {dimension_numbers = #tpu.dot_dimension_numbers<[1], [0], [0], [1], [0, 0, 1, 1], [], []>} : vector<8x128xf32>, vector<128x384xf32>, vector<8x384xf32> -> vector<8x384xf32>
    %89 = vector.extract_strided_slice %87 {offsets = [0, 0], sizes = [8, 128], strides = [1, 1]} : vector<8x384xf32> to vector<8x128xf32>
    %90 = vector.extract_strided_slice %88 {offsets = [0, 0], sizes = [8, 128], strides = [1, 1]} : vector<8x384xf32> to vector<8x128xf32>
    %91 = arith.addf %89, %90 : vector<8x128xf32>
    %92 = arith.negf %91 : vector<8x128xf32>
    %93 = math.exp %92 : vector<8x128xf32>
    %cst_32 = arith.constant 1.000000e+00 : f32
    %94 = vector.broadcast %cst_32 : f32 to vector<8x128xf32>
    %95 = arith.addf %94, %93 : vector<8x128xf32>
    %96 = arith.divf %94, %95 : vector<8x128xf32>
    %97 = vector.extract_strided_slice %87 {offsets = [0, 128], sizes = [8, 128], strides = [1, 1]} : vector<8x384xf32> to vector<8x128xf32>
    %98 = vector.extract_strided_slice %88 {offsets = [0, 128], sizes = [8, 128], strides = [1, 1]} : vector<8x384xf32> to vector<8x128xf32>
    %99 = arith.addf %97, %98 : vector<8x128xf32>
    %100 = arith.negf %99 : vector<8x128xf32>
    %101 = math.exp %100 : vector<8x128xf32>
    %cst_33 = arith.constant 1.000000e+00 : f32
    %102 = vector.broadcast %cst_33 : f32 to vector<8x128xf32>
    %103 = arith.addf %102, %101 : vector<8x128xf32>
    %104 = arith.divf %102, %103 : vector<8x128xf32>
    %105 = vector.extract_strided_slice %87 {offsets = [0, 256], sizes = [8, 128], strides = [1, 1]} : vector<8x384xf32> to vector<8x128xf32>
    %106 = vector.extract_strided_slice %88 {offsets = [0, 256], sizes = [8, 128], strides = [1, 1]} : vector<8x384xf32> to vector<8x128xf32>
    %107 = vector.broadcast %12 : vector<1x128xf32> to vector<8x128xf32>
    %108 = arith.addf %106, %107 : vector<8x128xf32>
    %109 = arith.mulf %96, %108 : vector<8x128xf32>
    %110 = arith.addf %105, %109 : vector<8x128xf32>
    %111 = math.tanh %110 : vector<8x128xf32>
    %112 = arith.subf %79, %111 : vector<8x128xf32>
    %113 = arith.mulf %104, %112 : vector<8x128xf32>
    %114 = arith.addf %111, %113 : vector<8x128xf32>
    %115 = arith.index_cast %c2_i32 : i32 to index
    %c0_34 = arith.constant 0 : index
    %c0_35 = arith.constant 0 : index
    %116 = vector.load %arg6[%115, %c0_34, %c0_35] : memref<4x8x128xf32, #tpu.memory_space<vmem>>, vector<1x8x128xf32>
    %117 = vector.shape_cast %116 : vector<1x8x128xf32> to vector<8x128xf32>
    %118 = vector.shape_cast %114 : vector<8x128xf32> to vector<1x8x128xf32>
    tpu.vector_store %arg6[%115, %c0_34, %c0_35], %118 {strides = array<i32>} : memref<4x8x128xf32, #tpu.memory_space<vmem>>, vector<1x8x128xf32>,
    %c3_i32 = arith.constant 3 : i32
    %c8_i32_36 = arith.constant 8 : i32
    %119 = arith.muli %c3_i32, %c8_i32_36 : i32
    %120 = tpu.assume_multiple %119, 8 : i32
    %121 = arith.index_cast %120 : i32 to index
    %c0_37 = arith.constant 0 : index
    %122 = vector.load %arg8[%121, %c0_37] : memref<32x384xf32, #tpu.memory_space<vmem>>, vector<8x384xf32>
    %cst_38 = arith.constant dense<0.000000e+00> : vector<8x384xf32>
    %123 = tpu.matmul %114, %11, %cst_38 {dimension_numbers = #tpu.dot_dimension_numbers<[1], [0], [0], [1], [0, 0, 1, 1], [], []>} : vector<8x128xf32>, vector<128x384xf32>, vector<8x384xf32> -> vector<8x384xf32>
    %124 = vector.extract_strided_slice %122 {offsets = [0, 0], sizes = [8, 128], strides = [1, 1]} : vector<8x384xf32> to vector<8x128xf32>
    %125 = vector.extract_strided_slice %123 {offsets = [0, 0], sizes = [8, 128], strides = [1, 1]} : vector<8x384xf32> to vector<8x128xf32>
    %126 = arith.addf %124, %125 : vector<8x128xf32>
    %127 = arith.negf %126 : vector<8x128xf32>
    %128 = math.exp %127 : vector<8x128xf32>
    %cst_39 = arith.constant 1.000000e+00 : f32
    %129 = vector.broadcast %cst_39 : f32 to vector<8x128xf32>
    %130 = arith.addf %129, %128 : vector<8x128xf32>
    %131 = arith.divf %129, %130 : vector<8x128xf32>
    %132 = vector.extract_strided_slice %122 {offsets = [0, 128], sizes = [8, 128], strides = [1, 1]} : vector<8x384xf32> to vector<8x128xf32>
    %133 = vector.extract_strided_slice %123 {offsets = [0, 128], sizes = [8, 128], strides = [1, 1]} : vector<8x384xf32> to vector<8x128xf32>
    %134 = arith.addf %132, %133 : vector<8x128xf32>
    %135 = arith.negf %134 : vector<8x128xf32>
    %136 = math.exp %135 : vector<8x128xf32>
    %cst_40 = arith.constant 1.000000e+00 : f32
    %137 = vector.broadcast %cst_40 : f32 to vector<8x128xf32>
    %138 = arith.addf %137, %136 : vector<8x128xf32>
    %139 = arith.divf %137, %138 : vector<8x128xf32>
    %140 = vector.extract_strided_slice %122 {offsets = [0, 256], sizes = [8, 128], strides = [1, 1]} : vector<8x384xf32> to vector<8x128xf32>
    %141 = vector.extract_strided_slice %123 {offsets = [0, 256], sizes = [8, 128], strides = [1, 1]} : vector<8x384xf32> to vector<8x128xf32>
    %142 = vector.broadcast %12 : vector<1x128xf32> to vector<8x128xf32>
    %143 = arith.addf %141, %142 : vector<8x128xf32>
    %144 = arith.mulf %131, %143 : vector<8x128xf32>
    %145 = arith.addf %140, %144 : vector<8x128xf32>
    %146 = math.tanh %145 : vector<8x128xf32>
    %147 = arith.subf %114, %146 : vector<8x128xf32>
    %148 = arith.mulf %139, %147 : vector<8x128xf32>
    %149 = arith.addf %146, %148 : vector<8x128xf32>
    %150 = arith.index_cast %c3_i32 : i32 to index
    %c0_41 = arith.constant 0 : index
    %c0_42 = arith.constant 0 : index
    %151 = vector.load %arg6[%150, %c0_41, %c0_42] : memref<4x8x128xf32, #tpu.memory_space<vmem>>, vector<1x8x128xf32>
    %152 = vector.shape_cast %151 : vector<1x8x128xf32> to vector<8x128xf32>
    %153 = vector.shape_cast %149 : vector<8x128xf32> to vector<1x8x128xf32>
    tpu.vector_store %arg6[%150, %c0_41, %c0_42], %153 {strides = array<i32>} : memref<4x8x128xf32, #tpu.memory_space<vmem>>, vector<1x8x128xf32>,
    %c4_i32 = arith.constant 4 : i32
    %c0_43 = arith.constant 0 : index
    %c0_44 = arith.constant 0 : index
    %154 = vector.load %arg9[%c0_43, %c0_44] : memref<8x128xf32, #tpu.memory_space<vmem>>, vector<8x128xf32>
    tpu.vector_store %arg9[%c0_43, %c0_44], %149 {strides = array<i32>} : memref<8x128xf32, #tpu.memory_space<vmem>>, vector<8x128xf32>,
    %c0_i32_45 = arith.constant 0 : i32
    %155 = arith.cmpi eq, %arg0, %c0_i32_45 : i32
    %156 = arith.extui %155 : i1 to i32
    %c0_i32_46 = arith.constant 0 : i32
    %157 = arith.cmpi ne, %156, %c0_i32_46 : i32
    scf.if %157 {
      %c0_47 = arith.constant 0 : index
      %c0_48 = arith.constant 0 : index
      %c0_49 = arith.constant 0 : index
      %158 = vector.load %arg7[%c0_47, %c0_48, %c0_49] : memref<1x8x128xf32, #tpu.memory_space<vmem>>, vector<1x8x128xf32>
      %159 = vector.shape_cast %158 : vector<1x8x128xf32> to vector<8x128xf32>
      %160 = vector.shape_cast %149 : vector<8x128xf32> to vector<1x8x128xf32>
      tpu.vector_store %arg7[%c0_47, %c0_48, %c0_49], %160 {strides = array<i32>} : memref<1x8x128xf32, #tpu.memory_space<vmem>>, vector<1x8x128xf32>,
    } else {
    }
    return
  }
  func.func @transform_0(%arg0: i32) -> (i32, i32, i32) {
    %c0_i32 = arith.constant 0 : i32
    %c0_i32_0 = arith.constant 0 : i32
    %c0_i32_1 = arith.constant 0 : i32
    return %arg0, %c0_i32, %c0_i32_0 : i32, i32, i32
  }
  func.func @transform_1(%arg0: i32) -> (i32, i32) {
    %c0_i32 = arith.constant 0 : i32
    %c0_i32_0 = arith.constant 0 : i32
    %c0_i32_1 = arith.constant 0 : i32
    return %c0_i32, %c0_i32_0 : i32, i32
  }
  func.func @transform_2(%arg0: i32) -> (i32, i32) {
    %c0_i32 = arith.constant 0 : i32
    %c0_i32_0 = arith.constant 0 : i32
    %c0_i32_1 = arith.constant 0 : i32
    return %c0_i32, %c0_i32_0 : i32, i32
  }
  func.func @transform_3(%arg0: i32) -> (i32, i32) {
    %c0_i32 = arith.constant 0 : i32
    %c0_i32_0 = arith.constant 0 : i32
    %c0_i32_1 = arith.constant 0 : i32
    return %c0_i32, %c0_i32_0 : i32, i32
  }
  func.func @transform_4(%arg0: i32) -> (i32, i32) {
    %c0_i32 = arith.constant 0 : i32
    %c0_i32_0 = arith.constant 0 : i32
    %c0_i32_1 = arith.constant 0 : i32
    return %c0_i32, %c0_i32_0 : i32, i32
  }
  func.func @transform_5(%arg0: i32) -> (i32, i32, i32) {
    %c0_i32 = arith.constant 0 : i32
    %c0_i32_0 = arith.constant 0 : i32
    %c0_i32_1 = arith.constant 0 : i32
    return %arg0, %c0_i32, %c0_i32_0 : i32, i32, i32
  }
  func.func @transform_6(%arg0: i32) -> (i32, i32, i32) {
    %c0_i32 = arith.constant 0 : i32
    %c0_i32_0 = arith.constant 0 : i32
    %c0_i32_1 = arith.constant 0 : i32
    %c0_i32_2 = arith.constant 0 : i32
    return %c0_i32, %c0_i32_0, %c0_i32_1 : i32, i32, i32
  }
}

module attributes {stable_mosaic.version = 11 : i64} {
  func.func @_gru_kernel(%arg0: i32, %arg1: memref<2x8x64xf32, #tpu.memory_space<vmem>>, %arg2: memref<64x384xf32, #tpu.memory_space<vmem>>, %arg3: memref<1x384xf32, #tpu.memory_space<vmem>>, %arg4: memref<128x384xf32, #tpu.memory_space<vmem>>, %arg5: memref<1x128xf32, #tpu.memory_space<vmem>>, %arg6: memref<2x8x128xf32, #tpu.memory_space<vmem>>, %arg7: memref<1x8x128xf32, #tpu.memory_space<vmem>>, %arg8: memref<16x384xf32, #tpu.memory_space<vmem>>, %arg9: memref<8x128xf32, #tpu.memory_space<vmem>>) attributes {dimension_semantics = [#tpu.dimension_semantics<arbitrary>], iteration_bounds = array<i64: 1>, scalar_prefetch = 0 : i64, scratch_operands = 2 : i64, tpu.core_type = #tpu.core_type<tc>, window_params = [{transform_indices = @transform_0, window_bounds = array<i64: 2, 8, 64>}, {pipeline_mode = #tpu.pipeline_mode<synchronous>, transform_indices = @transform_1, window_bounds = array<i64: 64, 384>}, {pipeline_mode = #tpu.pipeline_mode<synchronous>, transform_indices = @transform_2, window_bounds = array<i64: 1, 384>}, {pipeline_mode = #tpu.pipeline_mode<synchronous>, transform_indices = @transform_3, window_bounds = array<i64: 128, 384>}, {pipeline_mode = #tpu.pipeline_mode<synchronous>, transform_indices = @transform_4, window_bounds = array<i64: 1, 128>}, {transform_indices = @transform_5, window_bounds = array<i64: 2, 8, 128>}, {pipeline_mode = #tpu.pipeline_mode<synchronous>, transform_indices = @transform_6, window_bounds = array<i64: 1, 8, 128>}]} {
    %c0_i32 = arith.constant 0 : i32
    %0 = arith.cmpi eq, %arg0, %c0_i32 : i32
    %1 = arith.extui %0 : i1 to i32
    %c0_i32_0 = arith.constant 0 : i32
    %2 = arith.cmpi ne, %1, %c0_i32_0 : i32
    scf.if %2 {
      %cst_33 = arith.constant 0.000000e+00 : f32
      %88 = vector.broadcast %cst_33 : f32 to vector<8x128xf32>
      %c0_34 = arith.constant 0 : index
      %c0_35 = arith.constant 0 : index
      %89 = vector.load %arg9[%c0_34, %c0_35] : memref<8x128xf32, #tpu.memory_space<vmem>>, vector<8x128xf32>
      tpu.vector_store %arg9[%c0_34, %c0_35], %88 {strides = array<i32>} : memref<8x128xf32, #tpu.memory_space<vmem>>, vector<8x128xf32>,
    } else {
    }
    %c0 = arith.constant 0 : index
    %c0_1 = arith.constant 0 : index
    %c0_2 = arith.constant 0 : index
    %3 = vector.load %arg1[%c0, %c0_1, %c0_2] : memref<2x8x64xf32, #tpu.memory_space<vmem>>, vector<2x8x64xf32>
    %4 = vector.shape_cast %3 : vector<2x8x64xf32> to vector<16x64xf32>
    %c0_3 = arith.constant 0 : index
    %c0_4 = arith.constant 0 : index
    %5 = vector.load %arg2[%c0_3, %c0_4] : memref<64x384xf32, #tpu.memory_space<vmem>>, vector<64x384xf32>
    %cst = arith.constant dense<0.000000e+00> : vector<16x384xf32>
    %6 = tpu.matmul %4, %5, %cst {dimension_numbers = #tpu.dot_dimension_numbers<[1], [0], [0], [1], [0, 0, 1, 1], [], []>} : vector<16x64xf32>, vector<64x384xf32>, vector<16x384xf32> -> vector<16x384xf32>
    %c0_5 = arith.constant 0 : index
    %c0_6 = arith.constant 0 : index
    %7 = vector.load %arg3[%c0_5, %c0_6] : memref<1x384xf32, #tpu.memory_space<vmem>>, vector<1x384xf32>
    %8 = vector.broadcast %7 : vector<1x384xf32> to vector<16x384xf32>
    %9 = arith.addf %6, %8 : vector<16x384xf32>
    %c0_7 = arith.constant 0 : index
    %c0_8 = arith.constant 0 : index
    %10 = vector.load %arg8[%c0_7, %c0_8] : memref<16x384xf32, #tpu.memory_space<vmem>>, vector<16x384xf32>
    tpu.vector_store %arg8[%c0_7, %c0_8], %9 {strides = array<i32>} : memref<16x384xf32, #tpu.memory_space<vmem>>, vector<16x384xf32>,
    %c0_9 = arith.constant 0 : index
    %c0_10 = arith.constant 0 : index
    %11 = vector.load %arg4[%c0_9, %c0_10] : memref<128x384xf32, #tpu.memory_space<vmem>>, vector<128x384xf32>
    %c0_11 = arith.constant 0 : index
    %c0_12 = arith.constant 0 : index
    %12 = vector.load %arg5[%c0_11, %c0_12] : memref<1x128xf32, #tpu.memory_space<vmem>>, vector<1x128xf32>
    %c0_13 = arith.constant 0 : index
    %c0_14 = arith.constant 0 : index
    %13 = vector.load %arg9[%c0_13, %c0_14] : memref<8x128xf32, #tpu.memory_space<vmem>>, vector<8x128xf32>
    %c0_i32_15 = arith.constant 0 : i32
    %c8_i32 = arith.constant 8 : i32
    %14 = arith.muli %c0_i32_15, %c8_i32 : i32
    %15 = tpu.assume_multiple %14, 8 : i32
    %16 = arith.index_cast %15 : i32 to index
    %c0_16 = arith.constant 0 : index
    %17 = vector.load %arg8[%16, %c0_16] : memref<16x384xf32, #tpu.memory_space<vmem>>, vector<8x384xf32>
    %cst_17 = arith.constant dense<0.000000e+00> : vector<8x384xf32>
    %18 = tpu.matmul %13, %11, %cst_17 {dimension_numbers = #tpu.dot_dimension_numbers<[1], [0], [0], [1], [0, 0, 1, 1], [], []>} : vector<8x128xf32>, vector<128x384xf32>, vector<8x384xf32> -> vector<8x384xf32>
    %19 = vector.extract_strided_slice %17 {offsets = [0, 0], sizes = [8, 128], strides = [1, 1]} : vector<8x384xf32> to vector<8x128xf32>
    %20 = vector.extract_strided_slice %18 {offsets = [0, 0], sizes = [8, 128], strides = [1, 1]} : vector<8x384xf32> to vector<8x128xf32>
    %21 = arith.addf %19, %20 : vector<8x128xf32>
    %22 = arith.negf %21 : vector<8x128xf32>
    %23 = math.exp %22 : vector<8x128xf32>
    %cst_18 = arith.constant 1.000000e+00 : f32
    %24 = vector.broadcast %cst_18 : f32 to vector<8x128xf32>
    %25 = arith.addf %24, %23 : vector<8x128xf32>
    %26 = arith.divf %24, %25 : vector<8x128xf32>
    %27 = vector.extract_strided_slice %17 {offsets = [0, 128], sizes = [8, 128], strides = [1, 1]} : vector<8x384xf32> to vector<8x128xf32>
    %28 = vector.extract_strided_slice %18 {offsets = [0, 128], sizes = [8, 128], strides = [1, 1]} : vector<8x384xf32> to vector<8x128xf32>
    %29 = arith.addf %27, %28 : vector<8x128xf32>
    %30 = arith.negf %29 : vector<8x128xf32>
    %31 = math.exp %30 : vector<8x128xf32>
    %cst_19 = arith.constant 1.000000e+00 : f32
    %32 = vector.broadcast %cst_19 : f32 to vector<8x128xf32>
    %33 = arith.addf %32, %31 : vector<8x128xf32>
    %34 = arith.divf %32, %33 : vector<8x128xf32>
    %35 = vector.extract_strided_slice %17 {offsets = [0, 256], sizes = [8, 128], strides = [1, 1]} : vector<8x384xf32> to vector<8x128xf32>
    %36 = vector.extract_strided_slice %18 {offsets = [0, 256], sizes = [8, 128], strides = [1, 1]} : vector<8x384xf32> to vector<8x128xf32>
    %37 = vector.broadcast %12 : vector<1x128xf32> to vector<8x128xf32>
    %38 = arith.addf %36, %37 : vector<8x128xf32>
    %39 = arith.mulf %26, %38 : vector<8x128xf32>
    %40 = arith.addf %35, %39 : vector<8x128xf32>
    %41 = math.tanh %40 : vector<8x128xf32>
    %42 = arith.subf %13, %41 : vector<8x128xf32>
    %43 = arith.mulf %34, %42 : vector<8x128xf32>
    %44 = arith.addf %41, %43 : vector<8x128xf32>
    %45 = arith.index_cast %c0_i32_15 : i32 to index
    %c0_20 = arith.constant 0 : index
    %c0_21 = arith.constant 0 : index
    %46 = vector.load %arg6[%45, %c0_20, %c0_21] : memref<2x8x128xf32, #tpu.memory_space<vmem>>, vector<1x8x128xf32>
    %47 = vector.shape_cast %46 : vector<1x8x128xf32> to vector<8x128xf32>
    %48 = vector.shape_cast %44 : vector<8x128xf32> to vector<1x8x128xf32>
    tpu.vector_store %arg6[%45, %c0_20, %c0_21], %48 {strides = array<i32>} : memref<2x8x128xf32, #tpu.memory_space<vmem>>, vector<1x8x128xf32>,
    %c1_i32 = arith.constant 1 : i32
    %c8_i32_22 = arith.constant 8 : i32
    %49 = arith.muli %c1_i32, %c8_i32_22 : i32
    %50 = tpu.assume_multiple %49, 8 : i32
    %51 = arith.index_cast %50 : i32 to index
    %c0_23 = arith.constant 0 : index
    %52 = vector.load %arg8[%51, %c0_23] : memref<16x384xf32, #tpu.memory_space<vmem>>, vector<8x384xf32>
    %cst_24 = arith.constant dense<0.000000e+00> : vector<8x384xf32>
    %53 = tpu.matmul %44, %11, %cst_24 {dimension_numbers = #tpu.dot_dimension_numbers<[1], [0], [0], [1], [0, 0, 1, 1], [], []>} : vector<8x128xf32>, vector<128x384xf32>, vector<8x384xf32> -> vector<8x384xf32>
    %54 = vector.extract_strided_slice %52 {offsets = [0, 0], sizes = [8, 128], strides = [1, 1]} : vector<8x384xf32> to vector<8x128xf32>
    %55 = vector.extract_strided_slice %53 {offsets = [0, 0], sizes = [8, 128], strides = [1, 1]} : vector<8x384xf32> to vector<8x128xf32>
    %56 = arith.addf %54, %55 : vector<8x128xf32>
    %57 = arith.negf %56 : vector<8x128xf32>
    %58 = math.exp %57 : vector<8x128xf32>
    %cst_25 = arith.constant 1.000000e+00 : f32
    %59 = vector.broadcast %cst_25 : f32 to vector<8x128xf32>
    %60 = arith.addf %59, %58 : vector<8x128xf32>
    %61 = arith.divf %59, %60 : vector<8x128xf32>
    %62 = vector.extract_strided_slice %52 {offsets = [0, 128], sizes = [8, 128], strides = [1, 1]} : vector<8x384xf32> to vector<8x128xf32>
    %63 = vector.extract_strided_slice %53 {offsets = [0, 128], sizes = [8, 128], strides = [1, 1]} : vector<8x384xf32> to vector<8x128xf32>
    %64 = arith.addf %62, %63 : vector<8x128xf32>
    %65 = arith.negf %64 : vector<8x128xf32>
    %66 = math.exp %65 : vector<8x128xf32>
    %cst_26 = arith.constant 1.000000e+00 : f32
    %67 = vector.broadcast %cst_26 : f32 to vector<8x128xf32>
    %68 = arith.addf %67, %66 : vector<8x128xf32>
    %69 = arith.divf %67, %68 : vector<8x128xf32>
    %70 = vector.extract_strided_slice %52 {offsets = [0, 256], sizes = [8, 128], strides = [1, 1]} : vector<8x384xf32> to vector<8x128xf32>
    %71 = vector.extract_strided_slice %53 {offsets = [0, 256], sizes = [8, 128], strides = [1, 1]} : vector<8x384xf32> to vector<8x128xf32>
    %72 = vector.broadcast %12 : vector<1x128xf32> to vector<8x128xf32>
    %73 = arith.addf %71, %72 : vector<8x128xf32>
    %74 = arith.mulf %61, %73 : vector<8x128xf32>
    %75 = arith.addf %70, %74 : vector<8x128xf32>
    %76 = math.tanh %75 : vector<8x128xf32>
    %77 = arith.subf %44, %76 : vector<8x128xf32>
    %78 = arith.mulf %69, %77 : vector<8x128xf32>
    %79 = arith.addf %76, %78 : vector<8x128xf32>
    %80 = arith.index_cast %c1_i32 : i32 to index
    %c0_27 = arith.constant 0 : index
    %c0_28 = arith.constant 0 : index
    %81 = vector.load %arg6[%80, %c0_27, %c0_28] : memref<2x8x128xf32, #tpu.memory_space<vmem>>, vector<1x8x128xf32>
    %82 = vector.shape_cast %81 : vector<1x8x128xf32> to vector<8x128xf32>
    %83 = vector.shape_cast %79 : vector<8x128xf32> to vector<1x8x128xf32>
    tpu.vector_store %arg6[%80, %c0_27, %c0_28], %83 {strides = array<i32>} : memref<2x8x128xf32, #tpu.memory_space<vmem>>, vector<1x8x128xf32>,
    %c2_i32 = arith.constant 2 : i32
    %c0_29 = arith.constant 0 : index
    %c0_30 = arith.constant 0 : index
    %84 = vector.load %arg9[%c0_29, %c0_30] : memref<8x128xf32, #tpu.memory_space<vmem>>, vector<8x128xf32>
    tpu.vector_store %arg9[%c0_29, %c0_30], %79 {strides = array<i32>} : memref<8x128xf32, #tpu.memory_space<vmem>>, vector<8x128xf32>,
    %c0_i32_31 = arith.constant 0 : i32
    %85 = arith.cmpi eq, %arg0, %c0_i32_31 : i32
    %86 = arith.extui %85 : i1 to i32
    %c0_i32_32 = arith.constant 0 : i32
    %87 = arith.cmpi ne, %86, %c0_i32_32 : i32
    scf.if %87 {
      %c0_33 = arith.constant 0 : index
      %c0_34 = arith.constant 0 : index
      %c0_35 = arith.constant 0 : index
      %88 = vector.load %arg7[%c0_33, %c0_34, %c0_35] : memref<1x8x128xf32, #tpu.memory_space<vmem>>, vector<1x8x128xf32>
      %89 = vector.shape_cast %88 : vector<1x8x128xf32> to vector<8x128xf32>
      %90 = vector.shape_cast %79 : vector<8x128xf32> to vector<1x8x128xf32>
      tpu.vector_store %arg7[%c0_33, %c0_34, %c0_35], %90 {strides = array<i32>} : memref<1x8x128xf32, #tpu.memory_space<vmem>>, vector<1x8x128xf32>,
    } else {
    }
    return
  }
  func.func @transform_0(%arg0: i32) -> (i32, i32, i32) {
    %c0_i32 = arith.constant 0 : i32
    %c0_i32_0 = arith.constant 0 : i32
    %c0_i32_1 = arith.constant 0 : i32
    return %arg0, %c0_i32, %c0_i32_0 : i32, i32, i32
  }
  func.func @transform_1(%arg0: i32) -> (i32, i32) {
    %c0_i32 = arith.constant 0 : i32
    %c0_i32_0 = arith.constant 0 : i32
    %c0_i32_1 = arith.constant 0 : i32
    return %c0_i32, %c0_i32_0 : i32, i32
  }
  func.func @transform_2(%arg0: i32) -> (i32, i32) {
    %c0_i32 = arith.constant 0 : i32
    %c0_i32_0 = arith.constant 0 : i32
    %c0_i32_1 = arith.constant 0 : i32
    return %c0_i32, %c0_i32_0 : i32, i32
  }
  func.func @transform_3(%arg0: i32) -> (i32, i32) {
    %c0_i32 = arith.constant 0 : i32
    %c0_i32_0 = arith.constant 0 : i32
    %c0_i32_1 = arith.constant 0 : i32
    return %c0_i32, %c0_i32_0 : i32, i32
  }
  func.func @transform_4(%arg0: i32) -> (i32, i32) {
    %c0_i32 = arith.constant 0 : i32
    %c0_i32_0 = arith.constant 0 : i32
    %c0_i32_1 = arith.constant 0 : i32
    return %c0_i32, %c0_i32_0 : i32, i32
  }
  func.func @transform_5(%arg0: i32) -> (i32, i32, i32) {
    %c0_i32 = arith.constant 0 : i32
    %c0_i32_0 = arith.constant 0 : i32
    %c0_i32_1 = arith.constant 0 : i32
    return %arg0, %c0_i32, %c0_i32_0 : i32, i32, i32
  }
  func.func @transform_6(%arg0: i32) -> (i32, i32, i32) {
    %c0_i32 = arith.constant 0 : i32
    %c0_i32_0 = arith.constant 0 : i32
    %c0_i32_1 = arith.constant 0 : i32
    %c0_i32_2 = arith.constant 0 : i32
    return %c0_i32, %c0_i32_0, %c0_i32_1 : i32, i32, i32
  }
}

</mosaic_0001>

<bundles_post_ra>
// kernel: encoder_rnn_forward.5
= control target key start
LH: loop header
LB: loop body
LE: loop exit
PB: predicated region body
PF: predicated region fallthrough
CT: control target
= control target key end

     0   :  { %12 = vsyncpa [#allocation5], 0  ;;  %s792_s0 = inlined_call_operand.vmem [shape: f32[2,8,64], index: 0, kind: input, shape index: {}]   ;;  %s793_s1 = inlined_call_operand.hbm [shape: f32[64,384], index: 1, kind: input, shape index: {}]   ;;  %s794_s2 = inlined_call_operand.vmem [shape: f32[1,384], index: 2, kind: input, shape index: {}]   ;;  %s795_s3 = inlined_call_operand.hbm [shape: f32[128,384], index: 3, kind: input, shape index: {}]   ;;  %s796_s4 = inlined_call_operand.vmem [shape: f32[1,128], index: 4, kind: input, shape index: {}]   ;;  %s797_s5 = inlined_call_operand.vmem [shape: f32[2,8,128], index: 5, kind: output, shape index: {0}]   ;;  %s798_s6 = inlined_call_operand.vmem [shape: f32[1,8,128], index: 6, kind: output, shape index: {1}]  }
   0x1   :  { %s20_s23 = sshll.u32 %s793_s1, 4  ;;  %s21_s23 = int_to_ptr.hbm [resolvable:$true] %s20_s23 }
   0x2   :  { %13 = vsyncpa [#allocation7], 0  ;;  %s562_s24 = smov [#allocation4]   ;;  %s35_s28 = sshll.u32 %s795_s3, 4  ;;  %s36_s28 = int_to_ptr.hbm [resolvable:$true] %s35_s28 }
   0x3   :  { %s22_s25 = sshll.u32 %s562_s24, 4  ;;  %s563_s29 = smov 384   ;;  %s23_s25 = int_to_ptr.vmem [resolvable:$true] %s22_s25 }
   0x4   :  { %s564_s30 = smov 24   ;;  %s565_s7 = smov [#allocation6]  }
   0x5   :  { %28 = dma.hbm_to_vmem [thread:$0]  %s21_s23, 3072, %s23_s25, [#allocation5], %s563_s29, %s563_s29, %s564_s30  }
   0x6   :  { %s37_s8 = sshll.u32 %s565_s7, 4  ;;  %s38_s8 = int_to_ptr.vmem [resolvable:$true] %s37_s8 }
   0x7   :  { %43 = dma.hbm_to_vmem [thread:$0]  %s36_s28, 6144, %s38_s8, [#allocation7], %s563_s29, %s563_s29, %s564_s30  }
   0x8   :  { %558 = dma.done.wait [#allocation5], 3072  }
   0x9   :  { %559 = vsyncadd [#allocation5], 4294964224 }
   0xa   :  { %560 = dma.done.wait [#allocation7], 6144  }
   0xb   :  { %561 = vsyncadd [#allocation7], 4294961152  ;;  %v608_v0 = vld [vmem:[#allocation6 + $0x168] sm:$0xff]  ;;  %v610_v1 = vld [vmem:[#allocation6 + $0x150] sm:$0xff]  ;;  %vm93_vm0 = vcmask 523264   ;;  %v566_v57 = vmov 0.0  }
   0xc   :  { %v82_v2 = vld [vmem:[#allocation4 + $0xa8] sm:$0xff]  ;;  %231 = vmatpush.msra.mxu3 %v608_v0  ;;  %v79_v3 = vld [vmem:[#allocation4 + $0x90] sm:$0xff]  ;;  %v613_v4 = vld [vmem:[#allocation6 + $0x138] sm:$0xff] }
   0xd   :  { %108 = vmatpush.msra.mxu1 %v82_v2  ;;  %v615_v5 = vld [vmem:[#allocation6 + $0x170] sm:$0xff]  ;;  %v76_v6 = vld [vmem:[#allocation4 + $0x78] sm:$0xff]  ;;  %v620_v8 = vld [vmem:[#allocation6 + $0x120] sm:$0xff] }
   0xe   :  { %232 = vmatpush.msra.mxu3 %v610_v1  ;;  %v618_v7 = vld [vmem:[#allocation6 + $0x158] sm:$0xff]  ;;  %251 = vmatpush.msra.mxu0 %v615_v5  ;;  %v73_v9 = vld [vmem:[#allocation4 + $0x60] sm:$0xff]  ;;  %v626_v11 = vld [vmem:[#allocation6 + $0x108] sm:$0xff] }
   0xf   :  { %109 = vmatpush.msra.mxu1 %v79_v3  ;;  %v624_v10 = vld [vmem:[#allocation6 + $0x140] sm:$0xff]  ;;  %v70_v12 = vld [vmem:[#allocation4 + $0x48] sm:$0xff]  ;;  %v632_v14 = vld [vmem:[#allocation6 + $0xf0] sm:$0xff] }
  0x10   :  { %233 = vmatpush.msra.mxu3 %v613_v4  ;;  %252 = vmatpush.msra.mxu0 %v618_v7  ;;  %v630_v13 = vld [vmem:[#allocation6 + $0x128] sm:$0xff]  ;;  %v67_v15 = vld [vmem:[#allocation4 + $0x30] sm:$0xff]  ;;  %v638_v17 = vld [vmem:[#allocation6 + $0xd8] sm:$0xff] }
  0x11   :  { %110 = vmatpush.msra.mxu1 %v76_v6  ;;  %v636_v16 = vld [vmem:[#allocation6 + $0x110] sm:$0xff]  ;;  %v64_v18 = vld [vmem:[#allocation4 + $0x18] sm:$0xff]  ;;  %v644_v20 = vld [vmem:[#allocation6 + $0xc0] sm:$0xff] }
  0x12   :  { %234 = vmatpush.msra.mxu3 %v620_v8  ;;  %253 = vmatpush.msra.mxu0 %v624_v10  ;;  %v642_v19 = vld [vmem:[#allocation6 + $0xf8] sm:$0xff]  ;;  %v61_v21 = vld [vmem:[#allocation4] sm:$0xff]  ;;  %v655_v24 = vld [vmem:[#allocation6 + $0xa8] sm:$0xff] }
  0x13   :  { %111 = vmatpush.msra.mxu1 %v73_v9  ;;  %v648_v22 = vld [vmem:[#allocation6 + $0xe0] sm:$0xff]  ;;  %v83_v25 = vld [vmem:[#allocation4 + $0xb0] sm:$0xff]  ;;  %v659_v26 = vld [vmem:[#allocation6 + $0xc8] sm:$0xff] }
  0x14   :  { %235 = vmatpush.msra.mxu3 %v626_v11  ;;  %254 = vmatpush.msra.mxu0 %v630_v13  ;;  %v653_v23 = vld [vmem:[%s792_s0] sm:$0xff]  ;;  %v661_v27 = vld [vmem:[#allocation6 + $0x90] sm:$0xff]  ;;  %v80_v28 = vld [vmem:[#allocation4 + $0x98] sm:$0xff] }
  0x15   :  { %112 = vmatpush.msra.mxu1 %v70_v12  ;;  %v667_v29 = vld [vmem:[#allocation6 + $0xb0] sm:$0xff]  ;;  %v669_v30 = vld [vmem:[#allocation6 + $0x78] sm:$0xff]  ;;  %v77_v31 = vld [vmem:[#allocation4 + $0x80] sm:$0xff] }
  0x16   :  { %236 = vmatpush.msra.mxu3 %v632_v14  ;;  %255 = vmatpush.msra.mxu0 %v636_v16  ;;  %v84_v32 = vld [vmem:[#allocation4 + $0xb8] sm:$0xff]  ;;  %v81_v34 = vld [vmem:[#allocation4 + $0xa0] sm:$0xff]  ;;  %v74_v36 = vld [vmem:[#allocation4 + $0x68] sm:$0xff] }
  0x17   :  { %113 = vmatpush.msra.mxu1 %v67_v15  ;;  %v673_v33 = vld [vmem:[#allocation6 + $0x98] sm:$0xff]  ;;  %v675_v35 = vld [vmem:[#allocation6 + $0x60] sm:$0xff]  ;;  %154 = vmatpush.msra.mxu2 %v84_v32  ;;  %v684_v38 = vld [vmem:[%s792_s0 + $0x8] sm:$0xff] }
  0x18   :  { %237 = vmatpush.msra.mxu3 %v638_v17  ;;  %256 = vmatpush.msra.mxu0 %v642_v19  ;;  %v679_v37 = vld [vmem:[#allocation6 + $0x80] sm:$0xff]  ;;  %v686_v39 = vld [vmem:[#allocation6 + $0x48] sm:$0xff]  ;;  %v71_v40 = vld [vmem:[#allocation4 + $0x50] sm:$0xff] }
  0x19   :  { %114 = vmatpush.msra.mxu1 %v64_v18  ;;  %155 = vmatpush.msra.mxu2 %v81_v34  ;;  %v690_v41 = vld [vmem:[#allocation6 + $0x68] sm:$0xff]  ;;  %v692_v43 = vld [vmem:[#allocation6 + $0x30] sm:$0xff]  ;;  %v68_v44 = vld [vmem:[#allocation4 + $0x38] sm:$0xff] }
  0x1a   :  { %238 = vmatpush.msra.mxu3 %v644_v20  ;;  %257 = vmatpush.msra.mxu0 %v648_v22  ;;  %v78_v42 = vld [vmem:[#allocation4 + $0x88] sm:$0xff]  ;;  %v698_v45 = vld [vmem:[#allocation6 + $0x50] sm:$0xff]  ;;  %v700_v47 = vld [vmem:[#allocation6 + $0x18] sm:$0xff] }
  0x1b   :  { %115 = vmatpush.msra.mxu1 %v61_v21  ;;  %v75_v46 = vld [vmem:[#allocation4 + $0x70] sm:$0xff]  ;;  %v65_v48 = vld [vmem:[#allocation4 + $0x20] sm:$0xff]  ;;  %156 = vmatpush.msra.mxu2 %v78_v42  ;;  %v704_v49 = vld [vmem:[#allocation6 + $0x38] sm:$0xff] }
  0x1c   :  { %473 = vmatmul.msk.f32.vlgmr.msra.gmra.mxu1 %vm93_vm0, %v653_v23  ;;  %239 = vmatpush.msra.mxu3 %v655_v24  ;;  %v72_v50 = vld [vmem:[#allocation4 + $0x58] sm:$0xff]  ;;  %v706_v51 = vld [vmem:[#allocation6] sm:$0xff]  ;;  %v62_v52 = vld [vmem:[#allocation4 + $0x8] sm:$0xff] }
  0x1d   :  { %131 = vmatpush.msrb.mxu1 %v83_v25  ;;  %258 = vmatpush.msra.mxu0 %v659_v26  ;;  %v710_v53 = vld [vmem:[#allocation6 + $0x20] sm:$0xff]  ;;  %v222_v54 = vld [vmem:[#allocation6 + $0x178] sm:$0xff]  ;;  %v714_v56 = vld [vmem:[#allocation6 + $0x8] sm:$0xff] }
  0x1e   :  { %240 = vmatpush.msra.mxu3 %v661_v27  ;;  %157 = vmatpush.msra.mxu2 %v75_v46  ;;  %v69_v55 = vld [vmem:[#allocation4 + $0x40] sm:$0xff]  ;;  %v66_v59 = vld [vmem:[#allocation4 + $0x28] sm:$0xff]  ;;  %v63_v61 = vld [vmem:[#allocation4 + $0x10] sm:$0xff] }
  0x1f   :  { %132 = vmatpush.msrb.mxu1 %v80_v28  ;;  %259 = vmatpush.msra.mxu0 %v667_v29  ;;  %v219_v58 = vld [vmem:[#allocation6 + $0x160] sm:$0xff]  ;;  %v216_v60 = vld [vmem:[#allocation6 + $0x148] sm:$0xff]  ;;  %v213_v62 = vld [vmem:[#allocation6 + $0x130] sm:$0xff] }
  0x20   :  { %241 = vmatpush.msra.mxu3 %v669_v30  ;;  %158 = vmatpush.msra.mxu2 %v72_v50  ;;  %v210_v63 = vld [vmem:[#allocation6 + $0x118] sm:$0xff]  ;;  %v207_v2 = vld [vmem:[#allocation6 + $0x100] sm:$0xff]  ;;  %v204_v3 = vld [vmem:[#allocation6 + $0xe8] sm:$0xff] }
  0x21   :  { %133 = vmatpush.msrb.mxu1 %v77_v31  ;;  %260 = vmatpush.msra.mxu0 %v673_v33  ;;  %v195_v6 = vld [vmem:[#allocation6 + $0xa0] sm:$0xff]  ;;  %v180_v9 = vld [vmem:[#allocation6 + $0x28] sm:$0xff] }
  0x22   :  { %242 = vmatpush.msra.mxu3 %v675_v35  ;;  %159 = vmatpush.msra.mxu2 %v69_v55  ;;  %v764_v12 = vld [vmem:[%s794_s2] sm:$0x7] }
  0x23   :  { %134 = vmatpush.msrb.mxu1 %v74_v36  ;;  %261 = vmatpush.msra.mxu0 %v679_v37  ;;  %v773_v36 = vld [vmem:[%s796_s4] ss:$0 sm:$0xff] }
  0x24   :  { %474 = vmatmul.msk.f32.gmra.mxu1 %vm93_vm0, %v684_v38  ;;  %243 = vmatpush.msra.mxu3 %v686_v39 }
  0x25   :  { %135 = vmatpush.msrb.mxu1 %v71_v40  ;;  %262 = vmatpush.msra.mxu0 %v690_v41 }
  0x26   :  { %244 = vmatpush.msra.mxu3 %v692_v43  ;;  %160 = vmatpush.msra.mxu2 %v66_v59 }
  0x27   :  { %136 = vmatpush.msrb.mxu1 %v68_v44  ;;  %263 = vmatpush.msra.mxu0 %v698_v45 }
  0x28   :  { %245 = vmatpush.msra.mxu3 %v700_v47  ;;  %161 = vmatpush.msra.mxu2 %v63_v61 }
  0x29   :  { %137 = vmatpush.msrb.mxu1 %v65_v48  ;;  %264 = vmatpush.msra.mxu0 %v704_v49 }
  0x2a   :  { %246 = vmatpush.msra.mxu3 %v706_v51  ;;  %477 = vmatmul.msk.f32.vlgmr.msra.gmra.mxu2 %vm93_vm0, %v653_v23 }
  0x2b   :  { %138 = vmatpush.msrb.mxu1 %v62_v52  ;;  %247 = vmatmul.f32.vlgmr.msra.gmra.mxu3 %v566_v57 }
  0x2c   :  { %265 = vmatpush.msra.mxu0 %v710_v53  ;;  %475 = vmatmul.msk.f32.vlgmr.msrb.gmra.mxu1 %vm93_vm0, %v653_v23 }
  0x2d   :  { %271 = vmatpush.msra.mxu1 %v222_v54  ;;  %368 = vmatpush.msrb.mxu3 %v615_v5  ;;  %v201_v5 = vld [vmem:[#allocation6 + $0xd0] sm:$0xff] }
  0x2e   :  { %266 = vmatpush.msra.mxu0 %v714_v56  ;;  %348 = vmatpush.msrb.mxu2 %v608_v0  ;;  %v198_v0 = vld [vmem:[#allocation6 + $0xb8] sm:$0xff] }
  0x2f   :  { %272 = vmatpush.msra.mxu1 %v219_v58  ;;  %267 = vmatmul.f32.vlgmr.msra.gmra.mxu0 %v566_v57 }
  0x30   :  { %388 = vmatpush.msrb.mxu0 %v222_v54  ;;  %369 = vmatpush.msrb.mxu3 %v618_v7  ;;  %v186_v7 = vld [vmem:[#allocation6 + $0x58] sm:$0xff] }
  0x31   :  { %273 = vmatpush.msra.mxu1 %v216_v60  ;;  %349 = vmatpush.msrb.mxu2 %v610_v1  ;;  %v192_v1 = vld [vmem:[#allocation6 + $0x88] sm:$0xff] }
  0x32   :  { %389 = vmatpush.msrb.mxu0 %v219_v58  ;;  %370 = vmatpush.msrb.mxu3 %v624_v10  ;;  %v177_v10 = vld [vmem:[#allocation6 + $0x10] sm:$0xff] }
  0x33   :  { %274 = vmatpush.msra.mxu1 %v213_v62  ;;  %350 = vmatpush.msrb.mxu2 %v613_v4  ;;  %v189_v4 = vld [vmem:[#allocation6 + $0x70] sm:$0xff] }
  0x34   :  { %476 = vmatmul.msk.f32.gmra.mxu1 %vm93_vm0, %v684_v38  ;;  %390 = vmatpush.msrb.mxu0 %v216_v60 }
  0x35   :  { %275 = vmatpush.msra.mxu1 %v210_v63  ;;  %371 = vmatpush.msrb.mxu3 %v630_v13  ;;  %v87_v13 = vperm.slane %v764_v12, 0 }
  0x36   :  { %391 = vmatpush.msrb.mxu0 %v213_v62  ;;  %351 = vmatpush.msrb.mxu2 %v620_v8  ;;  %v183_v8 = vld [vmem:[#allocation6 + $0x40] sm:$0xff] }
  0x37   :  { %276 = vmatpush.msra.mxu1 %v207_v2  ;;  %372 = vmatpush.msrb.mxu3 %v636_v16  ;;  %v88_v16 = vperm.slane %v764_v12, 1 }
  0x38   :  { %392 = vmatpush.msrb.mxu0 %v210_v63  ;;  %352 = vmatpush.msrb.mxu2 %v626_v11 }
  0x39   :  { %277 = vmatpush.msra.mxu1 %v204_v3  ;;  %373 = vmatpush.msrb.mxu3 %v642_v19 }
  0x3a   :  { %393 = vmatpush.msrb.mxu0 %v207_v2  ;;  %353 = vmatpush.msrb.mxu2 %v632_v14 }
  0x3b   :  { %278 = vmatpush.msra.mxu1 %v201_v5  ;;  %374 = vmatpush.msrb.mxu3 %v648_v22 }
  0x3c   :  { %394 = vmatpush.msrb.mxu0 %v204_v3  ;;  %354 = vmatpush.msrb.mxu2 %v638_v17 }
  0x3d   :  { %279 = vmatpush.msra.mxu1 %v198_v0  ;;  %375 = vmatpush.msrb.mxu3 %v659_v26 }
  0x3e   :  { %395 = vmatpush.msrb.mxu0 %v201_v5  ;;  %355 = vmatpush.msrb.mxu2 %v644_v20 }
  0x3f   :  { %280 = vmatpush.msra.mxu1 %v195_v6  ;;  %376 = vmatpush.msrb.mxu3 %v667_v29 }
  0x40   :  { %396 = vmatpush.msrb.mxu0 %v198_v0  ;;  %356 = vmatpush.msrb.mxu2 %v655_v24 }
  0x41   :  { %281 = vmatpush.msra.mxu1 %v192_v1  ;;  %377 = vmatpush.msrb.mxu3 %v673_v33 }
  0x42   :  { %397 = vmatpush.msrb.mxu0 %v195_v6  ;;  %357 = vmatpush.msrb.mxu2 %v661_v27 }
  0x43   :  { %282 = vmatpush.msra.mxu1 %v189_v4  ;;  %378 = vmatpush.msrb.mxu3 %v679_v37 }
  0x44   :  { %398 = vmatpush.msrb.mxu0 %v192_v1  ;;  %358 = vmatpush.msrb.mxu2 %v669_v30 }
  0x45   :  { %283 = vmatpush.msra.mxu1 %v186_v7  ;;  %379 = vmatpush.msrb.mxu3 %v690_v41  ;;  %v89_v41 = vperm.slane %v764_v12, 2 }
  0x46   :  { %399 = vmatpush.msrb.mxu0 %v189_v4  ;;  %359 = vmatpush.msrb.mxu2 %v675_v35 }
  0x47   :  { %284 = vmatpush.msra.mxu1 %v183_v8  ;;  %380 = vmatpush.msrb.mxu3 %v698_v45 }
  0x48   :  { %478 = vmatmul.msk.f32.gmra.mxu2 %vm93_vm0, %v684_v38  ;;  %400 = vmatpush.msrb.mxu0 %v186_v7 }
  0x49   :  { %285 = vmatpush.msra.mxu1 %v180_v9  ;;  %360 = vmatpush.msrb.mxu2 %v686_v39 }
  0x4a   :  { %381 = vmatpush.msrb.mxu3 %v704_v49  ;;  %401 = vmatpush.msrb.mxu0 %v183_v8 }
  0x4b   :  { %286 = vmatpush.msra.mxu1 %v177_v10  ;;  %361 = vmatpush.msrb.mxu2 %v692_v43 }
  0x4c   :  { %287 = vmatmul.f32.vlgmr.msra.gmra.mxu1 %v566_v57  ;;  %382 = vmatpush.msrb.mxu3 %v710_v53 }
  0x4d   :  { %362 = vmatpush.msrb.mxu2 %v700_v47  ;;  %402 = vmatpush.msrb.mxu0 %v180_v9 }
  0x4e   :  { %383 = vmatpush.msrb.mxu3 %v714_v56 }
  0x4f   :  { %363 = vmatpush.msrb.mxu2 %v706_v51  ;;  %403 = vmatpush.msrb.mxu0 %v177_v10 }
  0x99   :  { %v117_v11 = vpop.f32.mrf.mxu1 }
  0x9a   :  { %v118_v20 = vadd.f32 %v117_v11, %v87_v13 }
  0xa1   :  { %v120_v14 = vpop.f32.mrf.mxu1 }
  0xa2   :  { %v767_v15 = vadd.f32 %v120_v14, %v87_v13 }
  0xa9   :  { %v140_v17 = vpop.f32.mrf.mxu1 }
  0xaa   :  { %v141_v18 = vadd.f32 %v140_v17, %v88_v16 }
  0xac   :  { %v268_v19 = vpop.f32.mrf.mxu0 }
  0xad   :  { %v311_v21 = vadd.f32 %v268_v19, %v141_v18  ;;  %v163_v43 = vpop.f32.mrf.mxu2 }
  0xae   :  { %v248_v22 = vpop.f32.mrf.mxu3  ;;  %v164_v49 = vadd.f32 %v163_v43, %v89_v41 }
  0xaf   :  { %v291_v23 = vadd.f32 %v248_v22, %v118_v20  ;;  %v480_v24 = vmul.f32 -1.442695, %v311_v21 }
  0xb1   :  { %v479_v25 = vmul.f32 -1.442695, %v291_v23  ;;  %490 = vpow2.f32 %v480_v24  ;;  %v143_v26 = vpop.f32.mrf.mxu1 }
  0xb2   :  { %v144_v27 = vadd.f32 %v143_v26, %v88_v16 }
  0xb3   :  { %492 = vpow2.f32 %v479_v25 }
  0xb7   :  { %v491_v28 = vpop.eup %490 }
  0xb8   :  { %v315_v30 = vadd.f32 1.0, %v491_v28 }
  0xb9   :  { %v493_v29 = vpop.eup %492 }
  0xba   :  { %v295_v31 = vadd.f32 1.0, %v493_v29  ;;  %vm321_vm5 = vweird.f32 %v315_v30  ;;  %v327_v54 = vand.u32 2147483648, %v315_v30  ;;  %v325_v56 = vand.u32 2147483647, %v315_v30 }
  0xbc   :  { %494 = vrcp.f32 %v295_v31  ;;  %v307_v38 = vand.u32 2147483648, %v295_v31  ;;  %v305_v40 = vand.u32 2147483647, %v295_v31  ;;  %vm301_vm2 = vweird.f32 %v295_v31 }
  0xbd   :  { %496 = vrcp.f32 %v315_v30  ;;  %v328_v57 = vor.u32 1.1754944e-38, %v327_v54  ;;  %vm326_vm8 = vcmp.eq.f32.partialorder %v325_v56, 8.507059e+37 }
  0xbe   :  { %v308_v47 = vor.u32 1.1754944e-38, %v307_v38  ;;  %vm306_vm4 = vcmp.eq.f32.partialorder %v305_v40, 8.507059e+37 }
  0xc2   :  { %v495_v32 = vpop.eup %494 }
  0xc3   :  { %v497_v33 = vpop.eup %496  ;;  %v297_v34 = vmul.f32 %v495_v32, %v295_v31  ;;  %vm302_vm1 = vweird.f32 %v495_v32 }
  0xc4   :  { %v317_v37 = vmul.f32 %v497_v33, %v315_v30  ;;  %vm303_vm3 = vmor %vm301_vm2, %vm302_vm1  ;;  %vm322_vm6 = vweird.f32 %v497_v33 }
  0xc5   :  { %v298_v35 = vsub.f32 1.0, %v297_v34  ;;  %vm323_vm7 = vmor %vm321_vm5, %vm322_vm6 }
  0xc6   :  { %v318_v46 = vsub.f32 1.0, %v317_v37 }
  0xc7   :  { %v299_v39 = vmul.f32 %v495_v32, %v298_v35 }
  0xc8   :  { %v319_v52 = vmul.f32 %v497_v33, %v318_v46 }
  0xc9   :  { %v288_v42 = vpop.f32.mrf.mxu1  ;;  %v300_v44 = vadd.f32 %v495_v32, %v299_v39 }
  0xca   :  { %v334_v45 = vadd.f32 %v773_v36, %v288_v42  ;;  %v320_v55 = vadd.f32 %v497_v33, %v319_v52 }
  0xcb   :  { %v304_v48 = vsel %vm303_vm3, %v495_v32, %v300_v44  ;;  %v166_v2 = vpop.f32.mrf.mxu2 }
  0xcc   :  { %v309_v50 = vsel %vm306_vm4, %v308_v47, %v304_v48  ;;  %v324_v58 = vsel %vm323_vm7, %v497_v33, %v320_v55 }
  0xcd   :  { %v335_v51 = vmul.f32 %v334_v45, %v309_v50  ;;  %v329_v61 = vsel %vm326_vm8, %v328_v57, %v324_v58 }
  0xcf   :  { %v336_v53 = vadd.f32 %v335_v51, %v164_v49 }
  0xd1   :  { %498 = vtanh.f32 %v336_v53 }
  0xd7   :  { %v499_v59 = vpop.eup %498 }
  0xd8   :  { %v338_v60 = vsub.f32 0.0, %v499_v59 }
  0xda   :  { %v339_v62 = vmul.f32 %v338_v60, %v329_v61 }
  0xdc   :  { %v340_v63 = vadd.f32 %v499_v59, %v339_v62 }
  0xde   :  { %341 = vst [vmem:[%s797_s5] sm:$0xff] %v340_v63  ;;  %364 = vmatmul.f32.vlgmr.msrb.gmra.mxu2 %v340_v63  ;;  %384 = vmatmul.f32.vlgmr.msrb.gmra.mxu3 %v340_v63 }
  0xdf   :  { %404 = vmatmul.f32.vlgmr.msrb.gmra.mxu0 %v340_v63 }
 0x15c   :  { %v405_v20 = vpop.f32.mrf.mxu0 }
 0x15d   :  { %v448_v24 = vadd.f32 %v773_v36, %v405_v20 }
 0x161   :  { %v365_v3 = vpop.f32.mrf.mxu2  ;;  %v385_v5 = vpop.f32.mrf.mxu3 }
 0x162   :  { %v408_v0 = vadd.f32 %v365_v3, %v767_v15  ;;  %v428_v6 = vadd.f32 %v385_v5, %v144_v27  ;;  %v167_v27 = vadd.f32 %v166_v2, %v89_v41 }
 0x164   :  { %v481_v1 = vmul.f32 -1.442695, %v408_v0  ;;  %v482_v4 = vmul.f32 -1.442695, %v428_v6 }
 0x166   :  { %500 = vpow2.f32 %v481_v1 }
 0x167   :  { %502 = vpow2.f32 %v482_v4 }
 0x16c   :  { %v501_v7 = vpop.eup %500 }
 0x16d   :  { %v503_v8 = vpop.eup %502  ;;  %v412_v9 = vadd.f32 1.0, %v501_v7 }
 0x16e   :  { %v432_v10 = vadd.f32 1.0, %v503_v8 }
 0x16f   :  { %504 = vrcp.f32 %v412_v9  ;;  %v424_v17 = vand.u32 2147483648, %v412_v9  ;;  %v422_v15 = vand.u32 2147483647, %v412_v9  ;;  %vm418_vm10 = vweird.f32 %v412_v9 }
 0x170   :  { %506 = vrcp.f32 %v432_v10  ;;  %v444_v32 = vand.u32 2147483648, %v432_v10  ;;  %vm438_vm14 = vweird.f32 %v432_v10  ;;  %v442_v33 = vand.u32 2147483647, %v432_v10 }
 0x171   :  { %v425_v22 = vor.u32 1.1754944e-38, %v424_v17  ;;  %vm423_vm12 = vcmp.eq.f32.partialorder %v422_v15, 8.507059e+37 }
 0x172   :  { %v445_v37 = vor.u32 1.1754944e-38, %v444_v32  ;;  %vm443_vm0 = vcmp.eq.f32.partialorder %v442_v33, 8.507059e+37 }
 0x175   :  { %v505_v11 = vpop.eup %504 }
 0x176   :  { %v507_v13 = vpop.eup %506  ;;  %v414_v14 = vmul.f32 %v505_v11, %v412_v9  ;;  %vm419_vm9 = vweird.f32 %v505_v11 }
 0x177   :  { %v434_v18 = vmul.f32 %v507_v13, %v432_v10  ;;  %vm420_vm11 = vmor %vm418_vm10, %vm419_vm9  ;;  %vm439_vm13 = vweird.f32 %v507_v13 }
 0x178   :  { %v415_v16 = vsub.f32 1.0, %v414_v14  ;;  %vm440_vm15 = vmor %vm438_vm14, %vm439_vm13 }
 0x179   :  { %v435_v23 = vsub.f32 1.0, %v434_v18 }
 0x17a   :  { %v416_v19 = vmul.f32 %v505_v11, %v415_v16 }
 0x17b   :  { %v436_v29 = vmul.f32 %v507_v13, %v435_v23 }
 0x17c   :  { %v417_v21 = vadd.f32 %v505_v11, %v416_v19 }
 0x17d   :  { %v437_v31 = vadd.f32 %v507_v13, %v436_v29 }
 0x17e   :  { %v421_v25 = vsel %vm420_vm11, %v505_v11, %v417_v21 }
 0x17f   :  { %v426_v26 = vsel %vm423_vm12, %v425_v22, %v421_v25  ;;  %v441_v34 = vsel %vm440_vm15, %v507_v13, %v437_v31 }
 0x180   :  { %v449_v28 = vmul.f32 %v448_v24, %v426_v26  ;;  %v446_v38 = vsel %vm443_vm0, %v445_v37, %v441_v34 }
 0x182   :  { %v450_v30 = vadd.f32 %v449_v28, %v167_v27 }
 0x184   :  { %508 = vtanh.f32 %v450_v30 }
 0x18a   :  { %v509_v35 = vpop.eup %508 }
 0x18b   :  { %v452_v36 = vsub.f32 %v340_v63, %v509_v35 }
 0x18d   :  { %v453_v39 = vmul.f32 %v452_v36, %v446_v38 }
 0x18f   :  { %v454_v40 = vadd.f32 %v509_v35, %v453_v39 }
 0x191   :  { %483 = vst [vmem:[%s797_s5 + $0x8] sm:$0xff] %v454_v40 }
 0x192   :  { %461 = vst [vmem:[%s798_s6] sm:$0xff] %v454_v40 }
 0x193   :  { %470 = vsyncpa [#allocation5], 1 }
 0x194   :  { %471 = vsyncpa [#allocation7], 1 }

// kernel: encoder_rnn_forward.4
= control target key start
LH: loop header
LB: loop body
LE: loop exit
PB: predicated region body
PF: predicated region fallthrough
CT: control target
= control target key end

     0   :  { %12 = vsyncpa [#allocation5], 0  ;;  %s1443_s0 = inlined_call_operand.vmem [shape: f32[4,8,64], index: 0, kind: input, shape index: {}]   ;;  %s1444_s1 = inlined_call_operand.hbm [shape: f32[64,384], index: 1, kind: input, shape index: {}]   ;;  %s1445_s2 = inlined_call_operand.vmem [shape: f32[1,384], index: 2, kind: input, shape index: {}]   ;;  %s1446_s3 = inlined_call_operand.vmem [shape: f32[128,384], index: 3, kind: input, shape index: {}]   ;;  %s1447_s4 = inlined_call_operand.vmem [shape: f32[1,128], index: 4, kind: input, shape index: {}]   ;;  %s1448_s5 = inlined_call_operand.vmem [shape: f32[4,8,128], index: 5, kind: output, shape index: {0}]   ;;  %s1449_s6 = inlined_call_operand.hbm [shape: f32[1,8,128], index: 6, kind: output, shape index: {1}]  }
   0x1   :  { %13 = vsyncpa [#allocation6], 0  ;;  %s20_s23 = sshll.u32 %s1444_s1, 4  ;;  %s854_s24 = smov [#allocation4]   ;;  %s21_s23 = int_to_ptr.hbm [resolvable:$true] %s20_s23 }
   0x2   :  { %s22_s25 = sshll.u32 %s854_s24, 4  ;;  %s855_s26 = smov 384   ;;  %s23_s25 = int_to_ptr.vmem [resolvable:$true] %s22_s25 }
   0x3   :  { %s856_s27 = smov 24  }
   0x4   :  { %28 = dma.hbm_to_vmem [thread:$0]  %s21_s23, 3072, %s23_s25, [#allocation5], %s855_s26, %s855_s26, %s856_s27  }
   0x5   :  { %850 = dma.done.wait [#allocation5], 3072  }
   0x6   :  { %851 = vsyncadd [#allocation5], 4294964224  ;;  %v69_v0 = vld [vmem:[#allocation4 + $0xa8] sm:$0xff]  ;;  %v66_v2 = vld [vmem:[#allocation4 + $0x90] sm:$0xff]  ;;  %vm80_vm0 = vcmask 523264   ;;  %v857_v54 = vmov 0.0  }
   0x7   :  { %v900_v1 = vld [vmem:[%s1446_s3 + $0x168] sm:$0xff]  ;;  %101 = vmatpush.msra.mxu0 %v69_v0  ;;  %v906_v3 = vld [vmem:[%s1446_s3 + $0x150] sm:$0xff]  ;;  %v63_v4 = vld [vmem:[#allocation4 + $0x78] sm:$0xff]  ;;  %s858_s12 = smov [#allocation7]   ;;  %s718_s16 = sshll.u32 %s1449_s6, 4  ;;  %s719_s16 = int_to_ptr.hbm [resolvable:$true] %s718_s16 }
   0x8   :  { %248 = vmatpush.msra.mxu3 %v900_v1  ;;  %v911_v5 = vld [vmem:[%s1446_s3 + $0x138] sm:$0xff]  ;;  %v60_v6 = vld [vmem:[#allocation4 + $0x60] sm:$0xff]  ;;  %v57_v8 = vld [vmem:[#allocation4 + $0x48] sm:$0xff]  ;;  %s716_s13 = sshll.u32 %s858_s12, 4  ;;  %s717_s13 = int_to_ptr.vmem [resolvable:$true] %s716_s13 }
   0x9   :  { %102 = vmatpush.msra.mxu0 %v66_v2  ;;  %v917_v7 = vld [vmem:[%s1446_s3 + $0x120] sm:$0xff]  ;;  %v923_v9 = vld [vmem:[%s1446_s3 + $0x108] sm:$0xff]  ;;  %v70_v10 = vld [vmem:[#allocation4 + $0xb0] sm:$0xff] }
   0xa   :  { %249 = vmatpush.msra.mxu3 %v906_v3  ;;  %v67_v11 = vld [vmem:[#allocation4 + $0x98] sm:$0xff]  ;;  %v54_v12 = vld [vmem:[#allocation4 + $0x30] sm:$0xff]  ;;  %130 = vmatpush.msra.mxu1 %v70_v10  ;;  %v64_v14 = vld [vmem:[#allocation4 + $0x80] sm:$0xff] }
   0xb   :  { %103 = vmatpush.msra.mxu0 %v63_v4  ;;  %v929_v13 = vld [vmem:[%s1446_s3 + $0xf0] sm:$0xff]  ;;  %v51_v15 = vld [vmem:[#allocation4 + $0x18] sm:$0xff]  ;;  %v61_v17 = vld [vmem:[#allocation4 + $0x68] sm:$0xff] }
   0xc   :  { %250 = vmatpush.msra.mxu3 %v911_v5  ;;  %v935_v16 = vld [vmem:[%s1446_s3 + $0xd8] sm:$0xff]  ;;  %131 = vmatpush.msra.mxu1 %v67_v11  ;;  %v48_v18 = vld [vmem:[#allocation4] sm:$0xff]  ;;  %v58_v21 = vld [vmem:[#allocation4 + $0x50] sm:$0xff] }
   0xd   :  { %104 = vmatpush.msra.mxu0 %v60_v6  ;;  %v941_v19 = vld [vmem:[%s1446_s3 + $0xc0] sm:$0xff]  ;;  %v952_v22 = vld [vmem:[%s1446_s3 + $0xa8] sm:$0xff]  ;;  %v957_v23 = vld [vmem:[%s1446_s3 + $0x170] sm:$0xff] }
   0xe   :  { %251 = vmatpush.msra.mxu3 %v917_v7  ;;  %132 = vmatpush.msra.mxu1 %v64_v14  ;;  %v947_v20 = vld [vmem:[%s1443_s0] sm:$0xff]  ;;  %v55_v24 = vld [vmem:[#allocation4 + $0x38] sm:$0xff]  ;;  %v965_v25 = vld [vmem:[%s1446_s3 + $0x90] sm:$0xff] }
   0xf   :  { %105 = vmatpush.msra.mxu0 %v57_v8  ;;  %v970_v26 = vld [vmem:[%s1446_s3 + $0x158] sm:$0xff]  ;;  %v52_v27 = vld [vmem:[#allocation4 + $0x20] sm:$0xff]  ;;  %v49_v30 = vld [vmem:[#allocation4 + $0x8] sm:$0xff] }
  0x10   :  { %252 = vmatpush.msra.mxu3 %v923_v9  ;;  %133 = vmatpush.msra.mxu1 %v61_v17  ;;  %v977_v28 = vld [vmem:[%s1446_s3 + $0x78] sm:$0xff]  ;;  %v982_v29 = vld [vmem:[%s1446_s3 + $0x140] sm:$0xff]  ;;  %v994_v33 = vld [vmem:[%s1446_s3 + $0x128] sm:$0xff] }
  0x11   :  { %106 = vmatpush.msra.mxu0 %v54_v12  ;;  %v71_v31 = vld [vmem:[#allocation4 + $0xb8] sm:$0xff]  ;;  %v989_v32 = vld [vmem:[%s1446_s3 + $0x60] sm:$0xff]  ;;  %v1001_v35 = vld [vmem:[%s1443_s0 + $0x8] sm:$0xff] }
  0x12   :  { %253 = vmatpush.msra.mxu3 %v929_v13  ;;  %134 = vmatpush.msra.mxu1 %v58_v21  ;;  %v68_v34 = vld [vmem:[#allocation4 + $0xa0] sm:$0xff]  ;;  %v1006_v36 = vld [vmem:[%s1446_s3 + $0x48] sm:$0xff]  ;;  %v1011_v37 = vld [vmem:[%s1446_s3 + $0x110] sm:$0xff] }
  0x13   :  { %107 = vmatpush.msra.mxu0 %v51_v15  ;;  %159 = vmatpush.msra.mxu2 %v71_v31  ;;  %v1018_v38 = vld [vmem:[%s1446_s3 + $0x178] sm:$0xff]  ;;  %v65_v39 = vld [vmem:[#allocation4 + $0x88] sm:$0xff]  ;;  %v1025_v40 = vld [vmem:[%s1446_s3 + $0x30] sm:$0xff] }
  0x14   :  { %254 = vmatpush.msra.mxu3 %v935_v16  ;;  %135 = vmatpush.msra.mxu1 %v55_v24  ;;  %v1030_v41 = vld [vmem:[%s1446_s3 + $0xf8] sm:$0xff]  ;;  %v1039_v42 = vld [vmem:[%s1446_s3 + $0x160] sm:$0xff]  ;;  %v62_v43 = vld [vmem:[#allocation4 + $0x70] sm:$0xff] }
  0x15   :  { %108 = vmatpush.msra.mxu0 %v48_v18  ;;  %160 = vmatpush.msra.mxu2 %v68_v34  ;;  %v1044_v44 = vld [vmem:[%s1446_s3 + $0x18] sm:$0xff]  ;;  %v1049_v45 = vld [vmem:[%s1446_s3 + $0xe0] sm:$0xff]  ;;  %v1057_v46 = vld [vmem:[%s1446_s3 + $0x148] sm:$0xff] }
  0x16   :  { %255 = vmatpush.msra.mxu3 %v941_v19  ;;  %733 = vmatmul.msk.f32.vlgmr.msra.gmra.mxu0 %vm80_vm0, %v947_v20  ;;  %v59_v47 = vld [vmem:[#allocation4 + $0x58] sm:$0xff]  ;;  %v1062_v48 = vld [vmem:[%s1446_s3] sm:$0xff]  ;;  %v1067_v49 = vld [vmem:[%s1446_s3 + $0xc8] sm:$0xff] }
  0x17   :  { %268 = vmatpush.msrb.mxu0 %v957_v23  ;;  %136 = vmatpush.msra.mxu1 %v52_v27  ;;  %v1075_v50 = vld [vmem:[%s1443_s0 + $0x10] sm:$0xff]  ;;  %v56_v53 = vld [vmem:[#allocation4 + $0x40] sm:$0xff]  ;;  %v1096_v55 = vld [vmem:[%s1446_s3 + $0x98] sm:$0xff] }
  0x18   :  { %256 = vmatpush.msra.mxu3 %v952_v22  ;;  %161 = vmatpush.msra.mxu2 %v65_v39  ;;  %v1080_v51 = vld [vmem:[%s1446_s3 + $0xb0] sm:$0xff]  ;;  %v1101_v56 = vld [vmem:[%s1446_s3 + $0x118] sm:$0xff]  ;;  %v53_v57 = vld [vmem:[#allocation4 + $0x28] sm:$0xff] }
  0x19   :  { %269 = vmatpush.msrb.mxu0 %v970_v26  ;;  %137 = vmatpush.msra.mxu1 %v49_v30  ;;  %v1086_v52 = vld [vmem:[%s1446_s3 + $0x130] sm:$0xff]  ;;  %v1108_v58 = vld [vmem:[%s1446_s3 + $0x80] sm:$0xff]  ;;  %v1122_v61 = vld [vmem:[%s1446_s3 + $0x68] sm:$0xff] }
  0x1a   :  { %257 = vmatpush.msra.mxu3 %v965_v25  ;;  %737 = vmatmul.msk.f32.vlgmr.msra.gmra.mxu1 %vm80_vm0, %v947_v20  ;;  %v1115_v59 = vld [vmem:[%s1446_s3 + $0x100] sm:$0xff]  ;;  %v50_v60 = vld [vmem:[#allocation4 + $0x10] sm:$0xff]  ;;  %v1127_v62 = vld [vmem:[%s1446_s3 + $0xe8] sm:$0xff] }
  0x1b   :  { %270 = vmatpush.msrb.mxu0 %v982_v29  ;;  %288 = vmatpush.msrb.mxu1 %v1018_v38  ;;  %v1134_v63 = vld [vmem:[%s1443_s0 + $0x18] sm:$0xff]  ;;  %v1140_v0 = vld [vmem:[%s1446_s3 + $0x50] sm:$0xff]  ;;  %v1169_v8 = vld [vmem:[%s1446_s3 + $0x20] sm:$0xff] }
  0x1c   :  { %258 = vmatpush.msra.mxu3 %v977_v28  ;;  %162 = vmatpush.msra.mxu2 %v62_v43  ;;  %v1145_v2 = vld [vmem:[%s1446_s3 + $0xd0] sm:$0xff]  ;;  %v1155_v4 = vld [vmem:[%s1446_s3 + $0x38] sm:$0xff]  ;;  %v1176_v10 = vld [vmem:[%s1446_s3 + $0xa0] sm:$0xff] }
  0x1d   :  { %271 = vmatpush.msrb.mxu0 %v994_v33  ;;  %289 = vmatpush.msrb.mxu1 %v1039_v42  ;;  %v1160_v6 = vld [vmem:[%s1446_s3 + $0xb8] sm:$0xff]  ;;  %v1184_v11 = vld [vmem:[%s1446_s3 + $0x8] sm:$0xff]  ;;  %v1198_v14 = vld [vmem:[%s1446_s3 + $0x70] sm:$0xff] }
  0x1e   :  { %259 = vmatpush.msra.mxu3 %v989_v32  ;;  %734 = vmatmul.msk.f32.gmra.mxu0 %vm80_vm0, %v1001_v35  ;;  %v1189_v12 = vld [vmem:[%s1446_s3 + $0x88] sm:$0xff]  ;;  %v1208_v15 = vld [vmem:[%s1446_s3 + $0x58] sm:$0xff]  ;;  %v1218_v17 = vld [vmem:[%s1446_s3 + $0x40] sm:$0xff] }
  0x1f   :  { %272 = vmatpush.msrb.mxu0 %v1011_v37  ;;  %290 = vmatpush.msrb.mxu1 %v1057_v46  ;;  %v1227_v18 = vld [vmem:[%s1446_s3 + $0x28] sm:$0xff] }
  0x20   :  { %260 = vmatpush.msra.mxu3 %v1006_v36  ;;  %163 = vmatpush.msra.mxu2 %v59_v47 }
  0x21   :  { %273 = vmatpush.msrb.mxu0 %v1030_v41  ;;  %291 = vmatpush.msrb.mxu1 %v1086_v52 }
  0x22   :  { %261 = vmatpush.msra.mxu3 %v1025_v40  ;;  %738 = vmatmul.msk.f32.gmra.mxu1 %vm80_vm0, %v1001_v35 }
  0x23   :  { %274 = vmatpush.msrb.mxu0 %v1049_v45  ;;  %164 = vmatpush.msra.mxu2 %v56_v53 }
  0x24   :  { %262 = vmatpush.msra.mxu3 %v1044_v44  ;;  %292 = vmatpush.msrb.mxu1 %v1101_v56 }
  0x25   :  { %275 = vmatpush.msrb.mxu0 %v1067_v49  ;;  %165 = vmatpush.msra.mxu2 %v53_v57 }
  0x26   :  { %263 = vmatpush.msra.mxu3 %v1062_v48  ;;  %735 = vmatmul.msk.f32.gmra.mxu0 %vm80_vm0, %v1075_v50 }
  0x27   :  { %264 = vmatmul.f32.vlgmr.msra.gmra.mxu3 %v857_v54  ;;  %276 = vmatpush.msrb.mxu0 %v1080_v51 }
  0x28   :  { %385 = vmatpush.msrb.mxu3 %v957_v23  ;;  %293 = vmatpush.msrb.mxu1 %v1115_v59 }
  0x29   :  { %277 = vmatpush.msrb.mxu0 %v1096_v55  ;;  %166 = vmatpush.msra.mxu2 %v50_v60 }
  0x2a   :  { %386 = vmatpush.msrb.mxu3 %v970_v26  ;;  %294 = vmatpush.msrb.mxu1 %v1127_v62 }
  0x2b   :  { %278 = vmatpush.msrb.mxu0 %v1108_v58  ;;  %741 = vmatmul.msk.f32.vlgmr.msra.gmra.mxu2 %vm80_vm0, %v947_v20  ;;  %v1236_v20 = vld [vmem:[%s1446_s3 + $0x10] sm:$0xff] }
  0x2c   :  { %295 = vmatpush.msrb.mxu1 %v1145_v2  ;;  %365 = vmatpush.msrb.mxu2 %v900_v1 }
  0x2d   :  { %279 = vmatpush.msrb.mxu0 %v1122_v61  ;;  %739 = vmatmul.msk.f32.gmra.mxu1 %vm80_vm0, %v1075_v50 }
  0x2e   :  { %736 = vmatmul.msk.f32.gmra.mxu0 %vm80_vm0, %v1134_v63  ;;  %296 = vmatpush.msrb.mxu1 %v1160_v6 }
  0x2f   :  { %280 = vmatpush.msrb.mxu0 %v1140_v0  ;;  %366 = vmatpush.msrb.mxu2 %v906_v3 }
  0x30   :  { %387 = vmatpush.msrb.mxu3 %v982_v29  ;;  %297 = vmatpush.msrb.mxu1 %v1176_v10 }
  0x31   :  { %281 = vmatpush.msrb.mxu0 %v1155_v4  ;;  %367 = vmatpush.msrb.mxu2 %v911_v5 }
  0x32   :  { %388 = vmatpush.msrb.mxu3 %v994_v33  ;;  %298 = vmatpush.msrb.mxu1 %v1189_v12 }
  0x33   :  { %282 = vmatpush.msrb.mxu0 %v1169_v8  ;;  %368 = vmatpush.msrb.mxu2 %v917_v7 }
  0x34   :  { %299 = vmatpush.msrb.mxu1 %v1198_v14  ;;  %742 = vmatmul.msk.f32.gmra.mxu2 %vm80_vm0, %v1001_v35 }
  0x35   :  { %283 = vmatpush.msrb.mxu0 %v1184_v11  ;;  %740 = vmatmul.msk.f32.gmra.mxu1 %vm80_vm0, %v1134_v63 }
  0x36   :  { %284 = vmatmul.f32.vlgmr.msrb.gmra.mxu0 %v857_v54  ;;  %300 = vmatpush.msrb.mxu1 %v1208_v15 }
  0x37   :  { %405 = vmatpush.msra.mxu0 %v1018_v38  ;;  %369 = vmatpush.msrb.mxu2 %v923_v9 }
  0x38   :  { %389 = vmatpush.msrb.mxu3 %v1011_v37  ;;  %301 = vmatpush.msrb.mxu1 %v1218_v17 }
  0x39   :  { %406 = vmatpush.msra.mxu0 %v1039_v42  ;;  %370 = vmatpush.msrb.mxu2 %v929_v13 }
  0x3a   :  { %390 = vmatpush.msrb.mxu3 %v1030_v41  ;;  %302 = vmatpush.msrb.mxu1 %v1227_v18 }
  0x3b   :  { %407 = vmatpush.msra.mxu0 %v1057_v46  ;;  %371 = vmatpush.msrb.mxu2 %v935_v16 }
  0x3c   :  { %391 = vmatpush.msrb.mxu3 %v1049_v45  ;;  %303 = vmatpush.msrb.mxu1 %v1236_v20 }
  0x3d   :  { %408 = vmatpush.msra.mxu0 %v1086_v52  ;;  %304 = vmatmul.f32.vlgmr.msrb.gmra.mxu1 %v857_v54 }
  0x3e   :  { %372 = vmatpush.msrb.mxu2 %v941_v19  ;;  %392 = vmatpush.msrb.mxu3 %v1067_v49 }
  0x3f   :  { %409 = vmatpush.msra.mxu0 %v1101_v56  ;;  %743 = vmatmul.msk.f32.gmra.mxu2 %vm80_vm0, %v1075_v50  ;;  %v1380_v50 = vld [vmem:[%s1447_s4] ss:$0 sm:$0xff] }
  0x40   :  { %480 = vmatpush.msra.mxu1 %v900_v1  ;;  %373 = vmatpush.msrb.mxu2 %v952_v22 }
  0x41   :  { %410 = vmatpush.msra.mxu0 %v1115_v59  ;;  %393 = vmatpush.msrb.mxu3 %v1080_v51 }
  0x42   :  { %481 = vmatpush.msra.mxu1 %v906_v3  ;;  %374 = vmatpush.msrb.mxu2 %v965_v25 }
  0x43   :  { %411 = vmatpush.msra.mxu0 %v1127_v62  ;;  %394 = vmatpush.msrb.mxu3 %v1096_v55 }
  0x44   :  { %482 = vmatpush.msra.mxu1 %v911_v5  ;;  %375 = vmatpush.msrb.mxu2 %v977_v28 }
  0x45   :  { %412 = vmatpush.msra.mxu0 %v1145_v2  ;;  %395 = vmatpush.msrb.mxu3 %v1108_v58 }
  0x46   :  { %483 = vmatpush.msra.mxu1 %v917_v7  ;;  %376 = vmatpush.msrb.mxu2 %v989_v32 }
  0x47   :  { %413 = vmatpush.msra.mxu0 %v1160_v6  ;;  %396 = vmatpush.msrb.mxu3 %v1122_v61 }
  0x48   :  { %744 = vmatmul.msk.f32.gmra.mxu2 %vm80_vm0, %v1134_v63  ;;  %484 = vmatpush.msra.mxu1 %v923_v9 }
  0x49   :  { %414 = vmatpush.msra.mxu0 %v1176_v10  ;;  %377 = vmatpush.msrb.mxu2 %v1006_v36 }
  0x4a   :  { %397 = vmatpush.msrb.mxu3 %v1140_v0  ;;  %485 = vmatpush.msra.mxu1 %v929_v13 }
  0x4b   :  { %415 = vmatpush.msra.mxu0 %v1189_v12  ;;  %378 = vmatpush.msrb.mxu2 %v1025_v40 }
  0x4c   :  { %398 = vmatpush.msrb.mxu3 %v1155_v4  ;;  %486 = vmatpush.msra.mxu1 %v935_v16 }
  0x4d   :  { %416 = vmatpush.msra.mxu0 %v1198_v14  ;;  %379 = vmatpush.msrb.mxu2 %v1044_v44 }
  0x4e   :  { %399 = vmatpush.msrb.mxu3 %v1169_v8  ;;  %487 = vmatpush.msra.mxu1 %v941_v19 }
  0x4f   :  { %417 = vmatpush.msra.mxu0 %v1208_v15  ;;  %380 = vmatpush.msrb.mxu2 %v1062_v48 }
  0x50   :  { %400 = vmatpush.msrb.mxu3 %v1184_v11  ;;  %488 = vmatpush.msra.mxu1 %v952_v22 }
  0x51   :  { %418 = vmatpush.msra.mxu0 %v1218_v17  ;;  %500 = vmatpush.msra.mxu2 %v957_v23 }
  0x52   :  { %520 = vmatpush.msra.mxu3 %v1018_v38  ;;  %489 = vmatpush.msra.mxu1 %v965_v25 }
  0x53   :  { %419 = vmatpush.msra.mxu0 %v1227_v18  ;;  %501 = vmatpush.msra.mxu2 %v970_v26 }
  0x54   :  { %521 = vmatpush.msra.mxu3 %v1039_v42  ;;  %490 = vmatpush.msra.mxu1 %v977_v28 }
  0x55   :  { %420 = vmatpush.msra.mxu0 %v1236_v20  ;;  %502 = vmatpush.msra.mxu2 %v982_v29 }
  0x56   :  { %522 = vmatpush.msra.mxu3 %v1057_v46  ;;  %491 = vmatpush.msra.mxu1 %v989_v32 }
  0x57   :  { %595 = vmatpush.msrb.mxu0 %v900_v1  ;;  %503 = vmatpush.msra.mxu2 %v994_v33 }
  0x58   :  { %523 = vmatpush.msra.mxu3 %v1086_v52  ;;  %492 = vmatpush.msra.mxu1 %v1006_v36 }
  0x59   :  { %596 = vmatpush.msrb.mxu0 %v906_v3  ;;  %504 = vmatpush.msra.mxu2 %v1011_v37  ;;  %v72_v3 = vld [vmem:[%s1445_s2] sm:$0x7] }
  0x5a   :  { %524 = vmatpush.msra.mxu3 %v1101_v56  ;;  %493 = vmatpush.msra.mxu1 %v1025_v40  ;;  %v75_v21 = vperm.slane %v72_v3, 1  ;;  %v1382_v57 = vperm.slane %v72_v3, 2 }
  0x5b   :  { %597 = vmatpush.msrb.mxu0 %v911_v5  ;;  %505 = vmatpush.msra.mxu2 %v1030_v41  ;;  %v74_v5 = vperm.slane %v72_v3, 0 }
  0x5c   :  { %525 = vmatpush.msra.mxu3 %v1115_v59  ;;  %494 = vmatpush.msra.mxu1 %v1044_v44 }
  0x5d   :  { %598 = vmatpush.msrb.mxu0 %v917_v7  ;;  %506 = vmatpush.msra.mxu2 %v1049_v45 }
  0x5e   :  { %526 = vmatpush.msra.mxu3 %v1127_v62  ;;  %495 = vmatpush.msra.mxu1 %v1062_v48 }
  0x5f   :  { %599 = vmatpush.msrb.mxu0 %v923_v9  ;;  %507 = vmatpush.msra.mxu2 %v1067_v49 }
  0x60   :  { %527 = vmatpush.msra.mxu3 %v1145_v2  ;;  %615 = vmatpush.msrb.mxu1 %v957_v23 }
  0x61   :  { %600 = vmatpush.msrb.mxu0 %v929_v13  ;;  %508 = vmatpush.msra.mxu2 %v1080_v51 }
  0x62   :  { %528 = vmatpush.msra.mxu3 %v1160_v6  ;;  %616 = vmatpush.msrb.mxu1 %v970_v26 }
  0x63   :  { %601 = vmatpush.msrb.mxu0 %v935_v16  ;;  %509 = vmatpush.msra.mxu2 %v1096_v55 }
  0x64   :  { %529 = vmatpush.msra.mxu3 %v1176_v10  ;;  %617 = vmatpush.msrb.mxu1 %v982_v29 }
  0x65   :  { %510 = vmatpush.msra.mxu2 %v1108_v58  ;;  %602 = vmatpush.msrb.mxu0 %v941_v19 }
  0x66   :  { %530 = vmatpush.msra.mxu3 %v1189_v12  ;;  %618 = vmatpush.msrb.mxu1 %v994_v33 }
  0x67   :  { %511 = vmatpush.msra.mxu2 %v1122_v61  ;;  %603 = vmatpush.msrb.mxu0 %v952_v22 }
  0x68   :  { %531 = vmatpush.msra.mxu3 %v1198_v14  ;;  %619 = vmatpush.msrb.mxu1 %v1011_v37 }
  0x69   :  { %512 = vmatpush.msra.mxu2 %v1140_v0  ;;  %604 = vmatpush.msrb.mxu0 %v965_v25 }
  0x6a   :  { %532 = vmatpush.msra.mxu3 %v1208_v15  ;;  %620 = vmatpush.msrb.mxu1 %v1030_v41 }
  0x6b   :  { %513 = vmatpush.msra.mxu2 %v1155_v4  ;;  %605 = vmatpush.msrb.mxu0 %v977_v28 }
  0x6c   :  { %533 = vmatpush.msra.mxu3 %v1218_v17  ;;  %621 = vmatpush.msrb.mxu1 %v1049_v45 }
  0x6d   :  { %514 = vmatpush.msra.mxu2 %v1169_v8  ;;  %606 = vmatpush.msrb.mxu0 %v989_v32 }
  0x6e   :  { %534 = vmatpush.msra.mxu3 %v1227_v18  ;;  %622 = vmatpush.msrb.mxu1 %v1067_v49 }
  0x6f   :  { %515 = vmatpush.msra.mxu2 %v1184_v11  ;;  %607 = vmatpush.msrb.mxu0 %v1006_v36 }
  0x70   :  { %535 = vmatpush.msra.mxu3 %v1236_v20  ;;  %623 = vmatpush.msrb.mxu1 %v1080_v51 }
  0x71   :  { %608 = vmatpush.msrb.mxu0 %v1025_v40 }
  0x72   :  { %624 = vmatpush.msrb.mxu1 %v1096_v55 }
  0x73   :  { %609 = vmatpush.msrb.mxu0 %v1044_v44 }
  0x74   :  { %625 = vmatpush.msrb.mxu1 %v1108_v58 }
  0x75   :  { %610 = vmatpush.msrb.mxu0 %v1062_v48 }
  0x76   :  { %626 = vmatpush.msrb.mxu1 %v1122_v61 }
  0x78   :  { %627 = vmatpush.msrb.mxu1 %v1140_v0 }
  0x7a   :  { %628 = vmatpush.msrb.mxu1 %v1155_v4 }
  0x7c   :  { %629 = vmatpush.msrb.mxu1 %v1169_v8 }
  0x7e   :  { %630 = vmatpush.msrb.mxu1 %v1184_v11 }
  0x93   :  { %v110_v1 = vpop.f32.mrf.mxu0 }
  0x94   :  { %v111_v24 = vadd.f32 %v110_v1, %v74_v5 }
  0x97   :  { %v139_v9 = vpop.f32.mrf.mxu1 }
  0x98   :  { %v140_v32 = vadd.f32 %v139_v9, %v75_v21 }
  0x9b   :  { %v113_v7 = vpop.f32.mrf.mxu0 }
  0x9c   :  { %v1363_v13 = vadd.f32 %v113_v7, %v74_v5 }
  0x9f   :  { %v142_v22 = vpop.f32.mrf.mxu1 }
  0xa0   :  { %v1367_v23 = vadd.f32 %v142_v22, %v75_v21 }
  0xa3   :  { %v116_v16 = vpop.f32.mrf.mxu0 }
  0xa4   :  { %v1365_v19 = vadd.f32 %v116_v16, %v74_v5 }
  0xaa   :  { %v265_v25 = vpop.f32.mrf.mxu3  ;;  %v145_v30 = vpop.f32.mrf.mxu1 }
  0xab   :  { %v308_v26 = vadd.f32 %v265_v25, %v111_v24  ;;  %v119_v27 = vpop.f32.mrf.mxu0  ;;  %v1371_v31 = vadd.f32 %v145_v30, %v75_v21 }
  0xac   :  { %v1369_v29 = vadd.f32 %v119_v27, %v74_v5 }
  0xad   :  { %v745_v28 = vmul.f32 -1.442695, %v308_v26 }
  0xae   :  { %v168_v34 = vpop.f32.mrf.mxu2 }
  0xaf   :  { %762 = vpow2.f32 %v745_v28  ;;  %v169_v4 = vadd.f32 %v168_v34, %v1382_v57 }
  0xb2   :  { %v148_v39 = vpop.f32.mrf.mxu1 }
  0xb3   :  { %v285_v33 = vpop.f32.mrf.mxu0  ;;  %v1373_v41 = vadd.f32 %v148_v39, %v75_v21 }
  0xb4   :  { %v328_v36 = vadd.f32 %v285_v33, %v140_v32 }
  0xb5   :  { %v763_v35 = vpop.eup %762 }
  0xb6   :  { %v312_v37 = vadd.f32 1.0, %v763_v35  ;;  %v746_v40 = vmul.f32 -1.442695, %v328_v36 }
  0xb7   :  { %v1375_v43 = vpop.f32.mrf.mxu2 }
  0xb8   :  { %764 = vrcp.f32 %v312_v37  ;;  %v324_v53 = vand.u32 2147483648, %v312_v37  ;;  %v322_v55 = vand.u32 2147483647, %v312_v37  ;;  %vm318_vm2 = vweird.f32 %v312_v37 }
  0xb9   :  { %766 = vpow2.f32 %v746_v40 }
  0xba   :  { %v305_v51 = vpop.f32.mrf.mxu1  ;;  %v325_v61 = vor.u32 1.1754944e-38, %v324_v53  ;;  %vm323_vm4 = vcmp.eq.f32.partialorder %v322_v55, 8.507059e+37 }
  0xbb   :  { %v351_v60 = vadd.f32 %v1380_v50, %v305_v51 }
  0xbe   :  { %v765_v44 = vpop.eup %764 }
  0xbf   :  { %v767_v45 = vpop.eup %766  ;;  %v314_v47 = vmul.f32 %v765_v44, %v312_v37  ;;  %vm319_vm1 = vweird.f32 %v765_v44 }
  0xc0   :  { %v332_v48 = vadd.f32 1.0, %v767_v45  ;;  %vm320_vm3 = vmor %vm318_vm2, %vm319_vm1 }
  0xc1   :  { %v315_v49 = vsub.f32 1.0, %v314_v47  ;;  %v172_v47 = vadd.f32 %v1375_v43, %v1382_v57 }
  0xc2   :  { %768 = vrcp.f32 %v332_v48  ;;  %v174_v63 = vpop.f32.mrf.mxu2  ;;  %v344_v21 = vand.u32 2147483648, %v332_v48  ;;  %vm338_vm6 = vweird.f32 %v332_v48  ;;  %v342_v24 = vand.u32 2147483647, %v332_v48 }
  0xc3   :  { %v316_v54 = vmul.f32 %v765_v44, %v315_v49  ;;  %v1387_v8 = vadd.f32 %v174_v63, %v1382_v57 }
  0xc4   :  { %v345_v27 = vor.u32 1.1754944e-38, %v344_v21  ;;  %vm343_vm8 = vcmp.eq.f32.partialorder %v342_v24, 8.507059e+37 }
  0xc5   :  { %v317_v58 = vadd.f32 %v765_v44, %v316_v54 }
  0xc7   :  { %v321_v0 = vsel %vm320_vm3, %v765_v44, %v317_v58 }
  0xc8   :  { %v769_v11 = vpop.eup %768  ;;  %v326_v1 = vsel %vm323_vm4, %v325_v61, %v321_v0 }
  0xc9   :  { %v334_v5 = vmul.f32 %v769_v11, %v332_v48  ;;  %v352_v7 = vmul.f32 %v351_v60, %v326_v1  ;;  %vm339_vm5 = vweird.f32 %v769_v11 }
  0xca   :  { %vm340_vm7 = vmor %vm338_vm6, %vm339_vm5 }
  0xcb   :  { %v335_v3 = vsub.f32 1.0, %v334_v5  ;;  %v353_v9 = vadd.f32 %v352_v7, %v169_v4 }
  0xcd   :  { %v336_v16 = vmul.f32 %v769_v11, %v335_v3  ;;  %770 = vtanh.f32 %v353_v9 }
  0xcf   :  { %v337_v22 = vadd.f32 %v769_v11, %v336_v16 }
  0xd1   :  { %v341_v25 = vsel %vm340_vm7, %v769_v11, %v337_v22 }
  0xd2   :  { %v346_v30 = vsel %vm343_vm8, %v345_v27, %v341_v25 }
  0xd3   :  { %v771_v26 = vpop.eup %770 }
  0xd4   :  { %v355_v28 = vsub.f32 0.0, %v771_v26 }
  0xd6   :  { %v356_v32 = vmul.f32 %v355_v28, %v346_v30 }
  0xd8   :  { %v1389_v33 = vadd.f32 %v771_v26, %v356_v32 }
  0xda   :  { %358 = vst [vmem:[%s1448_s5] sm:$0xff] %v1389_v33  ;;  %381 = vmatmul.f32.vlgmr.msrb.gmra.mxu2 %v1389_v33  ;;  %401 = vmatmul.f32.vlgmr.msrb.gmra.mxu3 %v1389_v33 }
  0xdb   :  { %421 = vmatmul.f32.vlgmr.msra.gmra.mxu0 %v1389_v33  ;;  %635 = vmatpush.msrb.mxu2 %v1018_v38  ;;  %v1414_v38 = vpop.f32.mrf.mxu2 }
  0xdd   :  { %636 = vmatpush.msrb.mxu2 %v1039_v42 }
  0xdf   :  { %637 = vmatpush.msrb.mxu2 %v1057_v46 }
  0xe1   :  { %638 = vmatpush.msrb.mxu2 %v1086_v52 }
  0xe3   :  { %639 = vmatpush.msrb.mxu2 %v1101_v56 }
  0xe5   :  { %640 = vmatpush.msrb.mxu2 %v1115_v59 }
  0xe7   :  { %641 = vmatpush.msrb.mxu2 %v1127_v62 }
  0xe9   :  { %642 = vmatpush.msrb.mxu2 %v1145_v2 }
  0xeb   :  { %643 = vmatpush.msrb.mxu2 %v1160_v6 }
  0xed   :  { %644 = vmatpush.msrb.mxu2 %v1176_v10 }
  0xef   :  { %645 = vmatpush.msrb.mxu2 %v1189_v12 }
  0xf1   :  { %646 = vmatpush.msrb.mxu2 %v1198_v14 }
  0xf3   :  { %647 = vmatpush.msrb.mxu2 %v1208_v15 }
  0xf5   :  { %648 = vmatpush.msrb.mxu2 %v1218_v17 }
  0xf7   :  { %649 = vmatpush.msrb.mxu2 %v1227_v18 }
  0xf9   :  { %650 = vmatpush.msrb.mxu2 %v1236_v20 }
 0x15d   :  { %v382_v42 = vpop.f32.mrf.mxu2  ;;  %v402_v46 = vpop.f32.mrf.mxu3 }
 0x15e   :  { %v425_v52 = vadd.f32 %v382_v42, %v1363_v13  ;;  %v445_v56 = vadd.f32 %v402_v46, %v1367_v23  ;;  %v422_v23 = vpop.f32.mrf.mxu0 }
 0x15f   :  { %v465_v40 = vadd.f32 %v1380_v50, %v422_v23 }
 0x160   :  { %v747_v59 = vmul.f32 -1.442695, %v425_v52  ;;  %v748_v62 = vmul.f32 -1.442695, %v445_v56 }
 0x162   :  { %772 = vpow2.f32 %v747_v59 }
 0x163   :  { %774 = vpow2.f32 %v748_v62 }
 0x168   :  { %v773_v2 = vpop.eup %772 }
 0x169   :  { %v775_v6 = vpop.eup %774  ;;  %v429_v10 = vadd.f32 1.0, %v773_v2 }
 0x16a   :  { %v449_v12 = vadd.f32 1.0, %v775_v6 }
 0x16b   :  { %776 = vrcp.f32 %v429_v10  ;;  %v441_v20 = vand.u32 2147483648, %v429_v10  ;;  %v439_v13 = vand.u32 2147483647, %v429_v10  ;;  %vm435_vm10 = vweird.f32 %v429_v10 }
 0x16c   :  { %778 = vrcp.f32 %v449_v12  ;;  %v461_v54 = vand.u32 2147483648, %v449_v12  ;;  %vm455_vm14 = vweird.f32 %v449_v12  ;;  %v459_v55 = vand.u32 2147483647, %v449_v12 }
 0x16d   :  { %v442_v37 = vor.u32 1.1754944e-38, %v441_v20  ;;  %vm440_vm12 = vcmp.eq.f32.partialorder %v439_v13, 8.507059e+37 }
 0x16e   :  { %v462_v61 = vor.u32 1.1754944e-38, %v461_v54  ;;  %vm460_vm0 = vcmp.eq.f32.partialorder %v459_v55, 8.507059e+37 }
 0x171   :  { %v777_v14 = vpop.eup %776 }
 0x172   :  { %v779_v15 = vpop.eup %778  ;;  %v431_v17 = vmul.f32 %v777_v14, %v429_v10  ;;  %vm436_vm9 = vweird.f32 %v777_v14 }
 0x173   :  { %v451_v34 = vmul.f32 %v779_v15, %v449_v12  ;;  %vm437_vm11 = vmor %vm435_vm10, %vm436_vm9  ;;  %vm456_vm13 = vweird.f32 %v779_v15 }
 0x174   :  { %v432_v18 = vsub.f32 1.0, %v431_v17  ;;  %vm457_vm15 = vmor %vm455_vm14, %vm456_vm13 }
 0x175   :  { %v452_v39 = vsub.f32 1.0, %v451_v34 }
 0x176   :  { %v433_v35 = vmul.f32 %v777_v14, %v432_v18 }
 0x177   :  { %v453_v49 = vmul.f32 %v779_v15, %v452_v39 }
 0x178   :  { %v434_v36 = vadd.f32 %v777_v14, %v433_v35 }
 0x179   :  { %v454_v53 = vadd.f32 %v779_v15, %v453_v49 }
 0x17a   :  { %v438_v44 = vsel %vm437_vm11, %v777_v14, %v434_v36 }
 0x17b   :  { %v443_v45 = vsel %vm440_vm12, %v442_v37, %v438_v44  ;;  %v458_v58 = vsel %vm457_vm15, %v779_v15, %v454_v53 }
 0x17c   :  { %v466_v48 = vmul.f32 %v465_v40, %v443_v45  ;;  %v463_v0 = vsel %vm460_vm0, %v462_v61, %v458_v58 }
 0x17e   :  { %v467_v51 = vadd.f32 %v466_v48, %v172_v47 }
 0x180   :  { %780 = vtanh.f32 %v467_v51 }
 0x186   :  { %v781_v60 = vpop.eup %780 }
 0x187   :  { %v469_v63 = vsub.f32 %v1389_v33, %v781_v60 }
 0x189   :  { %v470_v4 = vmul.f32 %v469_v63, %v463_v0 }
 0x18b   :  { %v471_v11 = vadd.f32 %v781_v60, %v470_v4 }
 0x18d   :  { %749 = vst [vmem:[%s1448_s5 + $0x8] sm:$0xff] %v471_v11  ;;  %496 = vmatmul.f32.vlgmr.msra.gmra.mxu1 %v471_v11  ;;  %516 = vmatmul.f32.vlgmr.msra.gmra.mxu2 %v471_v11 }
 0x18e   :  { %536 = vmatmul.f32.vlgmr.msra.gmra.mxu3 %v471_v11 }
 0x20a   :  { %v497_v43 = vpop.f32.mrf.mxu1 }
 0x20b   :  { %v540_v1 = vadd.f32 %v497_v43, %v1365_v19 }
 0x20d   :  { %v750_v5 = vmul.f32 -1.442695, %v540_v1 }
 0x20f   :  { %782 = vpow2.f32 %v750_v5  ;;  %v178_v5 = vadd.f32 %v1414_v38, %v1382_v57 }
 0x210   :  { %v517_v7 = vpop.f32.mrf.mxu2 }
 0x211   :  { %v560_v3 = vadd.f32 %v517_v7, %v1371_v31  ;;  %v537_v33 = vpop.f32.mrf.mxu3 }
 0x212   :  { %v580_v59 = vadd.f32 %v1380_v50, %v537_v33 }
 0x213   :  { %v751_v9 = vmul.f32 -1.442695, %v560_v3 }
 0x215   :  { %v783_v16 = vpop.eup %782  ;;  %784 = vpow2.f32 %v751_v9 }
 0x216   :  { %v544_v21 = vadd.f32 1.0, %v783_v16 }
 0x218   :  { %786 = vrcp.f32 %v544_v21  ;;  %v556_v28 = vand.u32 2147483648, %v544_v21  ;;  %v554_v19 = vand.u32 2147483647, %v544_v21  ;;  %vm550_vm2 = vweird.f32 %v544_v21 }
 0x21a   :  { %v557_v31 = vor.u32 1.1754944e-38, %v556_v28  ;;  %vm555_vm4 = vcmp.eq.f32.partialorder %v554_v19, 8.507059e+37 }
 0x21b   :  { %v785_v22 = vpop.eup %784 }
 0x21c   :  { %v564_v24 = vadd.f32 1.0, %v785_v22 }
 0x21e   :  { %v787_v25 = vpop.eup %786  ;;  %788 = vrcp.f32 %v564_v24  ;;  %v576_v14 = vand.u32 2147483648, %v564_v24  ;;  %vm570_vm6 = vweird.f32 %v564_v24  ;;  %v574_v15 = vand.u32 2147483647, %v564_v24 }
 0x21f   :  { %v546_v26 = vmul.f32 %v787_v25, %v544_v21  ;;  %vm551_vm1 = vweird.f32 %v787_v25 }
 0x220   :  { %vm552_vm3 = vmor %vm550_vm2, %vm551_vm1  ;;  %v577_v20 = vor.u32 1.1754944e-38, %v576_v14  ;;  %vm575_vm8 = vcmp.eq.f32.partialorder %v574_v15, 8.507059e+37 }
 0x221   :  { %v547_v27 = vsub.f32 1.0, %v546_v26 }
 0x223   :  { %v548_v30 = vmul.f32 %v787_v25, %v547_v27 }
 0x224   :  { %v789_v32 = vpop.eup %788 }
 0x225   :  { %v566_v42 = vmul.f32 %v789_v32, %v564_v24  ;;  %v549_v46 = vadd.f32 %v787_v25, %v548_v30  ;;  %vm571_vm5 = vweird.f32 %v789_v32 }
 0x226   :  { %vm572_vm7 = vmor %vm570_vm6, %vm571_vm5 }
 0x227   :  { %v567_v52 = vsub.f32 1.0, %v566_v42  ;;  %v553_v56 = vsel %vm552_vm3, %v787_v25, %v549_v46 }
 0x228   :  { %v558_v62 = vsel %vm555_vm4, %v557_v31, %v553_v56 }
 0x229   :  { %v581_v2 = vmul.f32 %v580_v59, %v558_v62  ;;  %v568_v6 = vmul.f32 %v789_v32, %v567_v52 }
 0x22b   :  { %v582_v10 = vadd.f32 %v581_v2, %v1387_v8  ;;  %v569_v12 = vadd.f32 %v789_v32, %v568_v6 }
 0x22d   :  { %790 = vtanh.f32 %v582_v10  ;;  %v573_v17 = vsel %vm572_vm7, %v789_v32, %v569_v12 }
 0x22e   :  { %v578_v35 = vsel %vm575_vm8, %v577_v20, %v573_v17 }
 0x233   :  { %v791_v18 = vpop.eup %790 }
 0x234   :  { %v584_v34 = vsub.f32 %v471_v11, %v791_v18 }
 0x236   :  { %v585_v13 = vmul.f32 %v584_v34, %v578_v35 }
 0x238   :  { %v586_v23 = vadd.f32 %v791_v18, %v585_v13 }
 0x23a   :  { %752 = vst [vmem:[%s1448_s5 + $0x10] sm:$0xff] %v586_v23  ;;  %611 = vmatmul.f32.vlgmr.msrb.gmra.mxu0 %v586_v23  ;;  %631 = vmatmul.f32.vlgmr.msrb.gmra.mxu1 %v586_v23 }
 0x23b   :  { %651 = vmatmul.f32.vlgmr.msrb.gmra.mxu2 %v586_v23 }
 0x2b7   :  { %v612_v8 = vpop.f32.mrf.mxu0  ;;  %v632_v36 = vpop.f32.mrf.mxu1 }
 0x2b8   :  { %v655_v37 = vadd.f32 %v612_v8, %v1369_v29  ;;  %v675_v39 = vadd.f32 %v632_v36, %v1373_v41 }
 0x2ba   :  { %v753_v40 = vmul.f32 -1.442695, %v655_v37  ;;  %v754_v44 = vmul.f32 -1.442695, %v675_v39 }
 0x2bc   :  { %792 = vpow2.f32 %v753_v40 }
 0x2bd   :  { %794 = vpow2.f32 %v754_v44 }
 0x2be   :  { %v652_v41 = vpop.f32.mrf.mxu2 }
 0x2bf   :  { %v695_v43 = vadd.f32 %v1380_v50, %v652_v41 }
 0x2c2   :  { %v793_v45 = vpop.eup %792 }
 0x2c3   :  { %v795_v47 = vpop.eup %794  ;;  %v659_v48 = vadd.f32 1.0, %v793_v45 }
 0x2c4   :  { %v679_v49 = vadd.f32 1.0, %v795_v47 }
 0x2c5   :  { %796 = vrcp.f32 %v659_v48  ;;  %v671_v60 = vand.u32 2147483648, %v659_v48  ;;  %v669_v29 = vand.u32 2147483647, %v659_v48  ;;  %vm665_vm10 = vweird.f32 %v659_v48 }
 0x2c6   :  { %798 = vrcp.f32 %v679_v49  ;;  %v691_v21 = vand.u32 2147483648, %v679_v49  ;;  %vm685_vm14 = vweird.f32 %v679_v49  ;;  %v689_v22 = vand.u32 2147483647, %v679_v49 }
 0x2c7   :  { %v672_v4 = vor.u32 1.1754944e-38, %v671_v60  ;;  %vm670_vm12 = vcmp.eq.f32.partialorder %v669_v29, 8.507059e+37 }
 0x2c8   :  { %v692_v26 = vor.u32 1.1754944e-38, %v691_v21  ;;  %vm690_vm0 = vcmp.eq.f32.partialorder %v689_v22, 8.507059e+37 }
 0x2cb   :  { %v797_v51 = vpop.eup %796 }
 0x2cc   :  { %v799_v53 = vpop.eup %798  ;;  %v661_v54 = vmul.f32 %v797_v51, %v659_v48  ;;  %vm666_vm9 = vweird.f32 %v797_v51 }
 0x2cd   :  { %v681_v58 = vmul.f32 %v799_v53, %v679_v49  ;;  %vm667_vm11 = vmor %vm665_vm10, %vm666_vm9  ;;  %vm686_vm13 = vweird.f32 %v799_v53 }
 0x2ce   :  { %v662_v55 = vsub.f32 1.0, %v661_v54  ;;  %vm687_vm15 = vmor %vm685_vm14, %vm686_vm13 }
 0x2cf   :  { %v682_v0 = vsub.f32 1.0, %v681_v58 }
 0x2d0   :  { %v663_v61 = vmul.f32 %v797_v51, %v662_v55 }
 0x2d1   :  { %v683_v3 = vmul.f32 %v799_v53, %v682_v0 }
 0x2d2   :  { %v664_v63 = vadd.f32 %v797_v51, %v663_v61 }
 0x2d3   :  { %v684_v16 = vadd.f32 %v799_v53, %v683_v3 }
 0x2d4   :  { %v668_v11 = vsel %vm667_vm11, %v797_v51, %v664_v63 }
 0x2d5   :  { %v673_v1 = vsel %vm670_vm12, %v672_v4, %v668_v11  ;;  %v688_v24 = vsel %vm687_vm15, %v799_v53, %v684_v16 }
 0x2d6   :  { %v696_v7 = vmul.f32 %v695_v43, %v673_v1  ;;  %v693_v50 = vsel %vm690_vm0, %v692_v26, %v688_v24 }
 0x2d8   :  { %v697_v9 = vadd.f32 %v696_v7, %v178_v5 }
 0x2da   :  { %800 = vtanh.f32 %v697_v9 }
 0x2e0   :  { %v801_v25 = vpop.eup %800 }
 0x2e1   :  { %v699_v27 = vsub.f32 %v586_v23, %v801_v25 }
 0x2e3   :  { %v700_v28 = vmul.f32 %v699_v27, %v693_v50 }
 0x2e5   :  { %v701_v57 = vadd.f32 %v801_v25, %v700_v28 }
 0x2e7   :  { %755 = vst [vmem:[%s1448_s5 + $0x18] sm:$0xff] %v701_v57 }
 0x2e8   :  { %708 = vst [vmem:[#allocation7] sm:$0xff] %v701_v57 }
 0x2e9   :  { %721 = dma.vmem_to_hbm [thread:$0]  %s717_s13, 128, %s719_s16, [#allocation6]  }
 0x2ea   :  { %852 = dma.done.wait [#allocation6], 128  }
 0x2eb   :  { %853 = vsyncadd [#allocation6], 4294967168 }
 0x2ec   :  { %728 = vsyncpa [#allocation5], 1 }
 0x2ed   :  { %729 = vsyncpa [#allocation6], 1 }

// kernel: encoder_rnn_forward.3
= control target key start
LH: loop header
LB: loop body
LE: loop exit
PB: predicated region body
PF: predicated region fallthrough
CT: control target
= control target key end

     0   :  { %12 = vsyncpa [#allocation5], 0  ;;  %s2440_s0 = inlined_call_operand.vmem [shape: f32[8,8,32], index: 0, kind: input, shape index: {}]   ;;  %s2441_s1 = inlined_call_operand.hbm [shape: f32[32,384], index: 1, kind: input, shape index: {}]   ;;  %s2442_s2 = inlined_call_operand.hbm [shape: f32[1,384], index: 2, kind: input, shape index: {}]   ;;  %s2443_s3 = inlined_call_operand.hbm [shape: f32[128,384], index: 3, kind: input, shape index: {}]   ;;  %s2444_s4 = inlined_call_operand.hbm [shape: f32[1,128], index: 4, kind: input, shape index: {}]   ;;  %s2445_s5 = inlined_call_operand.vmem [shape: f32[8,8,128], index: 5, kind: output, shape index: {0}]   ;;  %s2446_s6 = inlined_call_operand.hbm [shape: f32[1,8,128], index: 6, kind: output, shape index: {1}]  }
   0x1   :  { %13 = vsyncpa [#allocation8], 0 }
   0x2   :  { %14 = vsyncpa [#allocation11], 0  ;;  %s36_s23 = sshll.u32 %s2442_s2, 4  ;;  %s37_s23 = int_to_ptr.hbm [resolvable:$true] %s36_s23 }
   0x3   :  { %15 = vsyncpa [#allocation6], 0  ;;  %s1615_s24 = smov [#allocation7]   ;;  %s22_s28 = sshll.u32 %s2441_s1, 4  ;;  %s23_s28 = int_to_ptr.hbm [resolvable:$true] %s22_s28 }
   0x4   :  { %s38_s25 = sshll.u32 %s1615_s24, 4  ;;  %s1616_s29 = smov [#allocation4]   ;;  %s39_s25 = int_to_ptr.vmem [resolvable:$true] %s38_s25 }
   0x5   :  { %41 = dma.hbm_to_vmem [thread:$0]  %s37_s23, 48, %s39_s25, [#allocation8]  }
   0x6   :  { %s24_s30 = sshll.u32 %s1616_s29, 4  ;;  %s1617_s7 = smov 384   ;;  %s25_s30 = int_to_ptr.vmem [resolvable:$true] %s24_s30 }
   0x7   :  { %s1618_s8 = smov 24   ;;  %s46_s2 = sshll.u32 %s2443_s3, 4  ;;  %s47_s2 = int_to_ptr.hbm [resolvable:$true] %s46_s2 }
   0x8   :  { %30 = dma.hbm_to_vmem [thread:$0]  %s23_s28, 1536, %s25_s30, [#allocation5], %s1617_s7, %s1617_s7, %s1618_s8  }
   0x9   :  { %s1619_s11 = smov [#allocation9]   ;;  %s60_s1 = sshll.u32 %s2444_s4, 4  ;;  %s61_s1 = int_to_ptr.hbm [resolvable:$true] %s60_s1 }
   0xa   :  { %s48_s12 = sshll.u32 %s1619_s11, 4  ;;  %s1620_s15 = smov [#allocation10]   ;;  %s49_s12 = int_to_ptr.vmem [resolvable:$true] %s48_s12 }
   0xb   :  { %54 = dma.hbm_to_vmem [thread:$0]  %s47_s2, 6144, %s49_s12, [#allocation8], %s1617_s7, %s1617_s7, %s1618_s8  }
   0xc   :  { %s62_s16 = sshll.u32 %s1620_s15, 4  ;;  %s63_s16 = int_to_ptr.vmem [resolvable:$true] %s62_s16 }
   0xd   :  { %65 = dma.hbm_to_vmem [thread:$0]  %s61_s1, 16, %s63_s16, [#allocation11]  }
   0xe   :  { %1607 = dma.done.wait [#allocation5], 1536  }
   0xf   :  { %1608 = vsyncadd [#allocation5], 4294965760 }
  0x10   :  { %1609 = dma.done.wait [#allocation8], 6192  }
  0x11   :  { %1610 = vsyncadd [#allocation8], 4294961104 }
  0x12   :  { %1611 = dma.done.wait [#allocation11], 16  }
  0x13   :  { %1612 = vsyncadd [#allocation11], 4294967280  ;;  %v1670_v0 = vld [vmem:[#allocation9 + $0x168] sm:$0xff]  ;;  %v1672_v2 = vld [vmem:[#allocation9 + $0x150] sm:$0xff]  ;;  %vm115_vm0 = vcmask 261120   ;;  %v1621_v47 = vmov 0.0  }
  0x14   :  { %v104_v1 = vld [vmem:[#allocation4 + $0x48] sm:$0xff]  ;;  %343 = vmatpush.msra.mxu3 %v1670_v0  ;;  %v101_v3 = vld [vmem:[#allocation4 + $0x30] sm:$0xff]  ;;  %v1675_v4 = vld [vmem:[#allocation9 + $0x138] sm:$0xff]  ;;  %s1622_s4 = smov [#allocation12]   ;;  %s1273_s20 = sshll.u32 %s2446_s6, 4  ;;  %s1274_s20 = int_to_ptr.hbm [resolvable:$true] %s1273_s20 }
  0x15   :  { %152 = vmatpush.msra.mxu0 %v104_v1  ;;  %v98_v5 = vld [vmem:[#allocation4 + $0x18] sm:$0xff]  ;;  %1341 = vmatpush.msra.mxu2 %v104_v1  ;;  %v1678_v6 = vld [vmem:[#allocation9 + $0x120] sm:$0xff]  ;;  %v1686_v9 = vld [vmem:[#allocation9 + $0x108] sm:$0xff]  ;;  %s1271_s17 = sshll.u32 %s1622_s4, 4  ;;  %s1272_s17 = int_to_ptr.vmem [resolvable:$true] %s1271_s17 }
  0x16   :  { %344 = vmatpush.msra.mxu3 %v1672_v2  ;;  %v95_v7 = vld [vmem:[#allocation4] sm:$0xff]  ;;  %v1693_v11 = vld [vmem:[#allocation9 + $0xf0] sm:$0xff]  ;;  %v1701_v14 = vld [vmem:[#allocation9 + $0x148] sm:$0xff] }
  0x17   :  { %153 = vmatpush.msra.mxu0 %v101_v3  ;;  %1342 = vmatpush.msra.mxu2 %v101_v3  ;;  %v1684_v8 = vld [vmem:[%s2440_s0] sm:$0xff]  ;;  %v1707_v16 = vld [vmem:[#allocation9 + $0x130] sm:$0xff]  ;;  %v1713_v17 = vld [vmem:[%s2440_s0 + $0x8] sm:$0xff] }
  0x18   :  { %345 = vmatpush.msra.mxu3 %v1675_v4  ;;  %v1689_v10 = vld [vmem:[#allocation9 + $0x178] sm:$0xff]  ;;  %v1695_v12 = vld [vmem:[#allocation9 + $0x160] sm:$0xff]  ;;  %v1721_v19 = vld [vmem:[#allocation9 + $0xa8] sm:$0xff] }
  0x19   :  { %154 = vmatpush.msra.mxu0 %v98_v5  ;;  %1343 = vmatpush.msra.mxu2 %v98_v5  ;;  %v1699_v13 = vld [vmem:[#allocation9 + $0xd8] sm:$0xff]  ;;  %v1705_v15 = vld [vmem:[#allocation9 + $0xc0] sm:$0xff]  ;;  %v105_v21 = vld [vmem:[#allocation4 + $0x50] sm:$0xff] }
  0x1a   :  { %346 = vmatpush.msra.mxu3 %v1678_v6  ;;  %v1719_v18 = vld [vmem:[%s2440_s0 + $0x38] sm:$0xff]  ;;  %v1733_v23 = vld [vmem:[#allocation9 + $0x100] sm:$0xff]  ;;  %v1739_v26 = vld [vmem:[#allocation9 + $0xe8] sm:$0xff]  ;;  %193 = vmatpush.msra.mxu1 %v105_v21 }
  0x1b   :  { %155 = vmatpush.msra.mxu0 %v95_v7  ;;  %1344 = vmatpush.msra.mxu2 %v95_v7  ;;  %v1723_v20 = vld [vmem:[#allocation9 + $0x118] sm:$0xff]  ;;  %v1731_v22 = vld [vmem:[#allocation9 + $0x90] sm:$0xff]  ;;  %v1743_v28 = vld [vmem:[#allocation9 + $0x60] sm:$0xff] }
  0x1c   :  { %1294 = vmatmul.msk.f32.vlgmr.msra.gmra.mxu0 %vm115_vm0, %v1684_v8  ;;  %347 = vmatpush.msra.mxu3 %v1686_v9  ;;  %v102_v24 = vld [vmem:[#allocation4 + $0x38] sm:$0xff]  ;;  %v99_v27 = vld [vmem:[#allocation4 + $0x20] sm:$0xff]  ;;  %v1751_v30 = vld [vmem:[%s2440_s0 + $0x10] sm:$0xff] }
  0x1d   :  { %383 = vmatpush.msrb.mxu0 %v1689_v10  ;;  %1301 = vmatmul.msk.f32.vlgmr.msra.gmra.mxu2 %vm115_vm0, %v1719_v18  ;;  %v1737_v25 = vld [vmem:[#allocation9 + $0x78] sm:$0xff]  ;;  %v1745_v29 = vld [vmem:[#allocation9 + $0xd0] sm:$0xff]  ;;  %v96_v31 = vld [vmem:[#allocation4 + $0x8] sm:$0xff] }
  0x1e   :  { %348 = vmatpush.msra.mxu3 %v1693_v11  ;;  %1345 = vmatpush.msrb.mxu2 %v105_v21  ;;  %v1754_v32 = vld [vmem:[#allocation9 + $0x48] sm:$0xff]  ;;  %v1756_v33 = vld [vmem:[#allocation9 + $0xb8] sm:$0xff]  ;;  %v1762_v35 = vld [vmem:[#allocation9 + $0x30] sm:$0xff] }
  0x1f   :  { %384 = vmatpush.msrb.mxu0 %v1695_v12  ;;  %194 = vmatpush.msra.mxu1 %v102_v24  ;;  %v106_v34 = vld [vmem:[#allocation4 + $0x58] sm:$0xff]  ;;  %2464 = vst [vmem:[#allocation17_spill] sm:$0xff] %v1762_v35  ;;  %v1764_v36 = vld [vmem:[#allocation9 + $0xa0] sm:$0xff]  ;;  %v1772_v39 = vld [vmem:[#allocation9 + $0x88] sm:$0xff] }
  0x20   :  { %349 = vmatpush.msra.mxu3 %v1699_v13  ;;  %1346 = vmatpush.msrb.mxu2 %v102_v24  ;;  %v103_v37 = vld [vmem:[#allocation4 + $0x40] sm:$0xff]  ;;  %v100_v40 = vld [vmem:[#allocation4 + $0x28] sm:$0xff]  ;;  %v1778_v42 = vld [vmem:[#allocation9 + $0x70] sm:$0xff] }
  0x21   :  { %385 = vmatpush.msrb.mxu0 %v1701_v14  ;;  %195 = vmatpush.msra.mxu1 %v99_v27  ;;  %v1770_v38 = vld [vmem:[#allocation9 + $0x18] sm:$0xff]  ;;  %v1776_v41 = vld [vmem:[#allocation9] sm:$0xff]  ;;  %v1789_v44 = vld [vmem:[#allocation9 + $0x170] sm:$0xff] }
  0x22   :  { %350 = vmatpush.msra.mxu3 %v1705_v15  ;;  %1347 = vmatpush.msrb.mxu2 %v99_v27  ;;  %2465 = vst [vmem:[#allocation18_spill] sm:$0xff] %v1770_v38  ;;  %v1786_v43 = vld [vmem:[%s2440_s0 + $0x18] sm:$0xff]  ;;  %v97_v46 = vld [vmem:[#allocation4 + $0x10] sm:$0xff]  ;;  %v1801_v49 = vld [vmem:[#allocation9 + $0x40] sm:$0xff] }
  0x23   :  { %386 = vmatpush.msrb.mxu0 %v1707_v16  ;;  %196 = vmatpush.msra.mxu1 %v96_v31  ;;  %2466 = vst [vmem:[#allocation19_spill] sm:$0xff] %v1776_v41  ;;  %v1791_v45 = vld [vmem:[#allocation9 + $0x58] sm:$0xff]  ;;  %v1805_v50 = vld [vmem:[#allocation9 + $0x140] sm:$0xff]  ;;  %v1807_v51 = vld [vmem:[#allocation9 + $0x28] sm:$0xff] }
  0x24   :  { %1295 = vmatmul.msk.f32.gmra.mxu0 %vm115_vm0, %v1713_v17  ;;  %351 = vmatpush.msra.mxu3 %v1721_v19  ;;  %v1799_v48 = vld [vmem:[#allocation9 + $0x158] sm:$0xff]  ;;  %2467 = vst [vmem:[#allocation20_spill] sm:$0xff] %v1801_v49  ;;  %v1812_v52 = vld [vmem:[#allocation9 + $0x128] sm:$0xff]  ;;  %v1816_v53 = vld [vmem:[#allocation9 + $0x10] sm:$0xff] }
  0x25   :  { %387 = vmatpush.msrb.mxu0 %v1723_v20  ;;  %1348 = vmatpush.msrb.mxu2 %v96_v31  ;;  %2468 = vst [vmem:[#allocation21_spill] sm:$0xff] %v1807_v51  ;;  %v1823_v54 = vld [vmem:[%s2440_s0 + $0x20] sm:$0xff]  ;;  %v1826_v55 = vld [vmem:[#allocation9 + $0x110] sm:$0xff]  ;;  %v1846_v58 = vld [vmem:[#allocation9 + $0xc8] sm:$0xff] }
  0x26   :  { %352 = vmatpush.msra.mxu3 %v1731_v22  ;;  %1309 = vmatmul.msk.f32.vlgmr.msrb.gmra.mxu2 %vm115_vm0, %v1719_v18  ;;  %2469 = vst [vmem:[#allocation22_spill] sm:$0xff] %v1816_v53  ;;  %v1835_v56 = vld [vmem:[#allocation9 + $0xf8] sm:$0xff]  ;;  %v1840_v57 = vld [vmem:[#allocation9 + $0xe0] sm:$0xff]  ;;  %v1858_v60 = vld [vmem:[#allocation9 + $0xb0] sm:$0xff] }
  0x27   :  { %388 = vmatpush.msrb.mxu0 %v1733_v23  ;;  %234 = vmatpush.msra.mxu2 %v106_v34  ;;  %v1855_v59 = vld [vmem:[%s2440_s0 + $0x28] sm:$0xff]  ;;  %v1867_v61 = vld [vmem:[#allocation9 + $0x98] sm:$0xff]  ;;  %v1887_v1 = vld [vmem:[%s2440_s0 + $0x30] sm:$0xff] }
  0x28   :  { %353 = vmatpush.msra.mxu3 %v1737_v25  ;;  %1302 = vmatmul.msk.f32.vlgmr.msra.gmra.mxu1 %vm115_vm0, %v1684_v8  ;;  %v1872_v62 = vld [vmem:[#allocation9 + $0x80] sm:$0xff]  ;;  %v1878_v63 = vld [vmem:[#allocation9 + $0x68] sm:$0xff]  ;;  %v1890_v3 = vld [vmem:[#allocation9 + $0x50] sm:$0xff] }
  0x29   :  { %389 = vmatpush.msrb.mxu0 %v1739_v26  ;;  %235 = vmatpush.msra.mxu2 %v103_v37  ;;  %v1899_v5 = vld [vmem:[#allocation9 + $0x38] sm:$0xff]  ;;  %v1904_v7 = vld [vmem:[#allocation9 + $0x20] sm:$0xff] }
  0x2a   :  { %354 = vmatpush.msra.mxu3 %v1743_v28  ;;  %460 = vmatpush.msrb.mxu1 %v1670_v0  ;;  %2470 = vst [vmem:[#allocation23_spill] sm:$0xff] %v1899_v5 }
  0x2b   :  { %390 = vmatpush.msrb.mxu0 %v1745_v29  ;;  %236 = vmatpush.msra.mxu2 %v100_v40  ;;  %2471 = vst [vmem:[#allocation24_spill] sm:$0xff] %v1904_v7 }
  0x2c   :  { %1296 = vmatmul.msk.f32.gmra.mxu0 %vm115_vm0, %v1751_v30  ;;  %355 = vmatpush.msra.mxu3 %v1754_v32 }
  0x2d   :  { %391 = vmatpush.msrb.mxu0 %v1756_v33  ;;  %237 = vmatpush.msra.mxu2 %v97_v46 }
  0x2e   :  { %356 = vmatpush.msra.mxu3 %v1762_v35  ;;  %461 = vmatpush.msrb.mxu1 %v1672_v2 }
  0x2f   :  { %392 = vmatpush.msrb.mxu0 %v1764_v36  ;;  %1310 = vmatmul.msk.f32.vlgmr.msra.gmra.mxu2 %vm115_vm0, %v1684_v8  ;;  %v1910_v8 = vld [vmem:[#allocation9 + $0x8] sm:$0xff] }
  0x30   :  { %357 = vmatpush.msra.mxu3 %v1770_v38  ;;  %462 = vmatpush.msrb.mxu1 %v1675_v4  ;;  %2472 = vst [vmem:[#allocation25_spill] sm:$0xff] %v1910_v8 }
  0x31   :  { %393 = vmatpush.msrb.mxu0 %v1772_v39  ;;  %480 = vmatpush.msrb.mxu2 %v1789_v44 }
  0x32   :  { %358 = vmatpush.msra.mxu3 %v1776_v41  ;;  %1303 = vmatmul.msk.f32.gmra.mxu1 %vm115_vm0, %v1713_v17 }
  0x33   :  { %394 = vmatpush.msrb.mxu0 %v1778_v42  ;;  %359 = vmatmul.f32.vlgmr.msra.gmra.mxu3 %v1621_v47 }
  0x34   :  { %1297 = vmatmul.msk.f32.gmra.mxu0 %vm115_vm0, %v1786_v43  ;;  %363 = vmatpush.msrb.mxu3 %v1789_v44 }
  0x35   :  { %395 = vmatpush.msrb.mxu0 %v1791_v45  ;;  %481 = vmatpush.msrb.mxu2 %v1799_v48 }
  0x36   :  { %364 = vmatpush.msrb.mxu3 %v1799_v48  ;;  %463 = vmatpush.msrb.mxu1 %v1678_v6 }
  0x37   :  { %396 = vmatpush.msrb.mxu0 %v1801_v49  ;;  %482 = vmatpush.msrb.mxu2 %v1805_v50 }
  0x38   :  { %365 = vmatpush.msrb.mxu3 %v1805_v50  ;;  %464 = vmatpush.msrb.mxu1 %v1686_v9 }
  0x39   :  { %397 = vmatpush.msrb.mxu0 %v1807_v51  ;;  %1311 = vmatmul.msk.f32.gmra.mxu2 %vm115_vm0, %v1713_v17 }
  0x3a   :  { %366 = vmatpush.msrb.mxu3 %v1812_v52  ;;  %483 = vmatpush.msrb.mxu2 %v1812_v52 }
  0x3b   :  { %398 = vmatpush.msrb.mxu0 %v1816_v53  ;;  %1304 = vmatmul.msk.f32.gmra.mxu1 %vm115_vm0, %v1751_v30 }
  0x3c   :  { %1298 = vmatmul.msk.f32.gmra.mxu0 %vm115_vm0, %v1823_v54  ;;  %367 = vmatpush.msrb.mxu3 %v1826_v55 }
  0x3d   :  { %575 = vmatpush.msra.mxu0 %v1670_v0  ;;  %484 = vmatpush.msrb.mxu2 %v1826_v55 }
  0x3e   :  { %368 = vmatpush.msrb.mxu3 %v1835_v56  ;;  %465 = vmatpush.msrb.mxu1 %v1693_v11 }
  0x3f   :  { %576 = vmatpush.msra.mxu0 %v1672_v2  ;;  %485 = vmatpush.msrb.mxu2 %v1835_v56 }
  0x40   :  { %369 = vmatpush.msrb.mxu3 %v1840_v57  ;;  %466 = vmatpush.msrb.mxu1 %v1699_v13 }
  0x41   :  { %577 = vmatpush.msra.mxu0 %v1675_v4  ;;  %486 = vmatpush.msrb.mxu2 %v1840_v57 }
  0x42   :  { %370 = vmatpush.msrb.mxu3 %v1846_v58  ;;  %1312 = vmatmul.msk.f32.gmra.mxu2 %vm115_vm0, %v1751_v30 }
  0x43   :  { %578 = vmatpush.msra.mxu0 %v1678_v6  ;;  %467 = vmatpush.msrb.mxu1 %v1705_v15 }
  0x44   :  { %1299 = vmatmul.msk.f32.gmra.mxu0 %vm115_vm0, %v1855_v59  ;;  %371 = vmatpush.msrb.mxu3 %v1858_v60 }
  0x45   :  { %487 = vmatpush.msrb.mxu2 %v1846_v58  ;;  %1305 = vmatmul.msk.f32.gmra.mxu1 %vm115_vm0, %v1786_v43 }
  0x46   :  { %372 = vmatpush.msrb.mxu3 %v1867_v61  ;;  %579 = vmatpush.msra.mxu0 %v1686_v9 }
  0x47   :  { %468 = vmatpush.msrb.mxu1 %v1721_v19  ;;  %488 = vmatpush.msrb.mxu2 %v1858_v60 }
  0x48   :  { %373 = vmatpush.msrb.mxu3 %v1872_v62  ;;  %580 = vmatpush.msra.mxu0 %v1693_v11 }
  0x49   :  { %469 = vmatpush.msrb.mxu1 %v1731_v22  ;;  %489 = vmatpush.msrb.mxu2 %v1867_v61 }
  0x4a   :  { %374 = vmatpush.msrb.mxu3 %v1878_v63  ;;  %1313 = vmatmul.msk.f32.gmra.mxu2 %vm115_vm0, %v1786_v43 }
  0x4b   :  { %470 = vmatpush.msrb.mxu1 %v1737_v25  ;;  %581 = vmatpush.msra.mxu0 %v1699_v13 }
  0x4c   :  { %1300 = vmatmul.msk.f32.gmra.mxu0 %vm115_vm0, %v1887_v1  ;;  %375 = vmatpush.msrb.mxu3 %v1890_v3 }
  0x4d   :  { %471 = vmatpush.msrb.mxu1 %v1743_v28  ;;  %490 = vmatpush.msrb.mxu2 %v1872_v62 }
  0x4e   :  { %376 = vmatpush.msrb.mxu3 %v1899_v5  ;;  %1306 = vmatmul.msk.f32.gmra.mxu1 %vm115_vm0, %v1823_v54 }
  0x4f   :  { %472 = vmatpush.msrb.mxu1 %v1754_v32  ;;  %491 = vmatpush.msrb.mxu2 %v1878_v63 }
  0x50   :  { %377 = vmatpush.msrb.mxu3 %v1904_v7  ;;  %582 = vmatpush.msra.mxu0 %v1705_v15 }
  0x51   :  { %473 = vmatpush.msrb.mxu1 %v1762_v35  ;;  %492 = vmatpush.msrb.mxu2 %v1890_v3 }
  0x52   :  { %378 = vmatpush.msrb.mxu3 %v1910_v8  ;;  %1314 = vmatmul.msk.f32.gmra.mxu2 %vm115_vm0, %v1823_v54 }
  0x53   :  { %379 = vmatmul.f32.vlgmr.msrb.gmra.mxu3 %v1621_v47  ;;  %474 = vmatpush.msrb.mxu1 %v1770_v38 }
  0x54   :  { %399 = vmatmul.f32.vlgmr.msrb.gmra.mxu0 %v1621_v47  ;;  %500 = vmatpush.msra.mxu3 %v1689_v10 }
  0x55   :  { %493 = vmatpush.msrb.mxu2 %v1899_v5  ;;  %583 = vmatpush.msra.mxu0 %v1721_v19 }
  0x56   :  { %501 = vmatpush.msra.mxu3 %v1695_v12  ;;  %1307 = vmatmul.msk.f32.gmra.mxu1 %vm115_vm0, %v1855_v59 }
  0x57   :  { %475 = vmatpush.msrb.mxu1 %v1776_v41  ;;  %494 = vmatpush.msrb.mxu2 %v1904_v7 }
  0x58   :  { %502 = vmatpush.msra.mxu3 %v1701_v14  ;;  %584 = vmatpush.msra.mxu0 %v1731_v22 }
  0x59   :  { %595 = vmatpush.msra.mxu1 %v1789_v44  ;;  %495 = vmatpush.msrb.mxu2 %v1910_v8 }
  0x5a   :  { %503 = vmatpush.msra.mxu3 %v1707_v16  ;;  %1315 = vmatmul.msk.f32.gmra.mxu2 %vm115_vm0, %v1855_v59 }
  0x5b   :  { %596 = vmatpush.msra.mxu1 %v1799_v48  ;;  %615 = vmatpush.msra.mxu2 %v1689_v10 }
  0x5c   :  { %504 = vmatpush.msra.mxu3 %v1723_v20  ;;  %585 = vmatpush.msra.mxu0 %v1737_v25 }
  0x5d   :  { %597 = vmatpush.msra.mxu1 %v1805_v50  ;;  %616 = vmatpush.msra.mxu2 %v1695_v12 }
  0x5e   :  { %505 = vmatpush.msra.mxu3 %v1733_v23  ;;  %1308 = vmatmul.msk.f32.gmra.mxu1 %vm115_vm0, %v1887_v1 }
  0x5f   :  { %617 = vmatpush.msra.mxu2 %v1701_v14  ;;  %598 = vmatpush.msra.mxu1 %v1812_v52 }
  0x60   :  { %506 = vmatpush.msra.mxu3 %v1739_v26  ;;  %586 = vmatpush.msra.mxu0 %v1743_v28 }
  0x61   :  { %618 = vmatpush.msra.mxu2 %v1707_v16  ;;  %599 = vmatpush.msra.mxu1 %v1826_v55 }
  0x62   :  { %507 = vmatpush.msra.mxu3 %v1745_v29  ;;  %587 = vmatpush.msra.mxu0 %v1754_v32 }
  0x63   :  { %619 = vmatpush.msra.mxu2 %v1723_v20  ;;  %600 = vmatpush.msra.mxu1 %v1835_v56 }
  0x64   :  { %508 = vmatpush.msra.mxu3 %v1756_v33  ;;  %1316 = vmatmul.msk.f32.gmra.mxu2 %vm115_vm0, %v1887_v1 }
  0x65   :  { %620 = vmatpush.msra.mxu2 %v1733_v23  ;;  %601 = vmatpush.msra.mxu1 %v1840_v57 }
  0x66   :  { %509 = vmatpush.msra.mxu3 %v1764_v36  ;;  %588 = vmatpush.msra.mxu0 %v1762_v35 }
  0x67   :  { %621 = vmatpush.msra.mxu2 %v1739_v26  ;;  %602 = vmatpush.msra.mxu1 %v1846_v58 }
  0x68   :  { %510 = vmatpush.msra.mxu3 %v1772_v39  ;;  %589 = vmatpush.msra.mxu0 %v1770_v38 }
  0x69   :  { %622 = vmatpush.msra.mxu2 %v1745_v29  ;;  %603 = vmatpush.msra.mxu1 %v1858_v60 }
  0x6a   :  { %511 = vmatpush.msra.mxu3 %v1778_v42  ;;  %590 = vmatpush.msra.mxu0 %v1776_v41 }
  0x6b   :  { %623 = vmatpush.msra.mxu2 %v1756_v33  ;;  %604 = vmatpush.msra.mxu1 %v1867_v61 }
  0x6c   :  { %512 = vmatpush.msra.mxu3 %v1791_v45  ;;  %1317 = vmatmul.msk.f32.gmra.mxu2 %vm115_vm0, %v1719_v18  ;;  %v107_v18 = vld [vmem:[#allocation7] sm:$0x7] }
  0x6d   :  { %624 = vmatpush.msra.mxu2 %v1764_v36  ;;  %605 = vmatpush.msra.mxu1 %v1872_v62  ;;  %v109_v21 = vperm.slane %v107_v18, 0 }
  0x6e   :  { %513 = vmatpush.msra.mxu3 %v1801_v49  ;;  %710 = vmatpush.msrb.mxu0 %v1789_v44 }
  0x6f   :  { %625 = vmatpush.msra.mxu2 %v1772_v39  ;;  %606 = vmatpush.msra.mxu1 %v1878_v63 }
  0x70   :  { %514 = vmatpush.msra.mxu3 %v1807_v51  ;;  %711 = vmatpush.msrb.mxu0 %v1799_v48 }
  0x71   :  { %626 = vmatpush.msra.mxu2 %v1778_v42  ;;  %607 = vmatpush.msra.mxu1 %v1890_v3 }
  0x72   :  { %515 = vmatpush.msra.mxu3 %v1816_v53  ;;  %712 = vmatpush.msrb.mxu0 %v1805_v50 }
  0x73   :  { %627 = vmatpush.msra.mxu2 %v1791_v45  ;;  %608 = vmatpush.msra.mxu1 %v1899_v5 }
  0x74   :  { %690 = vmatpush.msrb.mxu3 %v1670_v0  ;;  %713 = vmatpush.msrb.mxu0 %v1812_v52 }
  0x75   :  { %628 = vmatpush.msra.mxu2 %v1801_v49  ;;  %609 = vmatpush.msra.mxu1 %v1904_v7 }
  0x76   :  { %691 = vmatpush.msrb.mxu3 %v1672_v2  ;;  %714 = vmatpush.msrb.mxu0 %v1826_v55 }
  0x77   :  { %629 = vmatpush.msra.mxu2 %v1807_v51  ;;  %610 = vmatpush.msra.mxu1 %v1910_v8 }
  0x78   :  { %692 = vmatpush.msrb.mxu3 %v1675_v4  ;;  %715 = vmatpush.msrb.mxu0 %v1835_v56 }
  0x79   :  { %630 = vmatpush.msra.mxu2 %v1816_v53 }
  0x7a   :  { %693 = vmatpush.msrb.mxu3 %v1678_v6  ;;  %716 = vmatpush.msrb.mxu0 %v1840_v57 }
  0x7c   :  { %694 = vmatpush.msrb.mxu3 %v1686_v9  ;;  %717 = vmatpush.msrb.mxu0 %v1846_v58 }
  0x7e   :  { %695 = vmatpush.msrb.mxu3 %v1693_v11  ;;  %718 = vmatpush.msrb.mxu0 %v1858_v60 }
  0x80   :  { %696 = vmatpush.msrb.mxu3 %v1699_v13  ;;  %719 = vmatpush.msrb.mxu0 %v1867_v61 }
  0x82   :  { %697 = vmatpush.msrb.mxu3 %v1705_v15  ;;  %720 = vmatpush.msrb.mxu0 %v1872_v62 }
  0x84   :  { %698 = vmatpush.msrb.mxu3 %v1721_v19  ;;  %721 = vmatpush.msrb.mxu0 %v1878_v63 }
  0x86   :  { %699 = vmatpush.msrb.mxu3 %v1731_v22  ;;  %722 = vmatpush.msrb.mxu0 %v1890_v3 }
  0x88   :  { %700 = vmatpush.msrb.mxu3 %v1737_v25  ;;  %723 = vmatpush.msrb.mxu0 %v1899_v5 }
  0x8a   :  { %701 = vmatpush.msrb.mxu3 %v1743_v28  ;;  %724 = vmatpush.msrb.mxu0 %v1904_v7 }
  0x8c   :  { %702 = vmatpush.msrb.mxu3 %v1754_v32  ;;  %725 = vmatpush.msrb.mxu0 %v1910_v8 }
  0x8e   :  { %703 = vmatpush.msrb.mxu3 %v1762_v35 }
  0x90   :  { %704 = vmatpush.msrb.mxu3 %v1770_v38 }
  0x92   :  { %705 = vmatpush.msrb.mxu3 %v1776_v41 }
  0x99   :  { %v157_v17 = vpop.f32.mrf.mxu0 }
  0x9a   :  { %v158_v46 = vadd.f32 %v157_v17, %v109_v21 }
  0xa0   :  { %v178_v30 = vpop.f32.mrf.mxu2 }
  0xa1   :  { %v160_v24 = vpop.f32.mrf.mxu0  ;;  %v2035_v31 = vadd.f32 %v178_v30, %v109_v21 }
  0xa2   :  { %v2033_v27 = vadd.f32 %v160_v24, %v109_v21 }
  0xa3   :  { %2474 = vst [vmem:[#allocation27_spill] sm:$0xff] %v2035_v31 }
  0xa4   :  { %2473 = vst [vmem:[#allocation26_spill] sm:$0xff] %v2033_v27 }
  0xa9   :  { %v163_v34 = vpop.f32.mrf.mxu0 }
  0xaa   :  { %v2037_v37 = vadd.f32 %v163_v34, %v109_v21 }
  0xac   :  { %2475 = vst [vmem:[#allocation28_spill] sm:$0xff] %v2037_v37 }
  0xb1   :  { %v166_v40 = vpop.f32.mrf.mxu0 }
  0xb2   :  { %v2039_v43 = vadd.f32 %v166_v40, %v109_v21 }
  0xb4   :  { %2476 = vst [vmem:[#allocation29_spill] sm:$0xff] %v2039_v43  ;;  %v2047_v43 = vperm.slane %v107_v18, 1 }
  0xb6   :  { %v360_v47 = vpop.f32.mrf.mxu3  ;;  %2480 = vst [vmem:[#allocation33_spill] sm:$0xff] %v2047_v43 }
  0xb7   :  { %v403_v54 = vadd.f32 %v360_v47, %v158_v46  ;;  %v198_v46 = vpop.f32.mrf.mxu1 }
  0xb8   :  { %v199_v47 = vadd.f32 %v198_v46, %v2047_v43  ;;  %v2055_v46 = vperm.slane %v107_v18, 2 }
  0xb9   :  { %v169_v59 = vpop.f32.mrf.mxu0  ;;  %v1318_v1 = vmul.f32 -1.442695, %v403_v54 }
  0xba   :  { %v2041_v8 = vadd.f32 %v169_v59, %v109_v21  ;;  %v2050_v59 = vpop.f32.mrf.mxu2 }
  0xbb   :  { %1358 = vpow2.f32 %v1318_v1  ;;  %2481 = vst [vmem:[#allocation34_spill] sm:$0xff] %v2050_v59 }
  0xbc   :  { %2477 = vst [vmem:[#allocation30_spill] sm:$0xff] %v2041_v8 }
  0xc1   :  { %v172_v41 = vpop.f32.mrf.mxu0  ;;  %v1359_v24 = vpop.eup %1358 }
  0xc2   :  { %v2043_v27 = vadd.f32 %v172_v41, %v109_v21  ;;  %v407_v30 = vadd.f32 1.0, %v1359_v24 }
  0xc4   :  { %2478 = vst [vmem:[#allocation31_spill] sm:$0xff] %v2043_v27  ;;  %1360 = vrcp.f32 %v407_v30  ;;  %v419_v24 = vand.u32 2147483648, %v407_v30  ;;  %vm413_vm2 = vweird.f32 %v407_v30 }
  0xc6   :  { %v420_v53 = vor.u32 1.1754944e-38, %v419_v24 }
  0xc9   :  { %v175_v31 = vpop.f32.mrf.mxu0 }
  0xca   :  { %v2045_v34 = vadd.f32 %v175_v31, %v109_v21  ;;  %v1361_v37 = vpop.eup %1360  ;;  %v417_v21 = vand.u32 2147483647, %v407_v30  ;;  %v2052_v31 = vld [vmem:[#allocation10] ss:$0 sm:$0xff] }
  0xcb   :  { %v409_v40 = vmul.f32 %v1361_v37, %v407_v30  ;;  %vm414_vm1 = vweird.f32 %v1361_v37 }
  0xcc   :  { %2479 = vst [vmem:[#allocation32_spill] sm:$0xff] %v2045_v34  ;;  %vm415_vm3 = vmor %vm413_vm2, %vm414_vm1  ;;  %vm418_vm4 = vcmp.eq.f32.partialorder %v417_v21, 8.507059e+37 }
  0xcd   :  { %v410_v17 = vsub.f32 1.0, %v409_v40 }
  0xcf   :  { %v411_v54 = vmul.f32 %v1361_v37, %v410_v17 }
  0xd1   :  { %v412_v41 = vadd.f32 %v1361_v37, %v411_v54  ;;  %v400_v34 = vpop.f32.mrf.mxu0 }
  0xd2   :  { %v446_v17 = vadd.f32 %v2052_v31, %v400_v34 }
  0xd3   :  { %v416_v40 = vsel %vm415_vm3, %v1361_v37, %v412_v41 }
  0xd4   :  { %v421_v59 = vsel %vm418_vm4, %v420_v53, %v416_v40 }
  0xd6   :  { %v380_v1 = vpop.f32.mrf.mxu3 }
  0xd7   :  { %v423_v8 = vadd.f32 %v380_v1, %v199_v47  ;;  %v239_v47 = vpop.f32.mrf.mxu2  ;;  %v447_v1 = vmul.f32 %v446_v17, %v421_v59 }
  0xd9   :  { %v1319_v27 = vmul.f32 -1.442695, %v423_v8  ;;  %v240_v8 = vadd.f32 %v239_v47, %v2055_v46 }
  0xdb   :  { %1362 = vpow2.f32 %v1319_v27  ;;  %v448_v30 = vadd.f32 %v447_v1, %v240_v8  ;;  %v2486_v1 = vld [vmem:[#allocation25_spill] sm:$0xff] }
  0xdf   :  { %v242_v8 = vpop.f32.mrf.mxu2 }
  0xe1   :  { %v1363_v54 = vpop.eup %1362 }
  0xe2   :  { %v427_v43 = vadd.f32 1.0, %v1363_v54  ;;  %v2485_v54 = vld [vmem:[#allocation19_spill] sm:$0xff] }
  0xe4   :  { %1364 = vrcp.f32 %v427_v43  ;;  %v439_v37 = vand.u32 2147483648, %v427_v43  ;;  %v437_v24 = vand.u32 2147483647, %v427_v43  ;;  %vm433_vm6 = vweird.f32 %v427_v43 }
  0xe5   :  { %1366 = vtanh.f32 %v448_v30  ;;  %v201_v30 = vpop.f32.mrf.mxu1 }
  0xe6   :  { %v440_v53 = vor.u32 1.1754944e-38, %v439_v37  ;;  %vm438_vm8 = vcmp.eq.f32.partialorder %v437_v24, 8.507059e+37 }
  0xea   :  { %v1365_v7 = vpop.eup %1364 }
  0xeb   :  { %v429_v38 = vmul.f32 %v1365_v7, %v427_v43  ;;  %vm434_vm5 = vweird.f32 %v1365_v7  ;;  %v1367_v34 = vpop.eup %1366  ;;  %v2484_v43 = vld [vmem:[#allocation22_spill] sm:$0xff] }
  0xec   :  { %vm435_vm7 = vmor %vm433_vm6, %vm434_vm5  ;;  %v450_v21 = vsub.f32 0.0, %v1367_v34 }
  0xed   :  { %v430_v27 = vsub.f32 1.0, %v429_v38  ;;  %v2482_v38 = vld [vmem:[#allocation18_spill] sm:$0xff]  ;;  %v2117_v37 = vpop.f32.mrf.mxu1 }
  0xee   :  { %2488 = vst [vmem:[#allocation36_spill] sm:$0xff] %v2117_v37  ;;  %v2498_v37 = vld [vmem:[#allocation26_spill] sm:$0xff] }
  0xef   :  { %v431_v41 = vmul.f32 %v1365_v7, %v430_v27  ;;  %v2115_v27 = vpop.f32.mrf.mxu2 }
  0xf0   :  { %2487 = vst [vmem:[#allocation35_spill] sm:$0xff] %v2115_v27 }
  0xf1   :  { %v432_v18 = vadd.f32 %v1365_v7, %v431_v41 }
  0xf3   :  { %v436_v59 = vsel %vm435_vm7, %v1365_v7, %v432_v18  ;;  %v2483_v7 = vld [vmem:[#allocation24_spill] sm:$0xff] }
  0xf4   :  { %v441_v40 = vsel %vm438_vm8, %v440_v53, %v436_v59 }
  0xf5   :  { %v451_v17 = vmul.f32 %v450_v21, %v441_v40  ;;  %v2121_v24 = vpop.f32.mrf.mxu1 }
  0xf6   :  { %2490 = vst [vmem:[#allocation38_spill] sm:$0xff] %v2121_v24 }
  0xf7   :  { %v2058_v47 = vadd.f32 %v1367_v34, %v451_v17  ;;  %v2119_v41 = vpop.f32.mrf.mxu2 }
  0xf8   :  { %2489 = vst [vmem:[#allocation37_spill] sm:$0xff] %v2119_v41 }
  0xf9   :  { %453 = vst [vmem:[%s2445_s5] sm:$0xff] %v2058_v47  ;;  %476 = vmatmul.f32.vlgmr.msrb.gmra.mxu1 %v2058_v47  ;;  %496 = vmatmul.f32.vlgmr.msrb.gmra.mxu2 %v2058_v47 }
  0xfa   :  { %516 = vmatmul.f32.vlgmr.msra.gmra.mxu3 %v2058_v47  ;;  %730 = vmatpush.msrb.mxu1 %v1689_v10 }
  0xfb   :  { %805 = vmatpush.msrb.mxu2 %v1670_v0  ;;  %825 = vmatpush.msra.mxu3 %v1789_v44 }
  0xfc   :  { %731 = vmatpush.msrb.mxu1 %v1695_v12 }
  0xfd   :  { %806 = vmatpush.msrb.mxu2 %v1672_v2  ;;  %826 = vmatpush.msra.mxu3 %v1799_v48  ;;  %v2125_v18 = vpop.f32.mrf.mxu1 }
  0xfe   :  { %732 = vmatpush.msrb.mxu1 %v1701_v14  ;;  %2492 = vst [vmem:[#allocation40_spill] sm:$0xff] %v2125_v18 }
  0xff   :  { %807 = vmatpush.msrb.mxu2 %v1675_v4  ;;  %827 = vmatpush.msra.mxu3 %v1805_v50  ;;  %v2123_v34 = vpop.f32.mrf.mxu2 }
 0x100   :  { %733 = vmatpush.msrb.mxu1 %v1707_v16  ;;  %2491 = vst [vmem:[#allocation39_spill] sm:$0xff] %v2123_v34 }
 0x101   :  { %808 = vmatpush.msrb.mxu2 %v1678_v6  ;;  %828 = vmatpush.msra.mxu3 %v1812_v52 }
 0x102   :  { %734 = vmatpush.msrb.mxu1 %v1723_v20 }
 0x103   :  { %809 = vmatpush.msrb.mxu2 %v1686_v9  ;;  %829 = vmatpush.msra.mxu3 %v1826_v55 }
 0x104   :  { %735 = vmatpush.msrb.mxu1 %v1733_v23 }
 0x105   :  { %810 = vmatpush.msrb.mxu2 %v1693_v11  ;;  %830 = vmatpush.msra.mxu3 %v1835_v56  ;;  %v2129_v21 = vpop.f32.mrf.mxu1 }
 0x106   :  { %736 = vmatpush.msrb.mxu1 %v1739_v26  ;;  %2494 = vst [vmem:[#allocation42_spill] sm:$0xff] %v2129_v21 }
 0x107   :  { %811 = vmatpush.msrb.mxu2 %v1699_v13  ;;  %831 = vmatpush.msra.mxu3 %v1840_v57  ;;  %v2127_v53 = vpop.f32.mrf.mxu2 }
 0x108   :  { %737 = vmatpush.msrb.mxu1 %v1745_v29  ;;  %2493 = vst [vmem:[#allocation41_spill] sm:$0xff] %v2127_v53 }
 0x109   :  { %812 = vmatpush.msrb.mxu2 %v1705_v15  ;;  %832 = vmatpush.msra.mxu3 %v1846_v58 }
 0x10a   :  { %738 = vmatpush.msrb.mxu1 %v1756_v33 }
 0x10b   :  { %813 = vmatpush.msrb.mxu2 %v1721_v19  ;;  %833 = vmatpush.msra.mxu3 %v1858_v60 }
 0x10c   :  { %739 = vmatpush.msrb.mxu1 %v1764_v36 }
 0x10d   :  { %814 = vmatpush.msrb.mxu2 %v1731_v22  ;;  %834 = vmatpush.msra.mxu3 %v1867_v61  ;;  %v2133_v40 = vpop.f32.mrf.mxu1 }
 0x10e   :  { %740 = vmatpush.msrb.mxu1 %v1772_v39  ;;  %2496 = vst [vmem:[#allocation44_spill] sm:$0xff] %v2133_v40 }
 0x10f   :  { %815 = vmatpush.msrb.mxu2 %v1737_v25  ;;  %835 = vmatpush.msra.mxu3 %v1872_v62  ;;  %v2131_v59 = vpop.f32.mrf.mxu2 }
 0x110   :  { %741 = vmatpush.msrb.mxu1 %v1778_v42  ;;  %2495 = vst [vmem:[#allocation43_spill] sm:$0xff] %v2131_v59 }
 0x111   :  { %816 = vmatpush.msrb.mxu2 %v1743_v28  ;;  %836 = vmatpush.msra.mxu3 %v1878_v63 }
 0x112   :  { %742 = vmatpush.msrb.mxu1 %v1791_v45 }
 0x113   :  { %817 = vmatpush.msrb.mxu2 %v1754_v32  ;;  %837 = vmatpush.msra.mxu3 %v1890_v3 }
 0x114   :  { %743 = vmatpush.msrb.mxu1 %v1801_v49 }
 0x115   :  { %818 = vmatpush.msrb.mxu2 %v1762_v35  ;;  %838 = vmatpush.msra.mxu3 %v1899_v5 }
 0x116   :  { %744 = vmatpush.msrb.mxu1 %v1807_v51 }
 0x117   :  { %819 = vmatpush.msrb.mxu2 %v2482_v38  ;;  %839 = vmatpush.msra.mxu3 %v2483_v7  ;;  %v2135_v17 = vpop.f32.mrf.mxu2 }
 0x118   :  { %745 = vmatpush.msrb.mxu1 %v2484_v43  ;;  %2497 = vst [vmem:[#allocation45_spill] sm:$0xff] %v2135_v17 }
 0x119   :  { %820 = vmatpush.msrb.mxu2 %v2485_v54  ;;  %840 = vmatpush.msra.mxu3 %v2486_v1  ;;  %v2499_v54 = vld [vmem:[#allocation33_spill] sm:$0xff] }
 0x11a   :  { %v202_v24 = vadd.f32 %v201_v30, %v2499_v54 }
 0x176   :  { %v477_v27 = vpop.f32.mrf.mxu1 }
 0x177   :  { %v520_v1 = vadd.f32 %v477_v27, %v2498_v37 }
 0x179   :  { %v1320_v41 = vmul.f32 -1.442695, %v520_v1 }
 0x17b   :  { %1368 = vpow2.f32 %v1320_v41 }
 0x17c   :  { %v497_v34 = vpop.f32.mrf.mxu2 }
 0x17d   :  { %v540_v43 = vadd.f32 %v497_v34, %v202_v24  ;;  %v517_v30 = vpop.f32.mrf.mxu3 }
 0x17e   :  { %v560_v34 = vadd.f32 %v2052_v31, %v517_v30 }
 0x17f   :  { %v1321_v18 = vmul.f32 -1.442695, %v540_v43 }
 0x181   :  { %v1369_v7 = vpop.eup %1368  ;;  %1370 = vpow2.f32 %v1321_v18 }
 0x182   :  { %v524_v53 = vadd.f32 1.0, %v1369_v7 }
 0x184   :  { %1372 = vrcp.f32 %v524_v53  ;;  %v536_v51 = vand.u32 2147483648, %v524_v53  ;;  %v534_v1 = vand.u32 2147483647, %v524_v53  ;;  %vm530_vm10 = vweird.f32 %v524_v53 }
 0x186   :  { %v537_v43 = vor.u32 1.1754944e-38, %v536_v51  ;;  %vm535_vm12 = vcmp.eq.f32.partialorder %v534_v1, 8.507059e+37 }
 0x187   :  { %v1371_v21 = vpop.eup %1370 }
 0x188   :  { %v544_v59 = vadd.f32 1.0, %v1371_v21  ;;  %v243_v21 = vadd.f32 %v242_v8, %v2055_v46 }
 0x18a   :  { %v1373_v38 = vpop.eup %1372  ;;  %1374 = vrcp.f32 %v544_v59  ;;  %v556_v49 = vand.u32 2147483648, %v544_v59  ;;  %vm550_vm14 = vweird.f32 %v544_v59 }
 0x18b   :  { %v526_v40 = vmul.f32 %v1373_v38, %v524_v53  ;;  %vm531_vm9 = vweird.f32 %v1373_v38 }
 0x18c   :  { %vm532_vm11 = vmor %vm530_vm10, %vm531_vm9 }
 0x18d   :  { %v527_v17 = vsub.f32 1.0, %v526_v40 }
 0x18f   :  { %v528_v5 = vmul.f32 %v1373_v38, %v527_v17 }
 0x190   :  { %v1375_v27 = vpop.eup %1374 }
 0x191   :  { %v546_v37 = vmul.f32 %v1375_v27, %v544_v59  ;;  %v529_v41 = vadd.f32 %v1373_v38, %v528_v5  ;;  %vm551_vm13 = vweird.f32 %v1375_v27  ;;  %v554_v5 = vand.u32 2147483647, %v544_v59 }
 0x192   :  { %vm552_vm15 = vmor %vm550_vm14, %vm551_vm13 }
 0x193   :  { %v547_v24 = vsub.f32 1.0, %v546_v37  ;;  %v533_v7 = vsel %vm532_vm11, %v1373_v38, %v529_v41  ;;  %v557_v37 = vor.u32 1.1754944e-38, %v556_v49  ;;  %vm555_vm0 = vcmp.eq.f32.partialorder %v554_v5, 8.507059e+37 }
 0x194   :  { %v538_v18 = vsel %vm535_vm12, %v537_v43, %v533_v7 }
 0x195   :  { %v561_v40 = vmul.f32 %v560_v34, %v538_v18  ;;  %v548_v54 = vmul.f32 %v1375_v27, %v547_v24 }
 0x197   :  { %v562_v17 = vadd.f32 %v561_v40, %v243_v21  ;;  %v549_v35 = vadd.f32 %v1375_v27, %v548_v54  ;;  %v2512_v21 = vld [vmem:[#allocation35_spill] sm:$0xff] }
 0x198   :  { %v246_v40 = vadd.f32 %v2512_v21, %v2055_v46 }
 0x199   :  { %1376 = vtanh.f32 %v562_v17  ;;  %v553_v53 = vsel %vm552_vm15, %v1375_v27, %v549_v35 }
 0x19a   :  { %v558_v1 = vsel %vm555_vm0, %v557_v37, %v553_v53 }
 0x19f   :  { %v1377_v51 = vpop.eup %1376 }
 0x1a0   :  { %v564_v38 = vsub.f32 %v2058_v47, %v1377_v51 }
 0x1a2   :  { %v565_v30 = vmul.f32 %v564_v38, %v558_v1 }
 0x1a4   :  { %v2142_v41 = vadd.f32 %v1377_v51, %v565_v30 }
 0x1a6   :  { %1322 = vst [vmem:[%s2445_s5 + $0x8] sm:$0xff] %v2142_v41  ;;  %591 = vmatmul.f32.vlgmr.msra.gmra.mxu0 %v2142_v41  ;;  %611 = vmatmul.f32.vlgmr.msra.gmra.mxu1 %v2142_v41 }
 0x1a7   :  { %631 = vmatmul.f32.vlgmr.msra.gmra.mxu2 %v2142_v41  ;;  %845 = vmatpush.msra.mxu0 %v1689_v10  ;;  %v2505_v10 = vld [vmem:[#allocation24_spill] sm:$0xff] }
 0x1a8   :  { %920 = vmatpush.msra.mxu1 %v1670_v0  ;;  %940 = vmatpush.msra.mxu2 %v1789_v44  ;;  %v2500_v0 = vld [vmem:[#allocation20_spill] sm:$0xff] }
 0x1a9   :  { %846 = vmatpush.msra.mxu0 %v1695_v12  ;;  %v2507_v12 = vld [vmem:[#allocation19_spill] sm:$0xff] }
 0x1aa   :  { %921 = vmatpush.msra.mxu1 %v1672_v2  ;;  %941 = vmatpush.msra.mxu2 %v1799_v48  ;;  %v2501_v2 = vld [vmem:[#allocation17_spill] sm:$0xff] }
 0x1ab   :  { %847 = vmatpush.msra.mxu0 %v1701_v14  ;;  %v2509_v14 = vld [vmem:[#allocation33_spill] sm:$0xff] }
 0x1ac   :  { %922 = vmatpush.msra.mxu1 %v1675_v4  ;;  %942 = vmatpush.msra.mxu2 %v1805_v50  ;;  %v2502_v4 = vld [vmem:[#allocation23_spill] sm:$0xff] }
 0x1ad   :  { %848 = vmatpush.msra.mxu0 %v1707_v16 }
 0x1ae   :  { %923 = vmatpush.msra.mxu1 %v1678_v6  ;;  %943 = vmatpush.msra.mxu2 %v1812_v52  ;;  %v2503_v6 = vld [vmem:[#allocation21_spill] sm:$0xff] }
 0x1af   :  { %849 = vmatpush.msra.mxu0 %v1723_v20 }
 0x1b0   :  { %924 = vmatpush.msra.mxu1 %v1686_v9  ;;  %944 = vmatpush.msra.mxu2 %v1826_v55  ;;  %v2504_v9 = vld [vmem:[#allocation18_spill] sm:$0xff] }
 0x1b1   :  { %850 = vmatpush.msra.mxu0 %v1733_v23 }
 0x1b2   :  { %925 = vmatpush.msra.mxu1 %v1693_v11  ;;  %945 = vmatpush.msra.mxu2 %v1835_v56  ;;  %v2506_v11 = vld [vmem:[#allocation22_spill] sm:$0xff] }
 0x1b3   :  { %851 = vmatpush.msra.mxu0 %v1739_v26 }
 0x1b4   :  { %926 = vmatpush.msra.mxu1 %v1699_v13  ;;  %946 = vmatpush.msra.mxu2 %v1840_v57  ;;  %v2508_v13 = vld [vmem:[#allocation25_spill] sm:$0xff] }
 0x1b5   :  { %852 = vmatpush.msra.mxu0 %v1745_v29 }
 0x1b6   :  { %927 = vmatpush.msra.mxu1 %v1705_v15  ;;  %947 = vmatpush.msra.mxu2 %v1846_v58  ;;  %v2510_v15 = vld [vmem:[#allocation36_spill] sm:$0xff] }
 0x1b7   :  { %853 = vmatpush.msra.mxu0 %v1756_v33  ;;  %v205_v16 = vadd.f32 %v2510_v15, %v2509_v14  ;;  %v2222_v15 = vld [vmem:[#allocation9 + $0x160] sm:$0xff] }
 0x1b8   :  { %928 = vmatpush.msra.mxu1 %v1721_v19  ;;  %948 = vmatpush.msra.mxu2 %v1858_v60 }
 0x1b9   :  { %854 = vmatpush.msra.mxu0 %v1764_v36 }
 0x1ba   :  { %929 = vmatpush.msra.mxu1 %v1731_v22  ;;  %949 = vmatpush.msra.mxu2 %v1867_v61  ;;  %v2511_v22 = vld [vmem:[#allocation28_spill] sm:$0xff] }
 0x1bb   :  { %855 = vmatpush.msra.mxu0 %v1772_v39 }
 0x1bc   :  { %930 = vmatpush.msra.mxu1 %v1737_v25  ;;  %950 = vmatpush.msra.mxu2 %v1872_v62 }
 0x1bd   :  { %856 = vmatpush.msra.mxu0 %v1778_v42 }
 0x1be   :  { %931 = vmatpush.msra.mxu1 %v1743_v28  ;;  %951 = vmatpush.msra.mxu2 %v1878_v63 }
 0x1bf   :  { %857 = vmatpush.msra.mxu0 %v1791_v45 }
 0x1c0   :  { %932 = vmatpush.msra.mxu1 %v1754_v32  ;;  %952 = vmatpush.msra.mxu2 %v1890_v3 }
 0x1c1   :  { %858 = vmatpush.msra.mxu0 %v2500_v0 }
 0x1c2   :  { %933 = vmatpush.msra.mxu1 %v2501_v2  ;;  %953 = vmatpush.msra.mxu2 %v2502_v4 }
 0x1c3   :  { %859 = vmatpush.msra.mxu0 %v2503_v6 }
 0x1c4   :  { %934 = vmatpush.msra.mxu1 %v2504_v9  ;;  %954 = vmatpush.msra.mxu2 %v2505_v10 }
 0x1c5   :  { %860 = vmatpush.msra.mxu0 %v2506_v11 }
 0x1c6   :  { %935 = vmatpush.msra.mxu1 %v2507_v12  ;;  %955 = vmatpush.msra.mxu2 %v2508_v13  ;;  %v2215_v12 = vld [vmem:[#allocation9 + $0x178] sm:$0xff] }
 0x223   :  { %v592_v19 = vpop.f32.mrf.mxu0  ;;  %v612_v20 = vpop.f32.mrf.mxu1 }
 0x224   :  { %v635_v23 = vadd.f32 %v592_v19, %v2511_v22  ;;  %v655_v25 = vadd.f32 %v612_v20, %v205_v16  ;;  %v2225_v16 = vld [vmem:[#allocation9 + $0x150] sm:$0xff]  ;;  %v2229_v19 = vld [vmem:[#allocation9 + $0x148] sm:$0xff]  ;;  %v2232_v20 = vld [vmem:[#allocation9 + $0x138] sm:$0xff] }
 0x225   :  { %v2239_v22 = vld [vmem:[#allocation9 + $0x120] sm:$0xff] }
 0x226   :  { %v1323_v26 = vmul.f32 -1.442695, %v635_v23  ;;  %v1324_v28 = vmul.f32 -1.442695, %v655_v25  ;;  %v2246_v23 = vld [vmem:[#allocation9 + $0x108] sm:$0xff]  ;;  %v2253_v25 = vld [vmem:[#allocation9 + $0xf0] sm:$0xff] }
 0x228   :  { %1378 = vpow2.f32 %v1323_v26  ;;  %v2260_v26 = vld [vmem:[#allocation9 + $0xd8] sm:$0xff] }
 0x229   :  { %1380 = vpow2.f32 %v1324_v28  ;;  %v2267_v28 = vld [vmem:[#allocation9 + $0xc0] sm:$0xff] }
 0x22a   :  { %v632_v59 = vpop.f32.mrf.mxu2 }
 0x22b   :  { %v675_v34 = vadd.f32 %v2052_v31, %v632_v59 }
 0x22e   :  { %v1379_v29 = vpop.eup %1378 }
 0x22f   :  { %v1381_v32 = vpop.eup %1380  ;;  %v639_v33 = vadd.f32 1.0, %v1379_v29  ;;  %v2274_v29 = vld [vmem:[#allocation9 + $0xa8] sm:$0xff] }
 0x230   :  { %v659_v35 = vadd.f32 1.0, %v1381_v32  ;;  %v2281_v32 = vld [vmem:[#allocation9 + $0x90] sm:$0xff] }
 0x231   :  { %1382 = vrcp.f32 %v639_v33  ;;  %v651_v47 = vand.u32 2147483648, %v639_v33  ;;  %v649_v8 = vand.u32 2147483647, %v639_v33  ;;  %vm645_vm2 = vweird.f32 %v639_v33 }
 0x232   :  { %1384 = vrcp.f32 %v659_v35  ;;  %v671_v37 = vand.u32 2147483648, %v659_v35  ;;  %vm665_vm6 = vweird.f32 %v659_v35  ;;  %v669_v38 = vand.u32 2147483647, %v659_v35 }
 0x233   :  { %v652_v24 = vor.u32 1.1754944e-38, %v651_v47  ;;  %vm650_vm4 = vcmp.eq.f32.partialorder %v649_v8, 8.507059e+37 }
 0x234   :  { %v672_v0 = vor.u32 1.1754944e-38, %v671_v37  ;;  %vm670_vm8 = vcmp.eq.f32.partialorder %v669_v38, 8.507059e+37 }
 0x237   :  { %v1383_v36 = vpop.eup %1382 }
 0x238   :  { %v1385_v39 = vpop.eup %1384  ;;  %v641_v42 = vmul.f32 %v1383_v36, %v639_v33  ;;  %vm646_vm1 = vweird.f32 %v1383_v36  ;;  %v2288_v33 = vld [vmem:[#allocation9 + $0x78] sm:$0xff] }
 0x239   :  { %v661_v49 = vmul.f32 %v1385_v39, %v659_v35  ;;  %vm647_vm3 = vmor %vm645_vm2, %vm646_vm1  ;;  %vm666_vm5 = vweird.f32 %v1385_v39  ;;  %v2295_v35 = vld [vmem:[#allocation9 + $0x60] sm:$0xff] }
 0x23a   :  { %v642_v45 = vsub.f32 1.0, %v641_v42  ;;  %vm667_vm7 = vmor %vm665_vm6, %vm666_vm5  ;;  %v2316_v42 = vld [vmem:[#allocation9 + $0x18] sm:$0xff] }
 0x23b   :  { %v662_v43 = vsub.f32 1.0, %v661_v49 }
 0x23c   :  { %v643_v54 = vmul.f32 %v1383_v36, %v642_v45  ;;  %v2323_v45 = vld [vmem:[#allocation9] sm:$0xff] }
 0x23d   :  { %v663_v5 = vmul.f32 %v1385_v39, %v662_v43 }
 0x23e   :  { %v644_v27 = vadd.f32 %v1383_v36, %v643_v54 }
 0x23f   :  { %v664_v51 = vadd.f32 %v1385_v39, %v663_v5 }
 0x240   :  { %v648_v7 = vsel %vm647_vm3, %v1383_v36, %v644_v27  ;;  %v2302_v36 = vld [vmem:[#allocation9 + $0x48] sm:$0xff] }
 0x241   :  { %v653_v18 = vsel %vm650_vm4, %v652_v24, %v648_v7  ;;  %v668_v1 = vsel %vm667_vm7, %v1385_v39, %v664_v51  ;;  %v2309_v39 = vld [vmem:[#allocation9 + $0x30] sm:$0xff] }
 0x242   :  { %v676_v17 = vmul.f32 %v675_v34, %v653_v18  ;;  %v673_v6 = vsel %vm670_vm8, %v672_v0, %v668_v1  ;;  %v2514_v27 = vld [vmem:[#allocation29_spill] sm:$0xff] }
 0x244   :  { %v677_v53 = vadd.f32 %v676_v17, %v246_v40 }
 0x246   :  { %1386 = vtanh.f32 %v677_v53 }
 0x24c   :  { %v1387_v30 = vpop.eup %1386 }
 0x24d   :  { %v679_v2 = vsub.f32 %v2142_v41, %v1387_v30  ;;  %v2218_v41 = vld [vmem:[#allocation9 + $0x168] sm:$0xff] }
 0x24f   :  { %v680_v9 = vmul.f32 %v679_v2, %v673_v6 }
 0x251   :  { %v2206_v11 = vadd.f32 %v1387_v30, %v680_v9 }
 0x253   :  { %1325 = vst [vmem:[%s2445_s5 + $0x10] sm:$0xff] %v2206_v11  ;;  %706 = vmatmul.f32.vlgmr.msrb.gmra.mxu3 %v2206_v11  ;;  %726 = vmatmul.f32.vlgmr.msrb.gmra.mxu0 %v2206_v11 }
 0x254   :  { %746 = vmatmul.f32.vlgmr.msrb.gmra.mxu1 %v2206_v11  ;;  %960 = vmatpush.msrb.mxu3 %v2215_v12 }
 0x255   :  { %1035 = vmatpush.msrb.mxu0 %v2218_v41  ;;  %1055 = vmatpush.msrb.mxu1 %v1789_v44  ;;  %v2236_v44 = vld [vmem:[#allocation9 + $0x130] sm:$0xff] }
 0x256   :  { %961 = vmatpush.msrb.mxu3 %v2222_v15 }
 0x257   :  { %1036 = vmatpush.msrb.mxu0 %v2225_v16  ;;  %1056 = vmatpush.msrb.mxu1 %v1799_v48  ;;  %v2243_v48 = vld [vmem:[#allocation9 + $0x118] sm:$0xff] }
 0x258   :  { %962 = vmatpush.msrb.mxu3 %v2229_v19 }
 0x259   :  { %1037 = vmatpush.msrb.mxu0 %v2232_v20  ;;  %1057 = vmatpush.msrb.mxu1 %v1805_v50  ;;  %v2250_v50 = vld [vmem:[#allocation9 + $0x100] sm:$0xff] }
 0x25a   :  { %963 = vmatpush.msrb.mxu3 %v2236_v44 }
 0x25b   :  { %1038 = vmatpush.msrb.mxu0 %v2239_v22  ;;  %1058 = vmatpush.msrb.mxu1 %v1812_v52  ;;  %v2257_v52 = vld [vmem:[#allocation9 + $0xe8] sm:$0xff] }
 0x25c   :  { %964 = vmatpush.msrb.mxu3 %v2243_v48 }
 0x25d   :  { %1039 = vmatpush.msrb.mxu0 %v2246_v23  ;;  %1059 = vmatpush.msrb.mxu1 %v1826_v55  ;;  %v2264_v55 = vld [vmem:[#allocation9 + $0xd0] sm:$0xff] }
 0x25e   :  { %965 = vmatpush.msrb.mxu3 %v2250_v50 }
 0x25f   :  { %1040 = vmatpush.msrb.mxu0 %v2253_v25  ;;  %1060 = vmatpush.msrb.mxu1 %v1835_v56  ;;  %v2271_v56 = vld [vmem:[#allocation9 + $0xb8] sm:$0xff] }
 0x260   :  { %966 = vmatpush.msrb.mxu3 %v2257_v52 }
 0x261   :  { %1041 = vmatpush.msrb.mxu0 %v2260_v26  ;;  %1061 = vmatpush.msrb.mxu1 %v1840_v57  ;;  %v2278_v57 = vld [vmem:[#allocation9 + $0xa0] sm:$0xff] }
 0x262   :  { %967 = vmatpush.msrb.mxu3 %v2264_v55 }
 0x263   :  { %1042 = vmatpush.msrb.mxu0 %v2267_v28  ;;  %1062 = vmatpush.msrb.mxu1 %v1846_v58  ;;  %v2285_v58 = vld [vmem:[#allocation9 + $0x88] sm:$0xff] }
 0x264   :  { %968 = vmatpush.msrb.mxu3 %v2271_v56 }
 0x265   :  { %1043 = vmatpush.msrb.mxu0 %v2274_v29  ;;  %1063 = vmatpush.msrb.mxu1 %v1858_v60  ;;  %v2292_v60 = vld [vmem:[#allocation9 + $0x70] sm:$0xff] }
 0x266   :  { %969 = vmatpush.msrb.mxu3 %v2278_v57 }
 0x267   :  { %1044 = vmatpush.msrb.mxu0 %v2281_v32  ;;  %1064 = vmatpush.msrb.mxu1 %v1867_v61  ;;  %v2299_v61 = vld [vmem:[#allocation9 + $0x58] sm:$0xff] }
 0x268   :  { %970 = vmatpush.msrb.mxu3 %v2285_v58 }
 0x269   :  { %1045 = vmatpush.msrb.mxu0 %v2288_v33  ;;  %1065 = vmatpush.msrb.mxu1 %v1872_v62  ;;  %v2306_v62 = vld [vmem:[#allocation9 + $0x40] sm:$0xff] }
 0x26a   :  { %971 = vmatpush.msrb.mxu3 %v2292_v60 }
 0x26b   :  { %1046 = vmatpush.msrb.mxu0 %v2295_v35  ;;  %1066 = vmatpush.msrb.mxu1 %v1878_v63  ;;  %v2313_v63 = vld [vmem:[#allocation9 + $0x28] sm:$0xff] }
 0x26c   :  { %972 = vmatpush.msrb.mxu3 %v2299_v61 }
 0x26d   :  { %1047 = vmatpush.msrb.mxu0 %v2302_v36  ;;  %1067 = vmatpush.msrb.mxu1 %v1890_v3  ;;  %v2320_v3 = vld [vmem:[#allocation9 + $0x10] sm:$0xff] }
 0x26e   :  { %973 = vmatpush.msrb.mxu3 %v2306_v62 }
 0x26f   :  { %1048 = vmatpush.msrb.mxu0 %v2309_v39  ;;  %1068 = vmatpush.msrb.mxu1 %v2502_v4  ;;  %v2513_v4 = vld [vmem:[#allocation38_spill] sm:$0xff] }
 0x270   :  { %974 = vmatpush.msrb.mxu3 %v2313_v63  ;;  %v208_v49 = vadd.f32 %v2513_v4, %v2509_v14  ;;  %v2515_v4 = vld [vmem:[#allocation37_spill] sm:$0xff] }
 0x271   :  { %1049 = vmatpush.msrb.mxu0 %v2316_v42  ;;  %1069 = vmatpush.msrb.mxu1 %v2505_v10 }
 0x272   :  { %975 = vmatpush.msrb.mxu3 %v2320_v3 }
 0x273   :  { %1050 = vmatpush.msrb.mxu0 %v2323_v45  ;;  %1070 = vmatpush.msrb.mxu1 %v2508_v13 }
 0x2d0   :  { %v727_v47 = vpop.f32.mrf.mxu0 }
 0x2d1   :  { %v770_v54 = vadd.f32 %v727_v47, %v208_v49  ;;  %v747_v38 = vpop.f32.mrf.mxu1  ;;  %v249_v49 = vadd.f32 %v2515_v4, %v2055_v46 }
 0x2d2   :  { %v790_v2 = vadd.f32 %v2052_v31, %v747_v38 }
 0x2d3   :  { %v1327_v8 = vmul.f32 -1.442695, %v770_v54 }
 0x2d5   :  { %1388 = vpow2.f32 %v1327_v8 }
 0x2d6   :  { %v707_v59 = vpop.f32.mrf.mxu3 }
 0x2d7   :  { %v750_v43 = vadd.f32 %v707_v59, %v2514_v27 }
 0x2d9   :  { %v1326_v10 = vmul.f32 -1.442695, %v750_v43 }
 0x2db   :  { %1390 = vpow2.f32 %v1326_v10  ;;  %v1389_v24 = vpop.eup %1388 }
 0x2dc   :  { %v774_v34 = vadd.f32 1.0, %v1389_v24 }
 0x2de   :  { %v786_v27 = vand.u32 2147483648, %v774_v34  ;;  %vm780_vm14 = vweird.f32 %v774_v34  ;;  %v784_v43 = vand.u32 2147483647, %v774_v34 }
 0x2e0   :  { %vm785_vm0 = vcmp.eq.f32.partialorder %v784_v43, 8.507059e+37 }
 0x2e1   :  { %v1391_v7 = vpop.eup %1390 }
 0x2e2   :  { %v754_v18 = vadd.f32 1.0, %v1391_v7  ;;  %v787_v7 = vor.u32 1.1754944e-38, %v786_v27 }
 0x2e4   :  { %1392 = vrcp.f32 %v754_v18  ;;  %v766_v53 = vand.u32 2147483648, %v754_v18  ;;  %v764_v37 = vand.u32 2147483647, %v754_v18  ;;  %vm760_vm10 = vweird.f32 %v754_v18 }
 0x2e5   :  { %1394 = vrcp.f32 %v774_v34 }
 0x2e6   :  { %v767_v0 = vor.u32 1.1754944e-38, %v766_v53  ;;  %vm765_vm12 = vcmp.eq.f32.partialorder %v764_v37, 8.507059e+37 }
 0x2ea   :  { %v1393_v21 = vpop.eup %1392 }
 0x2eb   :  { %v1395_v13 = vpop.eup %1394  ;;  %v756_v40 = vmul.f32 %v1393_v21, %v754_v18  ;;  %vm761_vm9 = vweird.f32 %v1393_v21 }
 0x2ec   :  { %v776_v5 = vmul.f32 %v1395_v13, %v774_v34  ;;  %vm762_vm11 = vmor %vm760_vm10, %vm761_vm9  ;;  %vm781_vm13 = vweird.f32 %v1395_v13  ;;  %v1471_v34 = vld [vmem:[#allocation9 + $0x158] sm:$0xff] }
 0x2ed   :  { %v757_v17 = vsub.f32 1.0, %v756_v40  ;;  %vm782_vm15 = vmor %vm780_vm14, %vm781_vm13 }
 0x2ee   :  { %v777_v30 = vsub.f32 1.0, %v776_v5  ;;  %v1473_v5 = vld [vmem:[#allocation9 + $0x128] sm:$0xff] }
 0x2ef   :  { %v758_v51 = vmul.f32 %v1393_v21, %v757_v17 }
 0x2f0   :  { %v778_v54 = vmul.f32 %v1395_v13, %v777_v30 }
 0x2f1   :  { %v759_v1 = vadd.f32 %v1393_v21, %v758_v51 }
 0x2f2   :  { %v779_v59 = vadd.f32 %v1395_v13, %v778_v54 }
 0x2f3   :  { %v763_v6 = vsel %vm762_vm11, %v1393_v21, %v759_v1 }
 0x2f4   :  { %v768_v9 = vsel %vm765_vm12, %v767_v0, %v763_v6  ;;  %v783_v10 = vsel %vm782_vm15, %v1395_v13, %v779_v59  ;;  %v1472_v13 = vld [vmem:[#allocation9 + $0x140] sm:$0xff] }
 0x2f5   :  { %v791_v47 = vmul.f32 %v790_v2, %v768_v9  ;;  %v788_v21 = vsel %vm785_vm0, %v787_v7, %v783_v10 }
 0x2f7   :  { %v792_v8 = vadd.f32 %v791_v47, %v249_v49 }
 0x2f9   :  { %1396 = vtanh.f32 %v792_v8 }
 0x2ff   :  { %v1397_v24 = vpop.eup %1396 }
 0x300   :  { %v794_v18 = vsub.f32 %v2206_v11, %v1397_v24  ;;  %v1470_v11 = vld [vmem:[#allocation9 + $0x170] sm:$0xff] }
 0x302   :  { %v795_v40 = vmul.f32 %v794_v18, %v788_v21 }
 0x304   :  { %v2334_v17 = vadd.f32 %v1397_v24, %v795_v40 }
 0x306   :  { %1328 = vst [vmem:[%s2445_s5 + $0x18] sm:$0xff] %v2334_v17  ;;  %821 = vmatmul.f32.vlgmr.msrb.gmra.mxu2 %v2334_v17  ;;  %841 = vmatmul.f32.vlgmr.msra.gmra.mxu3 %v2334_v17 }
 0x307   :  { %861 = vmatmul.f32.vlgmr.msra.gmra.mxu0 %v2334_v17  ;;  %1075 = vmatpush.msrb.mxu2 %v2215_v12 }
 0x308   :  { %1150 = vmatpush.msra.mxu3 %v2218_v41  ;;  %1170 = vmatpush.msra.mxu0 %v1470_v11  ;;  %v1474_v41 = vld [vmem:[#allocation9 + $0x110] sm:$0xff]  ;;  %v2518_v11 = vld [vmem:[#allocation39_spill] sm:$0xff] }
 0x309   :  { %1076 = vmatpush.msrb.mxu2 %v2222_v15 }
 0x30a   :  { %1151 = vmatpush.msra.mxu3 %v2225_v16  ;;  %1171 = vmatpush.msra.mxu0 %v1471_v34  ;;  %v1475_v16 = vld [vmem:[#allocation9 + $0xf8] sm:$0xff]  ;;  %v252_v34 = vadd.f32 %v2518_v11, %v2055_v46 }
 0x30b   :  { %1077 = vmatpush.msrb.mxu2 %v2229_v19 }
 0x30c   :  { %1152 = vmatpush.msra.mxu3 %v2232_v20  ;;  %1172 = vmatpush.msra.mxu0 %v1472_v13  ;;  %v1476_v20 = vld [vmem:[#allocation9 + $0xe0] sm:$0xff] }
 0x30d   :  { %1078 = vmatpush.msrb.mxu2 %v2236_v44 }
 0x30e   :  { %1153 = vmatpush.msra.mxu3 %v2239_v22  ;;  %1173 = vmatpush.msra.mxu0 %v1473_v5  ;;  %v1477_v22 = vld [vmem:[#allocation9 + $0xc8] sm:$0xff] }
 0x30f   :  { %1079 = vmatpush.msrb.mxu2 %v2243_v48 }
 0x310   :  { %1154 = vmatpush.msra.mxu3 %v2246_v23  ;;  %1174 = vmatpush.msra.mxu0 %v1474_v41  ;;  %v1478_v23 = vld [vmem:[#allocation9 + $0xb0] sm:$0xff] }
 0x311   :  { %1080 = vmatpush.msrb.mxu2 %v2250_v50 }
 0x312   :  { %1155 = vmatpush.msra.mxu3 %v2253_v25  ;;  %1175 = vmatpush.msra.mxu0 %v1475_v16  ;;  %v1479_v25 = vld [vmem:[#allocation9 + $0x98] sm:$0xff] }
 0x313   :  { %1081 = vmatpush.msrb.mxu2 %v2257_v52 }
 0x314   :  { %1156 = vmatpush.msra.mxu3 %v2260_v26  ;;  %1176 = vmatpush.msra.mxu0 %v1476_v20  ;;  %v1480_v26 = vld [vmem:[#allocation9 + $0x80] sm:$0xff] }
 0x315   :  { %1082 = vmatpush.msrb.mxu2 %v2264_v55 }
 0x316   :  { %1157 = vmatpush.msra.mxu3 %v2267_v28  ;;  %1177 = vmatpush.msra.mxu0 %v1477_v22  ;;  %v1481_v28 = vld [vmem:[#allocation9 + $0x68] sm:$0xff] }
 0x317   :  { %1083 = vmatpush.msrb.mxu2 %v2271_v56 }
 0x318   :  { %1158 = vmatpush.msra.mxu3 %v2274_v29  ;;  %1178 = vmatpush.msra.mxu0 %v1478_v23  ;;  %v1482_v29 = vld [vmem:[#allocation9 + $0x50] sm:$0xff] }
 0x319   :  { %1084 = vmatpush.msrb.mxu2 %v2278_v57 }
 0x31a   :  { %1159 = vmatpush.msra.mxu3 %v2281_v32  ;;  %1179 = vmatpush.msra.mxu0 %v1479_v25  ;;  %v1483_v32 = vld [vmem:[#allocation9 + $0x38] sm:$0xff] }
 0x31b   :  { %1085 = vmatpush.msrb.mxu2 %v2285_v58 }
 0x31c   :  { %1160 = vmatpush.msra.mxu3 %v2288_v33  ;;  %1180 = vmatpush.msra.mxu0 %v1480_v26  ;;  %v1484_v33 = vld [vmem:[#allocation9 + $0x20] sm:$0xff] }
 0x31d   :  { %1086 = vmatpush.msrb.mxu2 %v2292_v60 }
 0x31e   :  { %1161 = vmatpush.msra.mxu3 %v2295_v35  ;;  %1181 = vmatpush.msra.mxu0 %v1481_v28  ;;  %v1485_v35 = vld [vmem:[#allocation9 + $0x8] sm:$0xff] }
 0x31f   :  { %1087 = vmatpush.msrb.mxu2 %v2299_v61 }
 0x320   :  { %1162 = vmatpush.msra.mxu3 %v2302_v36  ;;  %1182 = vmatpush.msra.mxu0 %v1482_v29  ;;  %v2516_v36 = vld [vmem:[#allocation40_spill] sm:$0xff] }
 0x321   :  { %1088 = vmatpush.msrb.mxu2 %v2306_v62  ;;  %v211_v53 = vadd.f32 %v2516_v36, %v2509_v14 }
 0x322   :  { %1163 = vmatpush.msra.mxu3 %v2309_v39  ;;  %1183 = vmatpush.msra.mxu0 %v1483_v32  ;;  %v2517_v39 = vld [vmem:[#allocation30_spill] sm:$0xff] }
 0x323   :  { %1089 = vmatpush.msrb.mxu2 %v2313_v63 }
 0x324   :  { %1164 = vmatpush.msra.mxu3 %v2316_v42  ;;  %1184 = vmatpush.msra.mxu0 %v1484_v33 }
 0x325   :  { %1090 = vmatpush.msrb.mxu2 %v2320_v3 }
 0x326   :  { %1165 = vmatpush.msra.mxu3 %v2323_v45  ;;  %1185 = vmatpush.msra.mxu0 %v1485_v35 }
 0x384   :  { %v862_v43 = vpop.f32.mrf.mxu0 }
 0x385   :  { %v905_v18 = vadd.f32 %v2052_v31, %v862_v43 }
 0x389   :  { %v822_v51 = vpop.f32.mrf.mxu2  ;;  %v842_v37 = vpop.f32.mrf.mxu3 }
 0x38a   :  { %v865_v38 = vadd.f32 %v822_v51, %v2517_v39  ;;  %v885_v1 = vadd.f32 %v842_v37, %v211_v53 }
 0x38c   :  { %v1329_v30 = vmul.f32 -1.442695, %v865_v38  ;;  %v1330_v0 = vmul.f32 -1.442695, %v885_v1 }
 0x38e   :  { %1398 = vpow2.f32 %v1329_v30  ;;  %v2410_v30 = vld [vmem:[#allocation10] ss:$0 sm:$0xff] }
 0x38f   :  { %1400 = vpow2.f32 %v1330_v0 }
 0x394   :  { %v1399_v42 = vpop.eup %1398 }
 0x395   :  { %v1401_v2 = vpop.eup %1400  ;;  %v869_v6 = vadd.f32 1.0, %v1399_v42 }
 0x396   :  { %v889_v9 = vadd.f32 1.0, %v1401_v2  ;;  %v2521_v2 = vld [vmem:[#allocation41_spill] sm:$0xff] }
 0x397   :  { %1402 = vrcp.f32 %v869_v6  ;;  %v881_v54 = vand.u32 2147483648, %v869_v6  ;;  %v879_v27 = vand.u32 2147483647, %v869_v6  ;;  %vm875_vm2 = vweird.f32 %v869_v6 }
 0x398   :  { %1404 = vrcp.f32 %v889_v9  ;;  %v901_v20 = vand.u32 2147483648, %v889_v9  ;;  %vm895_vm6 = vweird.f32 %v889_v9  ;;  %v899_v22 = vand.u32 2147483647, %v889_v9 }
 0x399   :  { %v882_v24 = vor.u32 1.1754944e-38, %v881_v54  ;;  %vm880_vm4 = vcmp.eq.f32.partialorder %v879_v27, 8.507059e+37 }
 0x39a   :  { %v902_v26 = vor.u32 1.1754944e-38, %v901_v20  ;;  %vm900_vm8 = vcmp.eq.f32.partialorder %v899_v22, 8.507059e+37 }
 0x39d   :  { %v1403_v45 = vpop.eup %1402 }
 0x39e   :  { %v1405_v4 = vpop.eup %1404  ;;  %v871_v49 = vmul.f32 %v1403_v45, %v869_v6  ;;  %vm876_vm1 = vweird.f32 %v1403_v45  ;;  %v255_v6 = vadd.f32 %v2521_v2, %v2055_v46 }
 0x39f   :  { %v891_v8 = vmul.f32 %v1405_v4, %v889_v9  ;;  %vm877_vm3 = vmor %vm875_vm2, %vm876_vm1  ;;  %vm896_vm5 = vweird.f32 %v1405_v4 }
 0x3a0   :  { %v872_v47 = vsub.f32 1.0, %v871_v49  ;;  %vm897_vm7 = vmor %vm895_vm6, %vm896_vm5 }
 0x3a1   :  { %v892_v7 = vsub.f32 1.0, %v891_v8 }
 0x3a2   :  { %v873_v59 = vmul.f32 %v1403_v45, %v872_v47 }
 0x3a3   :  { %v893_v5 = vmul.f32 %v1405_v4, %v892_v7 }
 0x3a4   :  { %v874_v10 = vadd.f32 %v1403_v45, %v873_v59 }
 0x3a5   :  { %v894_v16 = vadd.f32 %v1405_v4, %v893_v5 }
 0x3a6   :  { %v878_v21 = vsel %vm877_vm3, %v1403_v45, %v874_v10 }
 0x3a7   :  { %v883_v40 = vsel %vm880_vm4, %v882_v24, %v878_v21  ;;  %v898_v23 = vsel %vm897_vm7, %v1405_v4, %v894_v16 }
 0x3a8   :  { %v906_v13 = vmul.f32 %v905_v18, %v883_v40  ;;  %v903_v28 = vsel %vm900_vm8, %v902_v26, %v898_v23  ;;  %v2522_v18 = vld [vmem:[#allocation44_spill] sm:$0xff] }
 0x3a9   :  { %v217_v21 = vadd.f32 %v2522_v18, %v2509_v14 }
 0x3aa   :  { %v907_v41 = vadd.f32 %v906_v13, %v252_v34  ;;  %v2523_v34 = vld [vmem:[#allocation32_spill] sm:$0xff] }
 0x3ac   :  { %1406 = vtanh.f32 %v907_v41 }
 0x3b2   :  { %v1407_v25 = vpop.eup %1406 }
 0x3b3   :  { %v909_v31 = vsub.f32 %v2334_v17, %v1407_v25 }
 0x3b5   :  { %v910_v29 = vmul.f32 %v909_v31, %v903_v28 }
 0x3b7   :  { %v2382_v32 = vadd.f32 %v1407_v25, %v910_v29 }
 0x3b9   :  { %1331 = vst [vmem:[%s2445_s5 + $0x20] sm:$0xff] %v2382_v32  ;;  %936 = vmatmul.f32.vlgmr.msra.gmra.mxu1 %v2382_v32  ;;  %956 = vmatmul.f32.vlgmr.msra.gmra.mxu2 %v2382_v32 }
 0x3ba   :  { %976 = vmatmul.f32.vlgmr.msrb.gmra.mxu3 %v2382_v32  ;;  %1190 = vmatpush.msra.mxu1 %v2215_v12 }
 0x3bc   :  { %1191 = vmatpush.msra.mxu1 %v2222_v15  ;;  %v2519_v15 = vld [vmem:[#allocation31_spill] sm:$0xff] }
 0x3be   :  { %1192 = vmatpush.msra.mxu1 %v2229_v19 }
 0x3c0   :  { %1193 = vmatpush.msra.mxu1 %v2236_v44 }
 0x3c2   :  { %1194 = vmatpush.msra.mxu1 %v2243_v48  ;;  %v2520_v48 = vld [vmem:[#allocation42_spill] sm:$0xff] }
 0x3c4   :  { %1195 = vmatpush.msra.mxu1 %v2250_v50  ;;  %v214_v50 = vadd.f32 %v2520_v48, %v2509_v14 }
 0x3c6   :  { %1196 = vmatpush.msra.mxu1 %v2257_v52 }
 0x3c8   :  { %1197 = vmatpush.msra.mxu1 %v2264_v55 }
 0x3ca   :  { %1198 = vmatpush.msra.mxu1 %v2271_v56 }
 0x3cc   :  { %1199 = vmatpush.msra.mxu1 %v2278_v57 }
 0x3ce   :  { %1200 = vmatpush.msra.mxu1 %v2285_v58 }
 0x3d0   :  { %1201 = vmatpush.msra.mxu1 %v2292_v60 }
 0x3d2   :  { %1202 = vmatpush.msra.mxu1 %v2299_v61 }
 0x3d4   :  { %1203 = vmatpush.msra.mxu1 %v2306_v62 }
 0x3d6   :  { %1204 = vmatpush.msra.mxu1 %v2313_v63 }
 0x3d8   :  { %1205 = vmatpush.msra.mxu1 %v2320_v3 }
 0x436   :  { %v937_v12 = vpop.f32.mrf.mxu1 }
 0x437   :  { %v980_v19 = vadd.f32 %v937_v12, %v2519_v15 }
 0x439   :  { %v1332_v44 = vmul.f32 -1.442695, %v980_v19 }
 0x43b   :  { %1408 = vpow2.f32 %v1332_v44 }
 0x43c   :  { %v957_v52 = vpop.f32.mrf.mxu2 }
 0x43d   :  { %v1000_v55 = vadd.f32 %v957_v52, %v214_v50  ;;  %v977_v53 = vpop.f32.mrf.mxu3 }
 0x43e   :  { %v1020_v0 = vadd.f32 %v2410_v30, %v977_v53 }
 0x43f   :  { %v1333_v56 = vmul.f32 -1.442695, %v1000_v55 }
 0x441   :  { %v1409_v57 = vpop.eup %1408  ;;  %1410 = vpow2.f32 %v1333_v56 }
 0x442   :  { %v984_v58 = vadd.f32 1.0, %v1409_v57 }
 0x444   :  { %1412 = vrcp.f32 %v984_v58  ;;  %v996_v17 = vand.u32 2147483648, %v984_v58  ;;  %v994_v35 = vand.u32 2147483647, %v984_v58  ;;  %vm990_vm10 = vweird.f32 %v984_v58 }
 0x446   :  { %v997_v39 = vor.u32 1.1754944e-38, %v996_v17  ;;  %vm995_vm12 = vcmp.eq.f32.partialorder %v994_v35, 8.507059e+37 }
 0x447   :  { %v1411_v60 = vpop.eup %1410 }
 0x448   :  { %v1004_v61 = vadd.f32 1.0, %v1411_v60 }
 0x44a   :  { %v1413_v62 = vpop.eup %1412  ;;  %1414 = vrcp.f32 %v1004_v61  ;;  %v1016_v47 = vand.u32 2147483648, %v1004_v61  ;;  %vm1010_vm14 = vweird.f32 %v1004_v61  ;;  %v1014_v54 = vand.u32 2147483647, %v1004_v61 }
 0x44b   :  { %v986_v63 = vmul.f32 %v1413_v62, %v984_v58  ;;  %vm991_vm9 = vweird.f32 %v1413_v62  ;;  %v2524_v58 = vld [vmem:[#allocation43_spill] sm:$0xff] }
 0x44c   :  { %vm992_vm11 = vmor %vm990_vm10, %vm991_vm9  ;;  %v1017_v27 = vor.u32 1.1754944e-38, %v1016_v47  ;;  %vm1015_vm0 = vcmp.eq.f32.partialorder %v1014_v54, 8.507059e+37  ;;  %v258_v60 = vadd.f32 %v2524_v58, %v2055_v46 }
 0x44d   :  { %v987_v3 = vsub.f32 1.0, %v986_v63 }
 0x44f   :  { %v988_v33 = vmul.f32 %v1413_v62, %v987_v3 }
 0x450   :  { %v1415_v36 = vpop.eup %1414 }
 0x451   :  { %v1006_v51 = vmul.f32 %v1415_v36, %v1004_v61  ;;  %v989_v37 = vadd.f32 %v1413_v62, %v988_v33  ;;  %vm1011_vm13 = vweird.f32 %v1415_v36 }
 0x452   :  { %vm1012_vm15 = vmor %vm1010_vm14, %vm1011_vm13 }
 0x453   :  { %v1007_v38 = vsub.f32 1.0, %v1006_v51  ;;  %v993_v1 = vsel %vm992_vm11, %v1413_v62, %v989_v37 }
 0x454   :  { %v998_v42 = vsel %vm995_vm12, %v997_v39, %v993_v1  ;;  %v2525_v1 = vld [vmem:[#allocation34_spill] sm:$0xff] }
 0x455   :  { %v1021_v9 = vmul.f32 %v1020_v0, %v998_v42  ;;  %v1008_v45 = vmul.f32 %v1415_v36, %v1007_v38  ;;  %v220_v0 = vadd.f32 %v2525_v1, %v2509_v14 }
 0x457   :  { %v1022_v4 = vadd.f32 %v1021_v9, %v255_v6  ;;  %v1009_v49 = vadd.f32 %v1415_v36, %v1008_v45  ;;  %v2526_v45 = vld [vmem:[#allocation27_spill] sm:$0xff] }
 0x459   :  { %1416 = vtanh.f32 %v1022_v4  ;;  %v1013_v8 = vsel %vm1012_vm15, %v1415_v36, %v1009_v49 }
 0x45a   :  { %v1018_v10 = vsel %vm1015_vm0, %v1017_v27, %v1013_v8 }
 0x45f   :  { %v1417_v59 = vpop.eup %1416 }
 0x460   :  { %v1024_v43 = vsub.f32 %v2382_v32, %v1417_v59 }
 0x462   :  { %v1025_v24 = vmul.f32 %v1024_v43, %v1018_v10 }
 0x464   :  { %v1026_v7 = vadd.f32 %v1417_v59, %v1025_v24 }
 0x466   :  { %1334 = vst [vmem:[%s2445_s5 + $0x28] sm:$0xff] %v1026_v7  ;;  %1051 = vmatmul.f32.vlgmr.msrb.gmra.mxu0 %v1026_v7  ;;  %1071 = vmatmul.f32.vlgmr.msrb.gmra.mxu1 %v1026_v7 }
 0x467   :  { %1091 = vmatmul.f32.vlgmr.msrb.gmra.mxu2 %v1026_v7 }
 0x4e3   :  { %v1052_v40 = vpop.f32.mrf.mxu0  ;;  %v1072_v11 = vpop.f32.mrf.mxu1 }
 0x4e4   :  { %v1095_v13 = vadd.f32 %v1052_v40, %v2523_v34  ;;  %v1115_v5 = vadd.f32 %v1072_v11, %v217_v21 }
 0x4e6   :  { %v1335_v41 = vmul.f32 -1.442695, %v1095_v13  ;;  %v1336_v16 = vmul.f32 -1.442695, %v1115_v5 }
 0x4e8   :  { %1418 = vpow2.f32 %v1335_v41 }
 0x4e9   :  { %1420 = vpow2.f32 %v1336_v16 }
 0x4ea   :  { %v1092_v44 = vpop.f32.mrf.mxu2 }
 0x4eb   :  { %v1135_v56 = vadd.f32 %v2410_v30, %v1092_v44 }
 0x4ee   :  { %v1419_v20 = vpop.eup %1418 }
 0x4ef   :  { %v1421_v22 = vpop.eup %1420  ;;  %v1099_v23 = vadd.f32 1.0, %v1419_v20  ;;  %v2527_v20 = vld [vmem:[#allocation45_spill] sm:$0xff] }
 0x4f0   :  { %v1119_v25 = vadd.f32 1.0, %v1421_v22  ;;  %v261_v22 = vadd.f32 %v2527_v20, %v2055_v46 }
 0x4f1   :  { %1422 = vrcp.f32 %v1099_v23  ;;  %v1111_v12 = vand.u32 2147483648, %v1099_v23  ;;  %v1109_v19 = vand.u32 2147483647, %v1099_v23  ;;  %vm1105_vm2 = vweird.f32 %v1099_v23 }
 0x4f2   :  { %1424 = vrcp.f32 %v1119_v25  ;;  %v1131_v17 = vand.u32 2147483648, %v1119_v25  ;;  %vm1125_vm6 = vweird.f32 %v1119_v25  ;;  %v1129_v33 = vand.u32 2147483647, %v1119_v25 }
 0x4f3   :  { %v1112_v52 = vor.u32 1.1754944e-38, %v1111_v12  ;;  %vm1110_vm4 = vcmp.eq.f32.partialorder %v1109_v19, 8.507059e+37 }
 0x4f4   :  { %v1132_v53 = vor.u32 1.1754944e-38, %v1131_v17  ;;  %vm1130_vm8 = vcmp.eq.f32.partialorder %v1129_v33, 8.507059e+37 }
 0x4f7   :  { %v1423_v26 = vpop.eup %1422 }
 0x4f8   :  { %v1425_v31 = vpop.eup %1424  ;;  %v1101_v28 = vmul.f32 %v1423_v26, %v1099_v23  ;;  %vm1106_vm1 = vweird.f32 %v1423_v26 }
 0x4f9   :  { %v1121_v32 = vmul.f32 %v1425_v31, %v1119_v25  ;;  %vm1107_vm3 = vmor %vm1105_vm2, %vm1106_vm1  ;;  %vm1126_vm5 = vweird.f32 %v1425_v31 }
 0x4fa   :  { %v1102_v29 = vsub.f32 1.0, %v1101_v28  ;;  %vm1127_vm7 = vmor %vm1125_vm6, %vm1126_vm5 }
 0x4fb   :  { %v1122_v50 = vsub.f32 1.0, %v1121_v32 }
 0x4fc   :  { %v1103_v15 = vmul.f32 %v1423_v26, %v1102_v29 }
 0x4fd   :  { %v1123_v62 = vmul.f32 %v1425_v31, %v1122_v50 }
 0x4fe   :  { %v1104_v48 = vadd.f32 %v1423_v26, %v1103_v15 }
 0x4ff   :  { %v1124_v3 = vadd.f32 %v1425_v31, %v1123_v62 }
 0x500   :  { %v1108_v55 = vsel %vm1107_vm3, %v1423_v26, %v1104_v48 }
 0x501   :  { %v1113_v57 = vsel %vm1110_vm4, %v1112_v52, %v1108_v55  ;;  %v1128_v35 = vsel %vm1127_vm7, %v1425_v31, %v1124_v3 }
 0x502   :  { %v1136_v61 = vmul.f32 %v1135_v56, %v1113_v57  ;;  %v1133_v37 = vsel %vm1130_vm8, %v1132_v53, %v1128_v35 }
 0x504   :  { %v1137_v63 = vadd.f32 %v1136_v61, %v258_v60 }
 0x506   :  { %1426 = vtanh.f32 %v1137_v63 }
 0x50c   :  { %v1427_v36 = vpop.eup %1426 }
 0x50d   :  { %v1139_v51 = vsub.f32 %v1026_v7, %v1427_v36 }
 0x50f   :  { %v1140_v39 = vmul.f32 %v1139_v51, %v1133_v37 }
 0x511   :  { %v1141_v38 = vadd.f32 %v1427_v36, %v1140_v39 }
 0x513   :  { %1337 = vst [vmem:[%s2445_s5 + $0x30] sm:$0xff] %v1141_v38  ;;  %1166 = vmatmul.f32.vlgmr.msra.gmra.mxu3 %v1141_v38  ;;  %1186 = vmatmul.f32.vlgmr.msra.gmra.mxu0 %v1141_v38 }
 0x514   :  { %1206 = vmatmul.f32.vlgmr.msra.gmra.mxu1 %v1141_v38 }
 0x590   :  { %v1187_v42 = vpop.f32.mrf.mxu0 }
 0x591   :  { %v1230_v2 = vadd.f32 %v1187_v42, %v220_v0  ;;  %v1207_v40 = vpop.f32.mrf.mxu1 }
 0x592   :  { %v1250_v5 = vadd.f32 %v2410_v30, %v1207_v40 }
 0x593   :  { %v1339_v6 = vmul.f32 -1.442695, %v1230_v2 }
 0x595   :  { %1428 = vpow2.f32 %v1339_v6 }
 0x596   :  { %v1167_v9 = vpop.f32.mrf.mxu3 }
 0x597   :  { %v1210_v4 = vadd.f32 %v1167_v9, %v2526_v45 }
 0x599   :  { %v1338_v49 = vmul.f32 -1.442695, %v1210_v4 }
 0x59b   :  { %1430 = vpow2.f32 %v1338_v49  ;;  %v1429_v47 = vpop.eup %1428 }
 0x59c   :  { %v1234_v8 = vadd.f32 1.0, %v1429_v47 }
 0x59e   :  { %v1246_v28 = vand.u32 2147483648, %v1234_v8  ;;  %vm1240_vm14 = vweird.f32 %v1234_v8  ;;  %v1244_v29 = vand.u32 2147483647, %v1234_v8 }
 0x5a0   :  { %v1247_v15 = vor.u32 1.1754944e-38, %v1246_v28  ;;  %vm1245_vm0 = vcmp.eq.f32.partialorder %v1244_v29, 8.507059e+37 }
 0x5a1   :  { %v1431_v54 = vpop.eup %1430 }
 0x5a2   :  { %v1214_v59 = vadd.f32 1.0, %v1431_v54 }
 0x5a4   :  { %1432 = vrcp.f32 %v1214_v59  ;;  %v1226_v7 = vand.u32 2147483648, %v1214_v59  ;;  %v1224_v21 = vand.u32 2147483647, %v1214_v59  ;;  %vm1220_vm10 = vweird.f32 %v1214_v59 }
 0x5a5   :  { %1434 = vrcp.f32 %v1234_v8 }
 0x5a6   :  { %v1227_v13 = vor.u32 1.1754944e-38, %v1226_v7  ;;  %vm1225_vm12 = vcmp.eq.f32.partialorder %v1224_v21, 8.507059e+37 }
 0x5aa   :  { %v1433_v27 = vpop.eup %1432 }
 0x5ab   :  { %v1435_v43 = vpop.eup %1434  ;;  %v1216_v10 = vmul.f32 %v1433_v27, %v1214_v59  ;;  %vm1221_vm9 = vweird.f32 %v1433_v27 }
 0x5ac   :  { %v1236_v14 = vmul.f32 %v1435_v43, %v1234_v8  ;;  %vm1222_vm11 = vmor %vm1220_vm10, %vm1221_vm9  ;;  %vm1241_vm13 = vweird.f32 %v1435_v43 }
 0x5ad   :  { %v1217_v24 = vsub.f32 1.0, %v1216_v10  ;;  %vm1242_vm15 = vmor %vm1240_vm14, %vm1241_vm13 }
 0x5ae   :  { %v1237_v34 = vsub.f32 1.0, %v1236_v14 }
 0x5af   :  { %v1218_v18 = vmul.f32 %v1433_v27, %v1217_v24 }
 0x5b0   :  { %v1238_v25 = vmul.f32 %v1435_v43, %v1237_v34 }
 0x5b1   :  { %v1219_v11 = vadd.f32 %v1433_v27, %v1218_v18 }
 0x5b2   :  { %v1239_v31 = vadd.f32 %v1435_v43, %v1238_v25 }
 0x5b3   :  { %v1223_v41 = vsel %vm1222_vm11, %v1433_v27, %v1219_v11 }
 0x5b4   :  { %v1228_v16 = vsel %vm1225_vm12, %v1227_v13, %v1223_v41  ;;  %v1243_v32 = vsel %vm1242_vm15, %v1435_v43, %v1239_v31 }
 0x5b5   :  { %v1251_v23 = vmul.f32 %v1250_v5, %v1228_v16  ;;  %v1248_v19 = vsel %vm1245_vm0, %v1247_v15, %v1243_v32 }
 0x5b7   :  { %v1252_v26 = vadd.f32 %v1251_v23, %v261_v22 }
 0x5b9   :  { %1436 = vtanh.f32 %v1252_v26 }
 0x5bf   :  { %v1437_v12 = vpop.eup %1436 }
 0x5c0   :  { %v1254_v30 = vsub.f32 %v1141_v38, %v1437_v12 }
 0x5c2   :  { %v1255_v44 = vmul.f32 %v1254_v30, %v1248_v19 }
 0x5c4   :  { %v1256_v46 = vadd.f32 %v1437_v12, %v1255_v44 }
 0x5c6   :  { %1340 = vst [vmem:[%s2445_s5 + $0x38] sm:$0xff] %v1256_v46 }
 0x5c7   :  { %1263 = vst [vmem:[#allocation12] sm:$0xff] %v1256_v46 }
 0x5c8   :  { %1276 = dma.vmem_to_hbm [thread:$0]  %s1272_s17, 128, %s1274_s20, [#allocation6]  }
 0x5c9   :  { %1613 = dma.done.wait [#allocation6], 128  }
 0x5ca   :  { %1614 = vsyncadd [#allocation6], 4294967168 }
 0x5cb   :  { %1283 = vsyncpa [#allocation5], 1 }
 0x5cc   :  { %1284 = vsyncpa [#allocation8], 1 }
 0x5cd   :  { %1285 = vsyncpa [#allocation11], 1 }
 0x5ce   :  { %1286 = vsyncpa [#allocation6], 1 }

</bundles_post_ra>
